<compile_context>
chip_gen: v7x
topology: tpu7x:2x2x1
jax: 0.10.0
libtpu: 0.0.40
codegen_flags: <defaults>
</compile_context>

<pallas_src>
import functools

import jax
import jax.numpy as jnp
from jax import lax
from jax.experimental import pallas as pl
from jax.experimental.pallas import tpu as pltpu

LRELU_SLOPE = 0.2
BN_EPS = 1e-5


# ----------------------------------------------------------------------------
# Fused Pallas kernel: full generator forward for the whole batch (batch in lanes)
# ----------------------------------------------------------------------------
def _fused_generator_kernel(*refs, act_flags, stride, temperature):
    """refs = (x_ref, w0, b0, w1, b1, ..., o_ref)

    x_ref : (cin0_pad, B*H*W)  channel-major flat input, batch folded into lanes
                               (constant row stride = `stride` = W)
    w_l   : (9, cout_l, cin_l) per-tap conv weights (BN scale folded), tap=dh*3+dw
    b_l   : (cout_l, 1)        conv bias + BN shift folded
    o_ref : (nc, n_flat_out)   un-cropped flat softmax output (single dense store)
    """
    n_layers = len(act_flags)
    x_ref = refs[0]
    wb = refs[1:1 + 2 * n_layers]
    o_ref = refs[1 + 2 * n_layers]

    act = x_ref[...]                       # (cin, n_in) f32, VMEM/vreg resident
    n_in = act.shape[-1]
    for l in range(n_layers):
        w_ref = wb[2 * l]                  # (9, cout, cin)
        b = wb[2 * l + 1][...]             # (cout, 1)
        n_out = n_in - 2 * stride - 2      # VALID 3x3 at constant row stride

        # Per-tap accumulation: 9 small K=cin MXU matmuls instead of one big
        # (9*cin, n_out) im2col slab (which exceeds the 64-vreg file and
        # round-trips through VMEM).  Each tap slice is only ~cin x n_out.
        acc = None
        for tap in range(9):
            dh, dw = tap // 3, tap % 3
            off = dh * stride + dw
            part = jnp.dot(w_ref[tap], act[:, off:off + n_out],
                           preferred_element_type=jnp.float32)
            acc = part if acc is None else acc + part
        t = acc + b
        if act_flags[l]:
            t = jnp.maximum(t, LRELU_SLOPE * t)   # LeakyReLU(0.2)
        act = t
        n_in = n_out

    # Channel softmax on the flat grid; garbage seam columns are harmless
    # (never consumed by valid output positions) and get cropped wrapper-side.
    z = act if temperature == 1.0 else act * temperature
    m = jnp.max(z, axis=0, keepdims=True)
    e = jnp.exp(z - m)
    s = jnp.sum(e, axis=0, keepdims=True)
    o_ref[...] = (e * pl.reciprocal(s, approx=True)).astype(o_ref.dtype)


# ----------------------------------------------------------------------------
# Wrapper: one grid-less pallas_call for the whole network
# ----------------------------------------------------------------------------
def generator_forward(x_nchw, y_nchw, folded_layers, temperature=1.0):
    B, C, H, W = x_nchw.shape
    S = W                                    # constant flat row stride
    L = len(folded_layers)
    h_out, w_out = H - 2 * L, W - 2 * L
    n_flat_in = B * H * W
    n_flat_out = n_flat_in - L * (2 * S + 2)

    # Input: NCHW -> channel-major flat (C, B*H*W); pad head channels so the
    # activation slab is sublane (8) aligned (head weight is padded to match).
    cin0_pad = folded_layers[0]["w3"].shape[2]
    x_flat = jnp.transpose(x_nchw, (1, 0, 2, 3)).reshape(C, n_flat_in)
    if cin0_pad > C:
        x_flat = jnp.pad(x_flat, ((0, cin0_pad - C), (0, 0)))

    inputs = [x_flat]
    vmem = pl.BlockSpec(memory_space=pltpu.MemorySpace.VMEM)
    in_specs = [vmem]
    act_flags = []
    for lyr in folded_layers:
        inputs += [lyr["w3"], lyr["bias"]]
        in_specs += [vmem, vmem]
        act_flags.append(bool(lyr["act"]))

    kernel = functools.partial(
        _fused_generator_kernel,
        act_flags=tuple(act_flags), stride=S, temperature=float(temperature))

    out_flat = pl.pallas_call(
        kernel,
        out_shape=jax.ShapeDtypeStruct((C, n_flat_out), jnp.float32),
        in_specs=in_specs,
        out_specs=pl.BlockSpec(memory_space=pltpu.MemorySpace.VMEM),
    )(*inputs)

    # De-stride crop in the wrapper (tiny XLA ops): pad flat width back to
    # B*H*W, reshape to (C,B,H,W), take the valid top-left region.
    out_full = jnp.pad(out_flat, ((0, 0), (0, n_flat_in - n_flat_out)))
    out_nchw = jnp.transpose(out_full.reshape(C, B, H, W), (1, 0, 2, 3))
    out_crop = out_nchw[:, :, :h_out, :w_out]

    # Center-crop y exactly as the PyTorch module does (same ind on both dims)
    # and add the skip connection.
    ind = int((y_nchw.shape[2] - h_out) / 2)
    y_crop = y_nchw[:, :, ind:y_nchw.shape[2] - ind, ind:y_nchw.shape[3] - ind]
    return out_crop + y_crop


# ----------------------------------------------------------------------------
# Deterministic parameter construction (Conv + eval-mode BN folded)
# ----------------------------------------------------------------------------
def init_params(key, nc_current, nfc, num_layer):
    # head (nc->N, BN+act), (num_layer-1) body blocks (N->N, BN+act),
    # tail conv (N->nc, no BN, no act)
    specs = [(nc_current, nfc, True)]
    specs += [(nfc, nfc, True)] * (num_layer - 1)
    specs += [(nfc, nc_current, False)]

    raw_layers, folded_layers = [], []
    for i, (cin, cout, has_bn) in enumerate(specs):
        kk = jax.random.fold_in(key, i)
        kw, kb, kg, kbe, km, kv = jax.random.split(kk, 6)
        w = 0.1 * jax.random.normal(kw, (3, 3, cin, cout), jnp.float32)  # HWIO
        conv_b = 0.1 * jax.random.normal(kb, (cout,), jnp.float32)
        if has_bn:
            gamma = 1.0 + 0.1 * jax.random.normal(kg, (cout,), jnp.float32)
            beta = 0.1 * jax.random.normal(kbe, (cout,), jnp.float32)
            mean = 0.1 * jax.random.normal(km, (cout,), jnp.float32)
            var = jax.random.uniform(kv, (cout,), jnp.float32, 0.5, 1.5)
            scale = gamma / jnp.sqrt(var + BN_EPS)
            bias = (conv_b - mean) * scale + beta
        else:
            gamma = beta = mean = var = None
            scale = jnp.ones((cout,), jnp.float32)
            bias = conv_b
        raw_layers.append(dict(w=w, conv_b=conv_b, bn=has_bn, gamma=gamma,
                               beta=beta, mean=mean, var=var))

        # ---- fold into fused-kernel form: per-tap weights + bias -------------
        # Only the head's cin gets padded to a sublane multiple; later layers
        # consume the previous layer's (unpadded) cout channels.
        cin_pad = ((cin + 7) // 8) * 8 if i == 0 else cin
        w_p = w
        if cin_pad > cin:
            w_p = jnp.pad(w, ((0, 0), (0, 0), (0, cin_pad - cin), (0, 0)))
        # (3,3,cin_pad,cout) -> (9, cout, cin_pad); tap index = dh*3 + dw
        w3 = jnp.transpose(w_p.reshape(9, cin_pad, cout), (0, 2, 1))
        w3 = w3 * scale[None, :, None]                 # fold BN scale into weight
        folded_layers.append(dict(w3=w3, bias=bias.reshape(cout, 1), act=has_bn))
    return raw_layers, folded_layers


# ----------------------------------------------------------------------------
# Pure-JAX reference (PyTorch semantics, eval-mode BN)
# ----------------------------------------------------------------------------
def ref_forward(x, y, raw_layers, temperature=1.0):
    for lyr in raw_layers:
        x = lax.conv_general_dilated(
            x, lyr["w"], (1, 1), "VALID",
            dimension_numbers=("NCHW", "HWIO", "NCHW"))
        x = x + lyr["conv_b"][None, :, None, None]
        if lyr["bn"]:
            x = (x - lyr["mean"][None, :, None, None]) / jnp.sqrt(
                lyr["var"][None, :, None, None] + BN_EPS)
            x = x * lyr["gamma"][None, :, None, None] + lyr["beta"][None, :, None, None]
            x = jnp.where(x >= 0, x, LRELU_SLOPE * x)
    x = jax.nn.softmax(x * temperature, axis=1)
    ind = int((y.shape[2] - x.shape[2]) / 2)
    y = y[:, :, ind:y.shape[2] - ind, ind:y.shape[3] - ind]
    return x + y


# ----------------------------------------------------------------------------
if __name__ == "__main__":
    # opt: nc_current=4, nfc=32, num_layer=3, padd_size=0
    nc_current, nfc, num_layer = 4, 32, 3
    B, H, W = 2, 16, 16

    key = jax.random.PRNGKey(0)
    kx, ky, kp = jax.random.split(key, 3)
    x = jax.random.normal(kx, (B, nc_current, H, W), jnp.float32)
    y = jax.random.normal(ky, (B, nc_current, H, W), jnp.float32)

    raw_layers, folded_layers = init_params(kp, nc_current, nfc, num_layer)

    out = generator_forward(x, y, folded_layers, temperature=1.0)
    out = jax.block_until_ready(out)

    ref = ref_forward(x, y, raw_layers, temperature=1.0)
    n_convs = num_layer + 1
    expected_shape = (B, nc_current, H - 2 * n_convs, W - 2 * n_convs)
    assert out.shape == expected_shape, (out.shape, expected_shape)
    assert jnp.allclose(out, ref, atol=5e-2, rtol=5e-2), float(
        jnp.max(jnp.abs(out - ref)))

    print("KERNEL_OK")
</pallas_src>

<mosaic_0001>
module attributes {stable_mosaic.version = 11 : i64} {
  func.func @_fused_generator_kernel(%arg0: memref<8x512xf32, #tpu.memory_space<vmem>>, %arg1: memref<9x32x8xf32, #tpu.memory_space<vmem>>, %arg2: memref<32x1xf32, #tpu.memory_space<vmem>>, %arg3: memref<9x32x32xf32, #tpu.memory_space<vmem>>, %arg4: memref<32x1xf32, #tpu.memory_space<vmem>>, %arg5: memref<9x32x32xf32, #tpu.memory_space<vmem>>, %arg6: memref<32x1xf32, #tpu.memory_space<vmem>>, %arg7: memref<9x4x32xf32, #tpu.memory_space<vmem>>, %arg8: memref<4x1xf32, #tpu.memory_space<vmem>>, %arg9: memref<4x376xf32, #tpu.memory_space<vmem>>) attributes {dimension_semantics = [], scalar_prefetch = 0 : i64, scratch_operands = 0 : i64, tpu.core_type = #tpu.core_type<tc>} {
    %c0 = arith.constant 0 : index
    %c0_0 = arith.constant 0 : index
    %0 = vector.load %arg0[%c0, %c0_0] : memref<8x512xf32, #tpu.memory_space<vmem>>, vector<8x512xf32>
    %c0_1 = arith.constant 0 : index
    %c0_2 = arith.constant 0 : index
    %1 = vector.load %arg2[%c0_1, %c0_2] : memref<32x1xf32, #tpu.memory_space<vmem>>, vector<32x1xf32>
    %c0_3 = arith.constant 0 : index
    %c0_4 = arith.constant 0 : index
    %c0_5 = arith.constant 0 : index
    %2 = vector.load %arg1[%c0_3, %c0_4, %c0_5] : memref<9x32x8xf32, #tpu.memory_space<vmem>>, vector<1x32x8xf32>
    %3 = vector.shape_cast %2 : vector<1x32x8xf32> to vector<32x8xf32>
    %4 = vector.extract_strided_slice %0 {offsets = [0, 0], sizes = [8, 478], strides = [1, 1]} : vector<8x512xf32> to vector<8x478xf32>
    %cst = arith.constant dense<0.000000e+00> : vector<32x478xf32>
    %5 = tpu.matmul %3, %4, %cst {dimension_numbers = #tpu.dot_dimension_numbers<[1], [0], [0], [1], [0, 0, 1, 1], [], []>} : vector<32x8xf32>, vector<8x478xf32>, vector<32x478xf32> -> vector<32x478xf32>
    %c1 = arith.constant 1 : index
    %c0_6 = arith.constant 0 : index
    %c0_7 = arith.constant 0 : index
    %6 = vector.load %arg1[%c1, %c0_6, %c0_7] : memref<9x32x8xf32, #tpu.memory_space<vmem>>, vector<1x32x8xf32>
    %7 = vector.shape_cast %6 : vector<1x32x8xf32> to vector<32x8xf32>
    %8 = vector.extract_strided_slice %0 {offsets = [0, 1], sizes = [8, 478], strides = [1, 1]} : vector<8x512xf32> to vector<8x478xf32>
    %cst_8 = arith.constant dense<0.000000e+00> : vector<32x478xf32>
    %9 = tpu.matmul %7, %8, %cst_8 {dimension_numbers = #tpu.dot_dimension_numbers<[1], [0], [0], [1], [0, 0, 1, 1], [], []>} : vector<32x8xf32>, vector<8x478xf32>, vector<32x478xf32> -> vector<32x478xf32>
    %10 = arith.addf %5, %9 : vector<32x478xf32>
    %c2 = arith.constant 2 : index
    %c0_9 = arith.constant 0 : index
    %c0_10 = arith.constant 0 : index
    %11 = vector.load %arg1[%c2, %c0_9, %c0_10] : memref<9x32x8xf32, #tpu.memory_space<vmem>>, vector<1x32x8xf32>
    %12 = vector.shape_cast %11 : vector<1x32x8xf32> to vector<32x8xf32>
    %13 = vector.extract_strided_slice %0 {offsets = [0, 2], sizes = [8, 478], strides = [1, 1]} : vector<8x512xf32> to vector<8x478xf32>
    %cst_11 = arith.constant dense<0.000000e+00> : vector<32x478xf32>
    %14 = tpu.matmul %12, %13, %cst_11 {dimension_numbers = #tpu.dot_dimension_numbers<[1], [0], [0], [1], [0, 0, 1, 1], [], []>} : vector<32x8xf32>, vector<8x478xf32>, vector<32x478xf32> -> vector<32x478xf32>
    %15 = arith.addf %10, %14 : vector<32x478xf32>
    %c3 = arith.constant 3 : index
    %c0_12 = arith.constant 0 : index
    %c0_13 = arith.constant 0 : index
    %16 = vector.load %arg1[%c3, %c0_12, %c0_13] : memref<9x32x8xf32, #tpu.memory_space<vmem>>, vector<1x32x8xf32>
    %17 = vector.shape_cast %16 : vector<1x32x8xf32> to vector<32x8xf32>
    %18 = vector.extract_strided_slice %0 {offsets = [0, 16], sizes = [8, 478], strides = [1, 1]} : vector<8x512xf32> to vector<8x478xf32>
    %cst_14 = arith.constant dense<0.000000e+00> : vector<32x478xf32>
    %19 = tpu.matmul %17, %18, %cst_14 {dimension_numbers = #tpu.dot_dimension_numbers<[1], [0], [0], [1], [0, 0, 1, 1], [], []>} : vector<32x8xf32>, vector<8x478xf32>, vector<32x478xf32> -> vector<32x478xf32>
    %20 = arith.addf %15, %19 : vector<32x478xf32>
    %c4 = arith.constant 4 : index
    %c0_15 = arith.constant 0 : index
    %c0_16 = arith.constant 0 : index
    %21 = vector.load %arg1[%c4, %c0_15, %c0_16] : memref<9x32x8xf32, #tpu.memory_space<vmem>>, vector<1x32x8xf32>
    %22 = vector.shape_cast %21 : vector<1x32x8xf32> to vector<32x8xf32>
    %23 = vector.extract_strided_slice %0 {offsets = [0, 17], sizes = [8, 478], strides = [1, 1]} : vector<8x512xf32> to vector<8x478xf32>
    %cst_17 = arith.constant dense<0.000000e+00> : vector<32x478xf32>
    %24 = tpu.matmul %22, %23, %cst_17 {dimension_numbers = #tpu.dot_dimension_numbers<[1], [0], [0], [1], [0, 0, 1, 1], [], []>} : vector<32x8xf32>, vector<8x478xf32>, vector<32x478xf32> -> vector<32x478xf32>
    %25 = arith.addf %20, %24 : vector<32x478xf32>
    %c5 = arith.constant 5 : index
    %c0_18 = arith.constant 0 : index
    %c0_19 = arith.constant 0 : index
    %26 = vector.load %arg1[%c5, %c0_18, %c0_19] : memref<9x32x8xf32, #tpu.memory_space<vmem>>, vector<1x32x8xf32>
    %27 = vector.shape_cast %26 : vector<1x32x8xf32> to vector<32x8xf32>
    %28 = vector.extract_strided_slice %0 {offsets = [0, 18], sizes = [8, 478], strides = [1, 1]} : vector<8x512xf32> to vector<8x478xf32>
    %cst_20 = arith.constant dense<0.000000e+00> : vector<32x478xf32>
    %29 = tpu.matmul %27, %28, %cst_20 {dimension_numbers = #tpu.dot_dimension_numbers<[1], [0], [0], [1], [0, 0, 1, 1], [], []>} : vector<32x8xf32>, vector<8x478xf32>, vector<32x478xf32> -> vector<32x478xf32>
    %30 = arith.addf %25, %29 : vector<32x478xf32>
    %c6 = arith.constant 6 : index
    %c0_21 = arith.constant 0 : index
    %c0_22 = arith.constant 0 : index
    %31 = vector.load %arg1[%c6, %c0_21, %c0_22] : memref<9x32x8xf32, #tpu.memory_space<vmem>>, vector<1x32x8xf32>
    %32 = vector.shape_cast %31 : vector<1x32x8xf32> to vector<32x8xf32>
    %33 = vector.extract_strided_slice %0 {offsets = [0, 32], sizes = [8, 478], strides = [1, 1]} : vector<8x512xf32> to vector<8x478xf32>
    %cst_23 = arith.constant dense<0.000000e+00> : vector<32x478xf32>
    %34 = tpu.matmul %32, %33, %cst_23 {dimension_numbers = #tpu.dot_dimension_numbers<[1], [0], [0], [1], [0, 0, 1, 1], [], []>} : vector<32x8xf32>, vector<8x478xf32>, vector<32x478xf32> -> vector<32x478xf32>
    %35 = arith.addf %30, %34 : vector<32x478xf32>
    %c7 = arith.constant 7 : index
    %c0_24 = arith.constant 0 : index
    %c0_25 = arith.constant 0 : index
    %36 = vector.load %arg1[%c7, %c0_24, %c0_25] : memref<9x32x8xf32, #tpu.memory_space<vmem>>, vector<1x32x8xf32>
    %37 = vector.shape_cast %36 : vector<1x32x8xf32> to vector<32x8xf32>
    %38 = vector.extract_strided_slice %0 {offsets = [0, 33], sizes = [8, 478], strides = [1, 1]} : vector<8x512xf32> to vector<8x478xf32>
    %cst_26 = arith.constant dense<0.000000e+00> : vector<32x478xf32>
    %39 = tpu.matmul %37, %38, %cst_26 {dimension_numbers = #tpu.dot_dimension_numbers<[1], [0], [0], [1], [0, 0, 1, 1], [], []>} : vector<32x8xf32>, vector<8x478xf32>, vector<32x478xf32> -> vector<32x478xf32>
    %40 = arith.addf %35, %39 : vector<32x478xf32>
    %c8 = arith.constant 8 : index
    %c0_27 = arith.constant 0 : index
    %c0_28 = arith.constant 0 : index
    %41 = vector.load %arg1[%c8, %c0_27, %c0_28] : memref<9x32x8xf32, #tpu.memory_space<vmem>>, vector<1x32x8xf32>
    %42 = vector.shape_cast %41 : vector<1x32x8xf32> to vector<32x8xf32>
    %43 = vector.extract_strided_slice %0 {offsets = [0, 34], sizes = [8, 478], strides = [1, 1]} : vector<8x512xf32> to vector<8x478xf32>
    %cst_29 = arith.constant dense<0.000000e+00> : vector<32x478xf32>
    %44 = tpu.matmul %42, %43, %cst_29 {dimension_numbers = #tpu.dot_dimension_numbers<[1], [0], [0], [1], [0, 0, 1, 1], [], []>} : vector<32x8xf32>, vector<8x478xf32>, vector<32x478xf32> -> vector<32x478xf32>
    %45 = arith.addf %40, %44 : vector<32x478xf32>
    %46 = vector.broadcast %1 : vector<32x1xf32> to vector<32x478xf32>
    %47 = arith.addf %45, %46 : vector<32x478xf32>
    %cst_30 = arith.constant 2.000000e-01 : f32
    %48 = vector.broadcast %cst_30 : f32 to vector<32x478xf32>
    %49 = arith.mulf %48, %47 : vector<32x478xf32>
    %50 = arith.maximumf %47, %49 : vector<32x478xf32>
    %c0_31 = arith.constant 0 : index
    %c0_32 = arith.constant 0 : index
    %51 = vector.load %arg4[%c0_31, %c0_32] : memref<32x1xf32, #tpu.memory_space<vmem>>, vector<32x1xf32>
    %c0_33 = arith.constant 0 : index
    %c0_34 = arith.constant 0 : index
    %c0_35 = arith.constant 0 : index
    %52 = vector.load %arg3[%c0_33, %c0_34, %c0_35] : memref<9x32x32xf32, #tpu.memory_space<vmem>>, vector<1x32x32xf32>
    %53 = vector.shape_cast %52 : vector<1x32x32xf32> to vector<32x32xf32>
    %54 = vector.extract_strided_slice %50 {offsets = [0, 0], sizes = [32, 444], strides = [1, 1]} : vector<32x478xf32> to vector<32x444xf32>
    %cst_36 = arith.constant dense<0.000000e+00> : vector<32x444xf32>
    %55 = tpu.matmul %53, %54, %cst_36 {dimension_numbers = #tpu.dot_dimension_numbers<[1], [0], [0], [1], [0, 0, 1, 1], [], []>} : vector<32x32xf32>, vector<32x444xf32>, vector<32x444xf32> -> vector<32x444xf32>
    %c1_37 = arith.constant 1 : index
    %c0_38 = arith.constant 0 : index
    %c0_39 = arith.constant 0 : index
    %56 = vector.load %arg3[%c1_37, %c0_38, %c0_39] : memref<9x32x32xf32, #tpu.memory_space<vmem>>, vector<1x32x32xf32>
    %57 = vector.shape_cast %56 : vector<1x32x32xf32> to vector<32x32xf32>
    %58 = vector.extract_strided_slice %50 {offsets = [0, 1], sizes = [32, 444], strides = [1, 1]} : vector<32x478xf32> to vector<32x444xf32>
    %cst_40 = arith.constant dense<0.000000e+00> : vector<32x444xf32>
    %59 = tpu.matmul %57, %58, %cst_40 {dimension_numbers = #tpu.dot_dimension_numbers<[1], [0], [0], [1], [0, 0, 1, 1], [], []>} : vector<32x32xf32>, vector<32x444xf32>, vector<32x444xf32> -> vector<32x444xf32>
    %60 = arith.addf %55, %59 : vector<32x444xf32>
    %c2_41 = arith.constant 2 : index
    %c0_42 = arith.constant 0 : index
    %c0_43 = arith.constant 0 : index
    %61 = vector.load %arg3[%c2_41, %c0_42, %c0_43] : memref<9x32x32xf32, #tpu.memory_space<vmem>>, vector<1x32x32xf32>
    %62 = vector.shape_cast %61 : vector<1x32x32xf32> to vector<32x32xf32>
    %63 = vector.extract_strided_slice %50 {offsets = [0, 2], sizes = [32, 444], strides = [1, 1]} : vector<32x478xf32> to vector<32x444xf32>
    %cst_44 = arith.constant dense<0.000000e+00> : vector<32x444xf32>
    %64 = tpu.matmul %62, %63, %cst_44 {dimension_numbers = #tpu.dot_dimension_numbers<[1], [0], [0], [1], [0, 0, 1, 1], [], []>} : vector<32x32xf32>, vector<32x444xf32>, vector<32x444xf32> -> vector<32x444xf32>
    %65 = arith.addf %60, %64 : vector<32x444xf32>
    %c3_45 = arith.constant 3 : index
    %c0_46 = arith.constant 0 : index
    %c0_47 = arith.constant 0 : index
    %66 = vector.load %arg3[%c3_45, %c0_46, %c0_47] : memref<9x32x32xf32, #tpu.memory_space<vmem>>, vector<1x32x32xf32>
    %67 = vector.shape_cast %66 : vector<1x32x32xf32> to vector<32x32xf32>
    %68 = vector.extract_strided_slice %50 {offsets = [0, 16], sizes = [32, 444], strides = [1, 1]} : vector<32x478xf32> to vector<32x444xf32>
    %cst_48 = arith.constant dense<0.000000e+00> : vector<32x444xf32>
    %69 = tpu.matmul %67, %68, %cst_48 {dimension_numbers = #tpu.dot_dimension_numbers<[1], [0], [0], [1], [0, 0, 1, 1], [], []>} : vector<32x32xf32>, vector<32x444xf32>, vector<32x444xf32> -> vector<32x444xf32>
    %70 = arith.addf %65, %69 : vector<32x444xf32>
    %c4_49 = arith.constant 4 : index
    %c0_50 = arith.constant 0 : index
    %c0_51 = arith.constant 0 : index
    %71 = vector.load %arg3[%c4_49, %c0_50, %c0_51] : memref<9x32x32xf32, #tpu.memory_space<vmem>>, vector<1x32x32xf32>
    %72 = vector.shape_cast %71 : vector<1x32x32xf32> to vector<32x32xf32>
    %73 = vector.extract_strided_slice %50 {offsets = [0, 17], sizes = [32, 444], strides = [1, 1]} : vector<32x478xf32> to vector<32x444xf32>
    %cst_52 = arith.constant dense<0.000000e+00> : vector<32x444xf32>
    %74 = tpu.matmul %72, %73, %cst_52 {dimension_numbers = #tpu.dot_dimension_numbers<[1], [0], [0], [1], [0, 0, 1, 1], [], []>} : vector<32x32xf32>, vector<32x444xf32>, vector<32x444xf32> -> vector<32x444xf32>
    %75 = arith.addf %70, %74 : vector<32x444xf32>
    %c5_53 = arith.constant 5 : index
    %c0_54 = arith.constant 0 : index
    %c0_55 = arith.constant 0 : index
    %76 = vector.load %arg3[%c5_53, %c0_54, %c0_55] : memref<9x32x32xf32, #tpu.memory_space<vmem>>, vector<1x32x32xf32>
    %77 = vector.shape_cast %76 : vector<1x32x32xf32> to vector<32x32xf32>
    %78 = vector.extract_strided_slice %50 {offsets = [0, 18], sizes = [32, 444], strides = [1, 1]} : vector<32x478xf32> to vector<32x444xf32>
    %cst_56 = arith.constant dense<0.000000e+00> : vector<32x444xf32>
    %79 = tpu.matmul %77, %78, %cst_56 {dimension_numbers = #tpu.dot_dimension_numbers<[1], [0], [0], [1], [0, 0, 1, 1], [], []>} : vector<32x32xf32>, vector<32x444xf32>, vector<32x444xf32> -> vector<32x444xf32>
    %80 = arith.addf %75, %79 : vector<32x444xf32>
    %c6_57 = arith.constant 6 : index
    %c0_58 = arith.constant 0 : index
    %c0_59 = arith.constant 0 : index
    %81 = vector.load %arg3[%c6_57, %c0_58, %c0_59] : memref<9x32x32xf32, #tpu.memory_space<vmem>>, vector<1x32x32xf32>
    %82 = vector.shape_cast %81 : vector<1x32x32xf32> to vector<32x32xf32>
    %83 = vector.extract_strided_slice %50 {offsets = [0, 32], sizes = [32, 444], strides = [1, 1]} : vector<32x478xf32> to vector<32x444xf32>
    %cst_60 = arith.constant dense<0.000000e+00> : vector<32x444xf32>
    %84 = tpu.matmul %82, %83, %cst_60 {dimension_numbers = #tpu.dot_dimension_numbers<[1], [0], [0], [1], [0, 0, 1, 1], [], []>} : vector<32x32xf32>, vector<32x444xf32>, vector<32x444xf32> -> vector<32x444xf32>
    %85 = arith.addf %80, %84 : vector<32x444xf32>
    %c7_61 = arith.constant 7 : index
    %c0_62 = arith.constant 0 : index
    %c0_63 = arith.constant 0 : index
    %86 = vector.load %arg3[%c7_61, %c0_62, %c0_63] : memref<9x32x32xf32, #tpu.memory_space<vmem>>, vector<1x32x32xf32>
    %87 = vector.shape_cast %86 : vector<1x32x32xf32> to vector<32x32xf32>
    %88 = vector.extract_strided_slice %50 {offsets = [0, 33], sizes = [32, 444], strides = [1, 1]} : vector<32x478xf32> to vector<32x444xf32>
    %cst_64 = arith.constant dense<0.000000e+00> : vector<32x444xf32>
    %89 = tpu.matmul %87, %88, %cst_64 {dimension_numbers = #tpu.dot_dimension_numbers<[1], [0], [0], [1], [0, 0, 1, 1], [], []>} : vector<32x32xf32>, vector<32x444xf32>, vector<32x444xf32> -> vector<32x444xf32>
    %90 = arith.addf %85, %89 : vector<32x444xf32>
    %c8_65 = arith.constant 8 : index
    %c0_66 = arith.constant 0 : index
    %c0_67 = arith.constant 0 : index
    %91 = vector.load %arg3[%c8_65, %c0_66, %c0_67] : memref<9x32x32xf32, #tpu.memory_space<vmem>>, vector<1x32x32xf32>
    %92 = vector.shape_cast %91 : vector<1x32x32xf32> to vector<32x32xf32>
    %93 = vector.extract_strided_slice %50 {offsets = [0, 34], sizes = [32, 444], strides = [1, 1]} : vector<32x478xf32> to vector<32x444xf32>
    %cst_68 = arith.constant dense<0.000000e+00> : vector<32x444xf32>
    %94 = tpu.matmul %92, %93, %cst_68 {dimension_numbers = #tpu.dot_dimension_numbers<[1], [0], [0], [1], [0, 0, 1, 1], [], []>} : vector<32x32xf32>, vector<32x444xf32>, vector<32x444xf32> -> vector<32x444xf32>
    %95 = arith.addf %90, %94 : vector<32x444xf32>
    %96 = vector.broadcast %51 : vector<32x1xf32> to vector<32x444xf32>
    %97 = arith.addf %95, %96 : vector<32x444xf32>
    %cst_69 = arith.constant 2.000000e-01 : f32
    %98 = vector.broadcast %cst_69 : f32 to vector<32x444xf32>
    %99 = arith.mulf %98, %97 : vector<32x444xf32>
    %100 = arith.maximumf %97, %99 : vector<32x444xf32>
    %c0_70 = arith.constant 0 : index
    %c0_71 = arith.constant 0 : index
    %101 = vector.load %arg6[%c0_70, %c0_71] : memref<32x1xf32, #tpu.memory_space<vmem>>, vector<32x1xf32>
    %c0_72 = arith.constant 0 : index
    %c0_73 = arith.constant 0 : index
    %c0_74 = arith.constant 0 : index
    %102 = vector.load %arg5[%c0_72, %c0_73, %c0_74] : memref<9x32x32xf32, #tpu.memory_space<vmem>>, vector<1x32x32xf32>
    %103 = vector.shape_cast %102 : vector<1x32x32xf32> to vector<32x32xf32>
    %104 = vector.extract_strided_slice %100 {offsets = [0, 0], sizes = [32, 410], strides = [1, 1]} : vector<32x444xf32> to vector<32x410xf32>
    %cst_75 = arith.constant dense<0.000000e+00> : vector<32x410xf32>
    %105 = tpu.matmul %103, %104, %cst_75 {dimension_numbers = #tpu.dot_dimension_numbers<[1], [0], [0], [1], [0, 0, 1, 1], [], []>} : vector<32x32xf32>, vector<32x410xf32>, vector<32x410xf32> -> vector<32x410xf32>
    %c1_76 = arith.constant 1 : index
    %c0_77 = arith.constant 0 : index
    %c0_78 = arith.constant 0 : index
    %106 = vector.load %arg5[%c1_76, %c0_77, %c0_78] : memref<9x32x32xf32, #tpu.memory_space<vmem>>, vector<1x32x32xf32>
    %107 = vector.shape_cast %106 : vector<1x32x32xf32> to vector<32x32xf32>
    %108 = vector.extract_strided_slice %100 {offsets = [0, 1], sizes = [32, 410], strides = [1, 1]} : vector<32x444xf32> to vector<32x410xf32>
    %cst_79 = arith.constant dense<0.000000e+00> : vector<32x410xf32>
    %109 = tpu.matmul %107, %108, %cst_79 {dimension_numbers = #tpu.dot_dimension_numbers<[1], [0], [0], [1], [0, 0, 1, 1], [], []>} : vector<32x32xf32>, vector<32x410xf32>, vector<32x410xf32> -> vector<32x410xf32>
    %110 = arith.addf %105, %109 : vector<32x410xf32>
    %c2_80 = arith.constant 2 : index
    %c0_81 = arith.constant 0 : index
    %c0_82 = arith.constant 0 : index
    %111 = vector.load %arg5[%c2_80, %c0_81, %c0_82] : memref<9x32x32xf32, #tpu.memory_space<vmem>>, vector<1x32x32xf32>
    %112 = vector.shape_cast %111 : vector<1x32x32xf32> to vector<32x32xf32>
    %113 = vector.extract_strided_slice %100 {offsets = [0, 2], sizes = [32, 410], strides = [1, 1]} : vector<32x444xf32> to vector<32x410xf32>
    %cst_83 = arith.constant dense<0.000000e+00> : vector<32x410xf32>
    %114 = tpu.matmul %112, %113, %cst_83 {dimension_numbers = #tpu.dot_dimension_numbers<[1], [0], [0], [1], [0, 0, 1, 1], [], []>} : vector<32x32xf32>, vector<32x410xf32>, vector<32x410xf32> -> vector<32x410xf32>
    %115 = arith.addf %110, %114 : vector<32x410xf32>
    %c3_84 = arith.constant 3 : index
    %c0_85 = arith.constant 0 : index
    %c0_86 = arith.constant 0 : index
    %116 = vector.load %arg5[%c3_84, %c0_85, %c0_86] : memref<9x32x32xf32, #tpu.memory_space<vmem>>, vector<1x32x32xf32>
    %117 = vector.shape_cast %116 : vector<1x32x32xf32> to vector<32x32xf32>
    %118 = vector.extract_strided_slice %100 {offsets = [0, 16], sizes = [32, 410], strides = [1, 1]} : vector<32x444xf32> to vector<32x410xf32>
    %cst_87 = arith.constant dense<0.000000e+00> : vector<32x410xf32>
    %119 = tpu.matmul %117, %118, %cst_87 {dimension_numbers = #tpu.dot_dimension_numbers<[1], [0], [0], [1], [0, 0, 1, 1], [], []>} : vector<32x32xf32>, vector<32x410xf32>, vector<32x410xf32> -> vector<32x410xf32>
    %120 = arith.addf %115, %119 : vector<32x410xf32>
    %c4_88 = arith.constant 4 : index
    %c0_89 = arith.constant 0 : index
    %c0_90 = arith.constant 0 : index
    %121 = vector.load %arg5[%c4_88, %c0_89, %c0_90] : memref<9x32x32xf32, #tpu.memory_space<vmem>>, vector<1x32x32xf32>
    %122 = vector.shape_cast %121 : vector<1x32x32xf32> to vector<32x32xf32>
    %123 = vector.extract_strided_slice %100 {offsets = [0, 17], sizes = [32, 410], strides = [1, 1]} : vector<32x444xf32> to vector<32x410xf32>
    %cst_91 = arith.constant dense<0.000000e+00> : vector<32x410xf32>
    %124 = tpu.matmul %122, %123, %cst_91 {dimension_numbers = #tpu.dot_dimension_numbers<[1], [0], [0], [1], [0, 0, 1, 1], [], []>} : vector<32x32xf32>, vector<32x410xf32>, vector<32x410xf32> -> vector<32x410xf32>
    %125 = arith.addf %120, %124 : vector<32x410xf32>
    %c5_92 = arith.constant 5 : index
    %c0_93 = arith.constant 0 : index
    %c0_94 = arith.constant 0 : index
    %126 = vector.load %arg5[%c5_92, %c0_93, %c0_94] : memref<9x32x32xf32, #tpu.memory_space<vmem>>, vector<1x32x32xf32>
    %127 = vector.shape_cast %126 : vector<1x32x32xf32> to vector<32x32xf32>
    %128 = vector.extract_strided_slice %100 {offsets = [0, 18], sizes = [32, 410], strides = [1, 1]} : vector<32x444xf32> to vector<32x410xf32>
    %cst_95 = arith.constant dense<0.000000e+00> : vector<32x410xf32>
    %129 = tpu.matmul %127, %128, %cst_95 {dimension_numbers = #tpu.dot_dimension_numbers<[1], [0], [0], [1], [0, 0, 1, 1], [], []>} : vector<32x32xf32>, vector<32x410xf32>, vector<32x410xf32> -> vector<32x410xf32>
    %130 = arith.addf %125, %129 : vector<32x410xf32>
    %c6_96 = arith.constant 6 : index
    %c0_97 = arith.constant 0 : index
    %c0_98 = arith.constant 0 : index
    %131 = vector.load %arg5[%c6_96, %c0_97, %c0_98] : memref<9x32x32xf32, #tpu.memory_space<vmem>>, vector<1x32x32xf32>
    %132 = vector.shape_cast %131 : vector<1x32x32xf32> to vector<32x32xf32>
    %133 = vector.extract_strided_slice %100 {offsets = [0, 32], sizes = [32, 410], strides = [1, 1]} : vector<32x444xf32> to vector<32x410xf32>
    %cst_99 = arith.constant dense<0.000000e+00> : vector<32x410xf32>
    %134 = tpu.matmul %132, %133, %cst_99 {dimension_numbers = #tpu.dot_dimension_numbers<[1], [0], [0], [1], [0, 0, 1, 1], [], []>} : vector<32x32xf32>, vector<32x410xf32>, vector<32x410xf32> -> vector<32x410xf32>
    %135 = arith.addf %130, %134 : vector<32x410xf32>
    %c7_100 = arith.constant 7 : index
    %c0_101 = arith.constant 0 : index
    %c0_102 = arith.constant 0 : index
    %136 = vector.load %arg5[%c7_100, %c0_101, %c0_102] : memref<9x32x32xf32, #tpu.memory_space<vmem>>, vector<1x32x32xf32>
    %137 = vector.shape_cast %136 : vector<1x32x32xf32> to vector<32x32xf32>
    %138 = vector.extract_strided_slice %100 {offsets = [0, 33], sizes = [32, 410], strides = [1, 1]} : vector<32x444xf32> to vector<32x410xf32>
    %cst_103 = arith.constant dense<0.000000e+00> : vector<32x410xf32>
    %139 = tpu.matmul %137, %138, %cst_103 {dimension_numbers = #tpu.dot_dimension_numbers<[1], [0], [0], [1], [0, 0, 1, 1], [], []>} : vector<32x32xf32>, vector<32x410xf32>, vector<32x410xf32> -> vector<32x410xf32>
    %140 = arith.addf %135, %139 : vector<32x410xf32>
    %c8_104 = arith.constant 8 : index
    %c0_105 = arith.constant 0 : index
    %c0_106 = arith.constant 0 : index
    %141 = vector.load %arg5[%c8_104, %c0_105, %c0_106] : memref<9x32x32xf32, #tpu.memory_space<vmem>>, vector<1x32x32xf32>
    %142 = vector.shape_cast %141 : vector<1x32x32xf32> to vector<32x32xf32>
    %143 = vector.extract_strided_slice %100 {offsets = [0, 34], sizes = [32, 410], strides = [1, 1]} : vector<32x444xf32> to vector<32x410xf32>
    %cst_107 = arith.constant dense<0.000000e+00> : vector<32x410xf32>
    %144 = tpu.matmul %142, %143, %cst_107 {dimension_numbers = #tpu.dot_dimension_numbers<[1], [0], [0], [1], [0, 0, 1, 1], [], []>} : vector<32x32xf32>, vector<32x410xf32>, vector<32x410xf32> -> vector<32x410xf32>
    %145 = arith.addf %140, %144 : vector<32x410xf32>
    %146 = vector.broadcast %101 : vector<32x1xf32> to vector<32x410xf32>
    %147 = arith.addf %145, %146 : vector<32x410xf32>
    %cst_108 = arith.constant 2.000000e-01 : f32
    %148 = vector.broadcast %cst_108 : f32 to vector<32x410xf32>
    %149 = arith.mulf %148, %147 : vector<32x410xf32>
    %150 = arith.maximumf %147, %149 : vector<32x410xf32>
    %c0_109 = arith.constant 0 : index
    %c0_110 = arith.constant 0 : index
    %151 = vector.load %arg8[%c0_109, %c0_110] : memref<4x1xf32, #tpu.memory_space<vmem>>, vector<4x1xf32>
    %c0_111 = arith.constant 0 : index
    %c0_112 = arith.constant 0 : index
    %c0_113 = arith.constant 0 : index
    %152 = vector.load %arg7[%c0_111, %c0_112, %c0_113] : memref<9x4x32xf32, #tpu.memory_space<vmem>>, vector<1x4x32xf32>
    %153 = vector.shape_cast %152 : vector<1x4x32xf32> to vector<4x32xf32>
    %154 = vector.extract_strided_slice %150 {offsets = [0, 0], sizes = [32, 376], strides = [1, 1]} : vector<32x410xf32> to vector<32x376xf32>
    %cst_114 = arith.constant dense<0.000000e+00> : vector<4x376xf32>
    %155 = tpu.matmul %153, %154, %cst_114 {dimension_numbers = #tpu.dot_dimension_numbers<[1], [0], [0], [1], [0, 0, 1, 1], [], []>} : vector<4x32xf32>, vector<32x376xf32>, vector<4x376xf32> -> vector<4x376xf32>
    %c1_115 = arith.constant 1 : index
    %c0_116 = arith.constant 0 : index
    %c0_117 = arith.constant 0 : index
    %156 = vector.load %arg7[%c1_115, %c0_116, %c0_117] : memref<9x4x32xf32, #tpu.memory_space<vmem>>, vector<1x4x32xf32>
    %157 = vector.shape_cast %156 : vector<1x4x32xf32> to vector<4x32xf32>
    %158 = vector.extract_strided_slice %150 {offsets = [0, 1], sizes = [32, 376], strides = [1, 1]} : vector<32x410xf32> to vector<32x376xf32>
    %cst_118 = arith.constant dense<0.000000e+00> : vector<4x376xf32>
    %159 = tpu.matmul %157, %158, %cst_118 {dimension_numbers = #tpu.dot_dimension_numbers<[1], [0], [0], [1], [0, 0, 1, 1], [], []>} : vector<4x32xf32>, vector<32x376xf32>, vector<4x376xf32> -> vector<4x376xf32>
    %160 = arith.addf %155, %159 : vector<4x376xf32>
    %c2_119 = arith.constant 2 : index
    %c0_120 = arith.constant 0 : index
    %c0_121 = arith.constant 0 : index
    %161 = vector.load %arg7[%c2_119, %c0_120, %c0_121] : memref<9x4x32xf32, #tpu.memory_space<vmem>>, vector<1x4x32xf32>
    %162 = vector.shape_cast %161 : vector<1x4x32xf32> to vector<4x32xf32>
    %163 = vector.extract_strided_slice %150 {offsets = [0, 2], sizes = [32, 376], strides = [1, 1]} : vector<32x410xf32> to vector<32x376xf32>
    %cst_122 = arith.constant dense<0.000000e+00> : vector<4x376xf32>
    %164 = tpu.matmul %162, %163, %cst_122 {dimension_numbers = #tpu.dot_dimension_numbers<[1], [0], [0], [1], [0, 0, 1, 1], [], []>} : vector<4x32xf32>, vector<32x376xf32>, vector<4x376xf32> -> vector<4x376xf32>
    %165 = arith.addf %160, %164 : vector<4x376xf32>
    %c3_123 = arith.constant 3 : index
    %c0_124 = arith.constant 0 : index
    %c0_125 = arith.constant 0 : index
    %166 = vector.load %arg7[%c3_123, %c0_124, %c0_125] : memref<9x4x32xf32, #tpu.memory_space<vmem>>, vector<1x4x32xf32>
    %167 = vector.shape_cast %166 : vector<1x4x32xf32> to vector<4x32xf32>
    %168 = vector.extract_strided_slice %150 {offsets = [0, 16], sizes = [32, 376], strides = [1, 1]} : vector<32x410xf32> to vector<32x376xf32>
    %cst_126 = arith.constant dense<0.000000e+00> : vector<4x376xf32>
    %169 = tpu.matmul %167, %168, %cst_126 {dimension_numbers = #tpu.dot_dimension_numbers<[1], [0], [0], [1], [0, 0, 1, 1], [], []>} : vector<4x32xf32>, vector<32x376xf32>, vector<4x376xf32> -> vector<4x376xf32>
    %170 = arith.addf %165, %169 : vector<4x376xf32>
    %c4_127 = arith.constant 4 : index
    %c0_128 = arith.constant 0 : index
    %c0_129 = arith.constant 0 : index
    %171 = vector.load %arg7[%c4_127, %c0_128, %c0_129] : memref<9x4x32xf32, #tpu.memory_space<vmem>>, vector<1x4x32xf32>
    %172 = vector.shape_cast %171 : vector<1x4x32xf32> to vector<4x32xf32>
    %173 = vector.extract_strided_slice %150 {offsets = [0, 17], sizes = [32, 376], strides = [1, 1]} : vector<32x410xf32> to vector<32x376xf32>
    %cst_130 = arith.constant dense<0.000000e+00> : vector<4x376xf32>
    %174 = tpu.matmul %172, %173, %cst_130 {dimension_numbers = #tpu.dot_dimension_numbers<[1], [0], [0], [1], [0, 0, 1, 1], [], []>} : vector<4x32xf32>, vector<32x376xf32>, vector<4x376xf32> -> vector<4x376xf32>
    %175 = arith.addf %170, %174 : vector<4x376xf32>
    %c5_131 = arith.constant 5 : index
    %c0_132 = arith.constant 0 : index
    %c0_133 = arith.constant 0 : index
    %176 = vector.load %arg7[%c5_131, %c0_132, %c0_133] : memref<9x4x32xf32, #tpu.memory_space<vmem>>, vector<1x4x32xf32>
    %177 = vector.shape_cast %176 : vector<1x4x32xf32> to vector<4x32xf32>
    %178 = vector.extract_strided_slice %150 {offsets = [0, 18], sizes = [32, 376], strides = [1, 1]} : vector<32x410xf32> to vector<32x376xf32>
    %cst_134 = arith.constant dense<0.000000e+00> : vector<4x376xf32>
    %179 = tpu.matmul %177, %178, %cst_134 {dimension_numbers = #tpu.dot_dimension_numbers<[1], [0], [0], [1], [0, 0, 1, 1], [], []>} : vector<4x32xf32>, vector<32x376xf32>, vector<4x376xf32> -> vector<4x376xf32>
    %180 = arith.addf %175, %179 : vector<4x376xf32>
    %c6_135 = arith.constant 6 : index
    %c0_136 = arith.constant 0 : index
    %c0_137 = arith.constant 0 : index
    %181 = vector.load %arg7[%c6_135, %c0_136, %c0_137] : memref<9x4x32xf32, #tpu.memory_space<vmem>>, vector<1x4x32xf32>
    %182 = vector.shape_cast %181 : vector<1x4x32xf32> to vector<4x32xf32>
    %183 = vector.extract_strided_slice %150 {offsets = [0, 32], sizes = [32, 376], strides = [1, 1]} : vector<32x410xf32> to vector<32x376xf32>
    %cst_138 = arith.constant dense<0.000000e+00> : vector<4x376xf32>
    %184 = tpu.matmul %182, %183, %cst_138 {dimension_numbers = #tpu.dot_dimension_numbers<[1], [0], [0], [1], [0, 0, 1, 1], [], []>} : vector<4x32xf32>, vector<32x376xf32>, vector<4x376xf32> -> vector<4x376xf32>
    %185 = arith.addf %180, %184 : vector<4x376xf32>
    %c7_139 = arith.constant 7 : index
    %c0_140 = arith.constant 0 : index
    %c0_141 = arith.constant 0 : index
    %186 = vector.load %arg7[%c7_139, %c0_140, %c0_141] : memref<9x4x32xf32, #tpu.memory_space<vmem>>, vector<1x4x32xf32>
    %187 = vector.shape_cast %186 : vector<1x4x32xf32> to vector<4x32xf32>
    %188 = vector.extract_strided_slice %150 {offsets = [0, 33], sizes = [32, 376], strides = [1, 1]} : vector<32x410xf32> to vector<32x376xf32>
    %cst_142 = arith.constant dense<0.000000e+00> : vector<4x376xf32>
    %189 = tpu.matmul %187, %188, %cst_142 {dimension_numbers = #tpu.dot_dimension_numbers<[1], [0], [0], [1], [0, 0, 1, 1], [], []>} : vector<4x32xf32>, vector<32x376xf32>, vector<4x376xf32> -> vector<4x376xf32>
    %190 = arith.addf %185, %189 : vector<4x376xf32>
    %c8_143 = arith.constant 8 : index
    %c0_144 = arith.constant 0 : index
    %c0_145 = arith.constant 0 : index
    %191 = vector.load %arg7[%c8_143, %c0_144, %c0_145] : memref<9x4x32xf32, #tpu.memory_space<vmem>>, vector<1x4x32xf32>
    %192 = vector.shape_cast %191 : vector<1x4x32xf32> to vector<4x32xf32>
    %193 = vector.extract_strided_slice %150 {offsets = [0, 34], sizes = [32, 376], strides = [1, 1]} : vector<32x410xf32> to vector<32x376xf32>
    %cst_146 = arith.constant dense<0.000000e+00> : vector<4x376xf32>
    %194 = tpu.matmul %192, %193, %cst_146 {dimension_numbers = #tpu.dot_dimension_numbers<[1], [0], [0], [1], [0, 0, 1, 1], [], []>} : vector<4x32xf32>, vector<32x376xf32>, vector<4x376xf32> -> vector<4x376xf32>
    %195 = arith.addf %190, %194 : vector<4x376xf32>
    %196 = vector.broadcast %151 : vector<4x1xf32> to vector<4x376xf32>
    %197 = arith.addf %195, %196 : vector<4x376xf32>
    %cst_147 = arith.constant dense<0xFF800000> : vector<376xf32>
    %198 = vector.multi_reduction <maximumf>, %197, %cst_147 [0] : vector<4x376xf32> to vector<376xf32>
    %199 = vector.shape_cast %198 : vector<376xf32> to vector<1x376xf32>
    %200 = vector.broadcast %199 : vector<1x376xf32> to vector<4x376xf32>
    %201 = arith.subf %197, %200 : vector<4x376xf32>
    %202 = math.exp %201 : vector<4x376xf32>
    %cst_148 = arith.constant dense<0.000000e+00> : vector<376xf32>
    %203 = vector.multi_reduction <add>, %202, %cst_148 [0] : vector<4x376xf32> to vector<376xf32>
    %204 = vector.shape_cast %203 : vector<376xf32> to vector<1x376xf32>
    %205 = tpu.reciprocal %204 {approx = true} : vector<1x376xf32> -> vector<1x376xf32>
    %206 = vector.broadcast %205 : vector<1x376xf32> to vector<4x376xf32>
    %207 = arith.mulf %202, %206 : vector<4x376xf32>
    %c0_149 = arith.constant 0 : index
    %c0_150 = arith.constant 0 : index
    %208 = vector.load %arg9[%c0_149, %c0_150] : memref<4x376xf32, #tpu.memory_space<vmem>>, vector<4x376xf32>
    tpu.vector_store %arg9[%c0_149, %c0_150], %207 {strides = array<i32>} : memref<4x376xf32, #tpu.memory_space<vmem>>, vector<4x376xf32>,
    return
  }
}

</mosaic_0001>

<bundles_post_ra>
// kernel: tpu_custom_call.1
= control target key start
LH: loop header
LB: loop body
LE: loop exit
PB: predicated region body
PF: predicated region fallthrough
CT: control target
= control target key end

     0   :  { %14 = vsyncpa [#allocation3], 0  ;;  %s13477_s0 = inlined_call_operand.vmem [shape: f32[8,512], index: 0, kind: input, shape index: {}]   ;;  %s13478_s1 = inlined_call_operand.vmem [shape: f32[9,32,8], index: 1, kind: input, shape index: {}]   ;;  %s13479_s2 = inlined_call_operand.vmem [shape: f32[32,1], index: 2, kind: input, shape index: {}]   ;;  %s13480_s3 = inlined_call_operand.vmem [shape: f32[9,32,32], index: 3, kind: input, shape index: {}]   ;;  %s13481_s4 = inlined_call_operand.vmem [shape: f32[32,1], index: 4, kind: input, shape index: {}]   ;;  %s13482_s5 = inlined_call_operand.hbm [shape: f32[9,32,32], index: 5, kind: input, shape index: {}]   ;;  %s13483_s6 = inlined_call_operand.vmem [shape: f32[32,1], index: 6, kind: input, shape index: {}]   ;;  %s13484_s7 = inlined_call_operand.vmem [shape: f32[9,4,32], index: 7, kind: input, shape index: {}]   ;;  %s13485_s8 = inlined_call_operand.vmem [shape: f32[4,1], index: 8, kind: input, shape index: {}]   ;;  %s13486_s9 = inlined_call_operand.hbm [shape: f32[4,376], index: 9, kind: output, shape index: {}]  }
   0x1   :  { %15 = vsyncpa [#allocation4], 0  ;;  %s11136_s30 = smov [#allocation2]   ;;  %s11088_s13 = scalar_lea.hbm %s13482_s5, 4608 }
   0x2   :  { %s31_s10 = sshll.u32 %s11136_s30, 4  ;;  %p11089_p0 = scmp.ne.s32.totalorder %s13482_s5, %s11088_s13  ;;  %s32_s10 = int_to_ptr.vmem [resolvable:$true] %s31_s10 }
   0x3   :  { %p11092_p1 = scmp.lt.u32.totalorder %s11088_s13, %s13482_s5 }
   0x5   :  { %p11094_p2 = pnand %p11092_p1, %p11089_p0 }
   0x7   :  { %11097 = shalt.err (!%p11094_p2)
}
   0x8   :  { %s11098_s18 = scalar_lea.vmem %s32_s10, 4608  ;;  %p11103_p4 = scmp.lt.s32.totalorder %s32_s10, %s32_s10 }
   0x9   :  { %p11099_p3 = scmp.ne.s32.totalorder %s32_s10, %s11098_s18  ;;  %p11104_p5 = scmp.lt.s32.totalorder %s11098_s18, %s11098_s18 }
   0xb   :  { %p11105_p6 = por %p11104_p5, %p11103_p4 }
   0xd   :  { %p11106_p7 = pnand %p11105_p6, %p11099_p3 }
   0xf   :  { %11109 = shalt.err (!%p11106_p7)
}
  0x10   :  { %s11137_s19 = smov 128   ;;  %s11138_s20 = smov 8  }
  0x11   :  { %37 = dma.hbm_to_vmem [thread:$0]  %s13482_s5, 4608, %s32_s10, [#allocation3], %s11137_s19, %s11137_s19, %s11138_s20  }
  0x12   :  { %11132 = dma.done.wait [#allocation3], 4608  }
  0x13   :  { %11133 = vsyncadd [#allocation3], 4294962688  ;;  %v11139_v0 = vmov 0.0   ;;  %v11219_v1 = vld [vmem:[%s13477_s0 + $0x8] sm:$0xff]  ;;  %v11224_v2 = vld [vmem:[%s13477_s0] sm:$0xff]  ;;  %s11140_s27 = smov 127  }
  0x14   :  { %250 = vmatprep.mubr.f32.mxu1 %v11139_v0  ;;  %161 = vmatprep.mubr.f32.mxu0 %v11139_v0  ;;  %v11233_v3 = vld [vmem:[%s13477_s0 + $0x10] sm:$0xff]  ;;  %v11238_v4 = vld [vmem:[%s13477_s0 + $0x18] sm:$0xff]  ;;  %s11141_s10 = smov 126   ;;  %s11142_s0 = smov 112   ;;  %vm76_vm0 = vcmask 1039360   ;;  %v8854_v9 = vld [vmem:[%s13478_s1 + $0x20] sm:$0xff] }
  0x15   :  { %70 = vrot.lane.b32.xlu0 %v11219_v1, %s11140_s27  ;;  %68 = vrot.lane.b32.xlu1 %v11224_v2, %s11140_s27  ;;  %s11143_s11 = smov 111   ;;  %s11144_s12 = smov 110   ;;  %vm84_vm1 = vcmask 64512   ;;  %vm478_vm2 = vcmask 1031168   ;;  %v8855_v13 = vld [vmem:[%s13478_s1 + $0x28] sm:$0xff]  ;;  %v8856_v17 = vld [vmem:[%s13478_s1 + $0x30] sm:$0xff] }
  0x16   :  { %s11145_s13 = smov 96   ;;  %s11146_s14 = smov 95   ;;  %v8857_v19 = vld [vmem:[%s13478_s1 + $0x38] sm:$0xff]  ;;  %v55_v22 = vld [vmem:[%s13478_s1] sm:$0xff]  ;;  %vm705_vm3 = vcmask 916480   ;;  %v52_v24 = vld [vmem:[%s13479_s2 + $0x8] sm:$0xff] }
  0x17   :  { %s11147_s15 = smov 94   ;;  %v51_v23 = vld [vmem:[%s13479_s2] sm:$0xff]  ;;  %v11148_v26 = vmov 0   ;;  %v56_v30 = vld [vmem:[%s13478_s1 + $0x8] sm:$0xff]  ;;  %v54_v32 = vld [vmem:[%s13479_s2 + $0x18] sm:$0xff]  ;;  %vm932_vm4 = vcmask 908288  }
  0x18   :  { %10134 = vset.pattern.permute.xlu0 %v11148_v26  ;;  %10135 = vset.pattern.permute.xlu1 %v11148_v26  ;;  %v53_v33 = vld [vmem:[%s13479_s2 + $0x10] sm:$0xff]  ;;  %v58_v35 = vld [vmem:[%s13478_s1 + $0x18] sm:$0xff]  ;;  %v8874_v38 = vld [vmem:[%s13478_s1 + $0x40] sm:$0xff]  ;;  %vm1159_vm5 = vcmask 900096   ;;  %vm1386_vm6 = vcmask 785408   ;;  %vm1613_vm7 = vcmask 777216  }
  0x19   :  { %72 = vrot.lane.b32.xlu0 %v11233_v3, %s11140_s27  ;;  %74 = vrot.lane.b32.xlu1 %v11238_v4, %s11140_s27  ;;  %v57_v34 = vld [vmem:[%s13478_s1 + $0x10] sm:$0xff]  ;;  %v8875_v43 = vld [vmem:[%s13478_s1 + $0x48] sm:$0xff]  ;;  %vm1840_vm8 = vcmask 769024   ;;  %vm2211_vm9 = vcmask 261120   ;;  %vm11150_vm10 = vmmov 0   ;;  %vm8774_vm11 = vcmask 1043456  }
  0x1a   :  { %v8876_v45 = vld [vmem:[%s13478_s1 + $0x50] sm:$0xff]  ;;  %v8877_v46 = vld [vmem:[%s13478_s1 + $0x58] sm:$0xff]  ;;  %v8886_v49 = vld [vmem:[%s13478_s1 + $0x60] sm:$0xff]  ;;  %vm8789_vm12 = vcmask 977920  }
  0x1b   :  { %v8887_v54 = vld [vmem:[%s13478_s1 + $0x68] sm:$0xff]  ;;  %v8888_v56 = vld [vmem:[%s13478_s1 + $0x70] sm:$0xff]  ;;  %v8889_v57 = vld [vmem:[%s13478_s1 + $0x78] sm:$0xff] }
  0x1c   :  { %v8898_v60 = vld [vmem:[%s13478_s1 + $0x80] sm:$0xff]  ;;  %v8924_v26 = vld [vmem:[%s13478_s1 + $0xd0] sm:$0xff] }
  0x1d   :  { %472 = vrot.lane.b32.xlu0 %v11219_v1, %s11141_s10  ;;  %474 = vrot.lane.b32.xlu1 %v11233_v3, %s11141_s10 }
  0x21   :  { %470 = vrot.lane.b32.xlu0 %v11224_v2, %s11141_s10  ;;  %476 = vrot.lane.b32.xlu1 %v11238_v4, %s11141_s10 }
  0x25   :  { %699 = vrot.lane.b32.xlu0 %v11219_v1, %s11142_s0  ;;  %701 = vrot.lane.b32.xlu1 %v11233_v3, %s11142_s0 }
  0x29   :  { %697 = vrot.lane.b32.xlu0 %v11224_v2, %s11142_s0  ;;  %703 = vrot.lane.b32.xlu1 %v11238_v4, %s11142_s0 }
  0x2d   :  { %926 = vrot.lane.b32.xlu0 %v11219_v1, %s11143_s11  ;;  %928 = vrot.lane.b32.xlu1 %v11233_v3, %s11143_s11 }
  0x31   :  { %924 = vrot.lane.b32.xlu0 %v11224_v2, %s11143_s11  ;;  %930 = vrot.lane.b32.xlu1 %v11238_v4, %s11143_s11 }
  0x35   :  { %1153 = vrot.lane.b32.xlu0 %v11219_v1, %s11144_s12  ;;  %1155 = vrot.lane.b32.xlu1 %v11233_v3, %s11144_s12 }
  0x39   :  { %1151 = vrot.lane.b32.xlu0 %v11224_v2, %s11144_s12  ;;  %1157 = vrot.lane.b32.xlu1 %v11238_v4, %s11144_s12 }
  0x3d   :  { %1380 = vrot.lane.b32.xlu0 %v11219_v1, %s11145_s13  ;;  %1382 = vrot.lane.b32.xlu1 %v11233_v3, %s11145_s13 }
  0x41   :  { %1378 = vrot.lane.b32.xlu0 %v11224_v2, %s11145_s13  ;;  %1384 = vrot.lane.b32.xlu1 %v11238_v4, %s11145_s13 }
  0x45   :  { %1607 = vrot.lane.b32.xlu0 %v11219_v1, %s11146_s14  ;;  %1609 = vrot.lane.b32.xlu1 %v11233_v3, %s11146_s14 }
  0x49   :  { %1605 = vrot.lane.b32.xlu0 %v11224_v2, %s11146_s14  ;;  %1611 = vrot.lane.b32.xlu1 %v11238_v4, %s11146_s14 }
  0x4d   :  { %1834 = vrot.lane.b32.xlu0 %v11219_v1, %s11147_s15  ;;  %1836 = vrot.lane.b32.xlu1 %v11233_v3, %s11147_s15 }
  0x51   :  { %1832 = vrot.lane.b32.xlu0 %v11224_v2, %s11147_s15  ;;  %1838 = vrot.lane.b32.xlu1 %v11238_v4, %s11147_s15 }
  0x55   :  { %2056 = vperm.xlu0 %10134, %v51_v23   ;;  %2061 = vperm.xlu1 %10135, %v52_v24   ;;  %v8923_v24 = vld [vmem:[%s13478_s1 + $0xc8] sm:$0xff] }
  0x59   :  { %2071 = vperm.xlu0 %10134, %v54_v32   ;;  %2066 = vperm.xlu1 %10135, %v53_v33   ;;  %v8935_v32 = vld [vmem:[%s13478_s1 + $0xe8] sm:$0xff]  ;;  %v8936_v33 = vld [vmem:[%s13478_s1 + $0xf0] sm:$0xff] }
  0x87   :  { %v71_v5 = vpop.permute.xlu0 %70  ;;  %v69_v6 = vpop.permute.xlu1 %68 }
  0x88   :  { %v77_v12 = vsel %vm76_vm0, %v69_v6, %v71_v5 }
  0x8b   :  { %v73_v7 = vpop.permute.xlu0 %72  ;;  %v75_v8 = vpop.permute.xlu1 %74 }
  0x8c   :  { %186 = vmatprep.subr.mxu1 %v75_v8  ;;  %v78_v10 = vsel %vm76_vm0, %v71_v5, %v73_v7  ;;  %v79_v11 = vsel %vm76_vm0, %v73_v7, %v75_v8  ;;  %v8901_v5 = vld [vmem:[%s13478_s1 + $0x98] sm:$0xff]  ;;  %v8910_v8 = vld [vmem:[%s13478_s1 + $0xa0] sm:$0xff] }
  0x8d   :  { %97 = vmatprep.subr.mxu0 %v78_v10  ;;  %187 = vmatpush1.msra.mxu1 %v79_v11 }
  0x8e   :  { %98 = vmatpush1.msra.mxu0 %v77_v12  ;;  %8862 = vmatmul.mubr.msk.f32.vlgmr.msra.gmra.mrb[0].mxu1 %vm84_vm1, %v8854_v9 }
  0x8f   :  { %8858 = vmatmul.mubr.msk.f32.vlgmr.msra.gmra.mrb[0].mxu0 %vm84_vm1, %v8854_v9  ;;  %256 = vmatprep.mubr.f32.mxu1 %v11139_v0  ;;  %v473_v14 = vpop.permute.xlu0 %472  ;;  %v475_v15 = vpop.permute.xlu1 %474 }
  0x90   :  { %167 = vmatprep.mubr.f32.mxu0 %v11139_v0  ;;  %287 = vmatprep.subr.mxu0 %v11219_v1  ;;  %v480_v16 = vsel %vm478_vm2, %v473_v14, %v475_v15 }
  0x91   :  { %376 = vmatprep.subr.mxu1 %v11238_v4  ;;  %288 = vmatpush1.msra.mxu0 %v11224_v2  ;;  %v8899_v2 = vld [vmem:[%s13478_s1 + $0x88] sm:$0xff]  ;;  %v8900_v4 = vld [vmem:[%s13478_s1 + $0x90] sm:$0xff] }
  0x92   :  { %8863 = vmatmul.mubr.msk.f32.gmra.mrb[2].mxu1 %vm84_vm1, %v8855_v13  ;;  %498 = vmatprep.subr.mxu0 %v480_v16  ;;  %v8913_v16 = vld [vmem:[%s13478_s1 + $0xb8] sm:$0xff] }
  0x93   :  { %8859 = vmatmul.mubr.msk.f32.gmra.mrb[2].mxu0 %vm84_vm1, %v8855_v13  ;;  %377 = vmatpush1.msra.mxu1 %v11233_v3  ;;  %v477_v18 = vpop.permute.xlu1 %476  ;;  %v471_v20 = vpop.permute.xlu0 %470  ;;  %v8911_v13 = vld [vmem:[%s13478_s1 + $0xa8] sm:$0xff] }
  0x94   :  { %262 = vmatprep.mubr.f32.mxu1 %v11139_v0  ;;  %173 = vmatprep.mubr.f32.mxu0 %v11139_v0  ;;  %v481_v25 = vsel %vm478_vm2, %v475_v15, %v477_v18  ;;  %v479_v27 = vsel %vm478_vm2, %v471_v20, %v473_v14  ;;  %v8912_v15 = vld [vmem:[%s13478_s1 + $0xb0] sm:$0xff] }
  0x95   :  { %587 = vmatprep.subr.mxu1 %v477_v18 }
  0x96   :  { %8864 = vmatmul.mubr.msk.f32.gmra.mrb[4].mxu1 %vm84_vm1, %v8856_v17 }
  0x97   :  { %8860 = vmatmul.mubr.msk.f32.gmra.mrb[4].mxu0 %vm84_vm1, %v8856_v17  ;;  %268 = vmatprep.mubr.f32.mxu1 %v11139_v0  ;;  %v702_v21 = vpop.permute.xlu1 %701  ;;  %v700_v28 = vpop.permute.xlu0 %699 }
  0x98   :  { %179 = vmatprep.mubr.f32.mxu0 %v11139_v0  ;;  %v707_v29 = vsel %vm705_vm3, %v700_v28, %v702_v21 }
  0x9a   :  { %8865 = vmatmul.mubr.msk.f32.gmra.mrb[6].mxu1 %vm84_vm1, %v8857_v19 }
  0x9b   :  { %8861 = vmatmul.mubr.msk.f32.gmra.mrb[6].mxu0 %vm84_vm1, %v8857_v19  ;;  %440 = vmatprep.mubr.f32.mxu1 %v11139_v0  ;;  %v704_v31 = vpop.permute.xlu1 %703  ;;  %v698_v36 = vpop.permute.xlu0 %697  ;;  %v8922_v19 = vld [vmem:[%s13478_s1 + $0xc0] sm:$0xff] }
  0x9c   :  { %351 = vmatprep.mubr.f32.mxu0 %v11139_v0  ;;  %v708_v39 = vsel %vm705_vm3, %v702_v21, %v704_v31  ;;  %v706_v40 = vsel %vm705_vm3, %v698_v36, %v700_v28  ;;  %v8947_v36 = vld [vmem:[%s13478_s1 + $0x108] sm:$0xff] }
  0x9e   :  { %8870 = vmatmul.mubr.msk.f32.vlgmr.msra.gmra.mrb[0].mxu1 %vm84_vm1, %v55_v22 }
  0x9f   :  { %8866 = vmatmul.mubr.msk.f32.vlgmr.msra.gmra.mrb[0].mxu0 %vm84_vm1, %v55_v22  ;;  %588 = vmatpush1.msra.mxu1 %v481_v25  ;;  %v929_v37 = vpop.permute.xlu1 %928  ;;  %v927_v41 = vpop.permute.xlu0 %926 }
  0xa0   :  { %499 = vmatpush1.msra.mxu0 %v479_v27  ;;  %446 = vmatprep.mubr.f32.mxu1 %v11139_v0  ;;  %v934_v42 = vsel %vm932_vm4, %v927_v41, %v929_v37  ;;  %v8925_v27 = vld [vmem:[%s13478_s1 + $0xd8] sm:$0xff] }
  0xa1   :  { %357 = vmatprep.mubr.f32.mxu0 %v11139_v0  ;;  %725 = vmatprep.subr.mxu0 %v707_v29  ;;  %v8934_v29 = vld [vmem:[%s13478_s1 + $0xe0] sm:$0xff] }
  0xa2   :  { %8871 = vmatmul.mubr.msk.f32.gmra.mrb[2].mxu1 %vm84_vm1, %v56_v30  ;;  %814 = vmatprep.subr.mxu1 %v704_v31 }
  0xa3   :  { %8867 = vmatmul.mubr.msk.f32.gmra.mrb[2].mxu0 %vm84_vm1, %v56_v30  ;;  %452 = vmatprep.mubr.f32.mxu1 %v11139_v0  ;;  %v931_v44 = vpop.permute.xlu1 %930  ;;  %v925_v47 = vpop.permute.xlu0 %924 }
  0xa4   :  { %363 = vmatprep.mubr.f32.mxu0 %v11139_v0  ;;  %v935_v50 = vsel %vm932_vm4, %v929_v37, %v931_v44  ;;  %v933_v51 = vsel %vm932_vm4, %v925_v47, %v927_v41  ;;  %v8948_v37 = vld [vmem:[%s13478_s1 + $0x110] sm:$0xff] }
  0xa6   :  { %8872 = vmatmul.mubr.msk.f32.gmra.mrb[4].mxu1 %vm84_vm1, %v57_v34 }
  0xa7   :  { %8868 = vmatmul.mubr.msk.f32.gmra.mrb[4].mxu0 %vm84_vm1, %v57_v34  ;;  %458 = vmatprep.mubr.f32.mxu1 %v11139_v0  ;;  %v1156_v48 = vpop.permute.xlu1 %1155  ;;  %v1154_v52 = vpop.permute.xlu0 %1153  ;;  %v8937_v34 = vld [vmem:[%s13478_s1 + $0xf8] sm:$0xff] }
  0xa8   :  { %369 = vmatprep.mubr.f32.mxu0 %v11139_v0  ;;  %v1161_v53 = vsel %vm1159_vm5, %v1154_v52, %v1156_v48 }
  0xaa   :  { %8873 = vmatmul.mubr.msk.f32.gmra.mrb[6].mxu1 %vm84_vm1, %v58_v35 }
  0xab   :  { %8869 = vmatmul.mubr.msk.f32.gmra.mrb[6].mxu0 %vm84_vm1, %v58_v35  ;;  %651 = vmatprep.mubr.f32.mxu1 %v11139_v0  ;;  %v1158_v55 = vpop.permute.xlu1 %1157  ;;  %v1152_v58 = vpop.permute.xlu0 %1151  ;;  %v8946_v35 = vld [vmem:[%s13478_s1 + $0x100] sm:$0xff] }
  0xac   :  { %562 = vmatprep.mubr.f32.mxu0 %v11139_v0  ;;  %v1162_v61 = vsel %vm1159_vm5, %v1156_v48, %v1158_v55  ;;  %v1160_v62 = vsel %vm1159_vm5, %v1152_v58, %v1154_v52 }
  0xae   :  { %8882 = vmatmul.mubr.msk.f32.vlgmr.msra.gmra.mrb[0].mxu1 %vm84_vm1, %v8874_v38 }
  0xaf   :  { %8878 = vmatmul.mubr.msk.f32.vlgmr.msra.gmra.mrb[0].mxu0 %vm84_vm1, %v8874_v38  ;;  %815 = vmatpush1.msra.mxu1 %v708_v39  ;;  %v1383_v59 = vpop.permute.xlu1 %1382  ;;  %v1381_v63 = vpop.permute.xlu0 %1380  ;;  %v8949_v38 = vld [vmem:[%s13478_s1 + $0x118] sm:$0xff] }
  0xb0   :  { %726 = vmatpush1.msra.mxu0 %v706_v40  ;;  %657 = vmatprep.mubr.f32.mxu1 %v11139_v0  ;;  %v1388_v1 = vsel %vm1386_vm6, %v1381_v63, %v1383_v59 }
  0xb1   :  { %568 = vmatprep.mubr.f32.mxu0 %v11139_v0  ;;  %952 = vmatprep.subr.mxu0 %v934_v42 }
  0xb2   :  { %8883 = vmatmul.mubr.msk.f32.gmra.mrb[2].mxu1 %vm84_vm1, %v8875_v43  ;;  %1041 = vmatprep.subr.mxu1 %v931_v44 }
  0xb3   :  { %8879 = vmatmul.mubr.msk.f32.gmra.mrb[2].mxu0 %vm84_vm1, %v8875_v43  ;;  %663 = vmatprep.mubr.f32.mxu1 %v11139_v0  ;;  %v1385_v3 = vpop.permute.xlu1 %1384  ;;  %v1379_v6 = vpop.permute.xlu0 %1378 }
  0xb4   :  { %574 = vmatprep.mubr.f32.mxu0 %v11139_v0  ;;  %v1389_v9 = vsel %vm1386_vm6, %v1383_v59, %v1385_v3  ;;  %v1387_v10 = vsel %vm1386_vm6, %v1379_v6, %v1381_v63 }
  0xb6   :  { %8884 = vmatmul.mubr.msk.f32.gmra.mrb[4].mxu1 %vm84_vm1, %v8876_v45 }
  0xb7   :  { %8880 = vmatmul.mubr.msk.f32.gmra.mrb[4].mxu0 %vm84_vm1, %v8876_v45  ;;  %669 = vmatprep.mubr.f32.mxu1 %v11139_v0  ;;  %v1610_v7 = vpop.permute.xlu1 %1609  ;;  %v1608_v11 = vpop.permute.xlu0 %1607 }
  0xb8   :  { %580 = vmatprep.mubr.f32.mxu0 %v11139_v0  ;;  %v1615_v12 = vsel %vm1613_vm7, %v1608_v11, %v1610_v7 }
  0xba   :  { %8885 = vmatmul.mubr.msk.f32.gmra.mrb[6].mxu1 %vm84_vm1, %v8877_v46 }
  0xbb   :  { %8881 = vmatmul.mubr.msk.f32.gmra.mrb[6].mxu0 %vm84_vm1, %v8877_v46  ;;  %878 = vmatprep.mubr.f32.mxu1 %v11139_v0  ;;  %v1612_v14 = vpop.permute.xlu1 %1611  ;;  %v1606_v17 = vpop.permute.xlu0 %1605 }
  0xbc   :  { %789 = vmatprep.mubr.f32.mxu0 %v11139_v0  ;;  %v1616_v20 = vsel %vm1613_vm7, %v1610_v7, %v1612_v14  ;;  %v1614_v21 = vsel %vm1613_vm7, %v1606_v17, %v1608_v11 }
  0xbe   :  { %8894 = vmatmul.mubr.msk.f32.vlgmr.msra.gmra.mrb[0].mxu1 %vm84_vm1, %v8886_v49 }
  0xbf   :  { %8890 = vmatmul.mubr.msk.f32.vlgmr.msra.gmra.mrb[0].mxu0 %vm84_vm1, %v8886_v49  ;;  %1042 = vmatpush1.msra.mxu1 %v935_v50  ;;  %v1837_v18 = vpop.permute.xlu1 %1836  ;;  %v1835_v22 = vpop.permute.xlu0 %1834 }
  0xc0   :  { %953 = vmatpush1.msra.mxu0 %v933_v51  ;;  %884 = vmatprep.mubr.f32.mxu1 %v11139_v0  ;;  %v1842_v23 = vsel %vm1840_vm8, %v1835_v22, %v1837_v18 }
  0xc1   :  { %795 = vmatprep.mubr.f32.mxu0 %v11139_v0  ;;  %1179 = vmatprep.subr.mxu0 %v1161_v53 }
  0xc2   :  { %8895 = vmatmul.mubr.msk.f32.gmra.mrb[2].mxu1 %vm84_vm1, %v8887_v54  ;;  %1268 = vmatprep.subr.mxu1 %v1158_v55 }
  0xc3   :  { %8891 = vmatmul.mubr.msk.f32.gmra.mrb[2].mxu0 %vm84_vm1, %v8887_v54  ;;  %890 = vmatprep.mubr.f32.mxu1 %v11139_v0  ;;  %v1839_v25 = vpop.permute.xlu1 %1838  ;;  %v1833_v28 = vpop.permute.xlu0 %1832 }
  0xc4   :  { %801 = vmatprep.mubr.f32.mxu0 %v11139_v0  ;;  %v1843_v30 = vsel %vm1840_vm8, %v1837_v18, %v1839_v25  ;;  %v1841_v31 = vsel %vm1840_vm8, %v1833_v28, %v1835_v22 }
  0xc6   :  { %8896 = vmatmul.mubr.msk.f32.gmra.mrb[4].mxu1 %vm84_vm1, %v8888_v56 }
  0xc7   :  { %8892 = vmatmul.mubr.msk.f32.gmra.mrb[4].mxu0 %vm84_vm1, %v8888_v56  ;;  %896 = vmatprep.mubr.f32.mxu1 %v11139_v0 }
  0xc8   :  { %807 = vmatprep.mubr.f32.mxu0 %v11139_v0 }
  0xca   :  { %8897 = vmatmul.mubr.msk.f32.gmra.mrb[6].mxu1 %vm84_vm1, %v8889_v57 }
  0xcb   :  { %8893 = vmatmul.mubr.msk.f32.gmra.mrb[6].mxu0 %vm84_vm1, %v8889_v57  ;;  %1105 = vmatprep.mubr.f32.mxu1 %v11139_v0 }
  0xcc   :  { %1016 = vmatprep.mubr.f32.mxu0 %v11139_v0 }
  0xce   :  { %8906 = vmatmul.mubr.msk.f32.vlgmr.msra.gmra.mrb[0].mxu1 %vm84_vm1, %v8898_v60 }
  0xcf   :  { %8902 = vmatmul.mubr.msk.f32.vlgmr.msra.gmra.mrb[0].mxu0 %vm84_vm1, %v8898_v60  ;;  %1269 = vmatpush1.msra.mxu1 %v1162_v61 }
  0xd0   :  { %1180 = vmatpush1.msra.mxu0 %v1160_v62  ;;  %1111 = vmatprep.mubr.f32.mxu1 %v11139_v0 }
  0xd1   :  { %1022 = vmatprep.mubr.f32.mxu0 %v11139_v0  ;;  %1406 = vmatprep.subr.mxu0 %v1388_v1 }
  0xd2   :  { %8907 = vmatmul.mubr.msk.f32.gmra.mrb[2].mxu1 %vm84_vm1, %v8899_v2  ;;  %1495 = vmatprep.subr.mxu1 %v1385_v3 }
  0xd3   :  { %8903 = vmatmul.mubr.msk.f32.gmra.mrb[2].mxu0 %vm84_vm1, %v8899_v2  ;;  %1117 = vmatprep.mubr.f32.mxu1 %v11139_v0 }
  0xd4   :  { %1028 = vmatprep.mubr.f32.mxu0 %v11139_v0  ;;  %v2057_v39 = vpop.permute.xlu0 %2056  ;;  %v2062_v46 = vpop.permute.xlu1 %2061 }
  0xd6   :  { %8908 = vmatmul.mubr.msk.f32.gmra.mrb[4].mxu1 %vm84_vm1, %v8900_v4 }
  0xd7   :  { %8904 = vmatmul.mubr.msk.f32.gmra.mrb[4].mxu0 %vm84_vm1, %v8900_v4  ;;  %1123 = vmatprep.mubr.f32.mxu1 %v11139_v0 }
  0xd8   :  { %1034 = vmatprep.mubr.f32.mxu0 %v11139_v0 }
  0xda   :  { %8909 = vmatmul.mubr.msk.f32.gmra.mrb[6].mxu1 %vm84_vm1, %v8901_v5 }
  0xdb   :  { %8905 = vmatmul.mubr.msk.f32.gmra.mrb[6].mxu0 %vm84_vm1, %v8901_v5  ;;  %1332 = vmatprep.mubr.f32.mxu1 %v11139_v0  ;;  %v2067_v5 = vpop.permute.xlu1 %2066 }
  0xdc   :  { %1243 = vmatprep.mubr.f32.mxu0 %v11139_v0 }
  0xde   :  { %8918 = vmatmul.mubr.msk.f32.vlgmr.msra.gmra.mrb[0].mxu1 %vm84_vm1, %v8910_v8 }
  0xdf   :  { %8914 = vmatmul.mubr.msk.f32.vlgmr.msra.gmra.mrb[0].mxu0 %vm84_vm1, %v8910_v8  ;;  %1496 = vmatpush1.msra.mxu1 %v1389_v9 }
  0xe0   :  { %1407 = vmatpush1.msra.mxu0 %v1387_v10  ;;  %1338 = vmatprep.mubr.f32.mxu1 %v11139_v0 }
  0xe1   :  { %1249 = vmatprep.mubr.f32.mxu0 %v11139_v0  ;;  %1633 = vmatprep.subr.mxu0 %v1615_v12 }
  0xe2   :  { %8919 = vmatmul.mubr.msk.f32.gmra.mrb[2].mxu1 %vm84_vm1, %v8911_v13  ;;  %1722 = vmatprep.subr.mxu1 %v1612_v14 }
  0xe3   :  { %8915 = vmatmul.mubr.msk.f32.gmra.mrb[2].mxu0 %vm84_vm1, %v8911_v13  ;;  %1344 = vmatprep.mubr.f32.mxu1 %v11139_v0 }
  0xe4   :  { %1255 = vmatprep.mubr.f32.mxu0 %v11139_v0 }
  0xe6   :  { %8920 = vmatmul.mubr.msk.f32.gmra.mrb[4].mxu1 %vm84_vm1, %v8912_v15 }
  0xe7   :  { %8916 = vmatmul.mubr.msk.f32.gmra.mrb[4].mxu0 %vm84_vm1, %v8912_v15  ;;  %1350 = vmatprep.mubr.f32.mxu1 %v11139_v0 }
  0xe8   :  { %1261 = vmatprep.mubr.f32.mxu0 %v11139_v0 }
  0xea   :  { %8921 = vmatmul.mubr.msk.f32.gmra.mrb[6].mxu1 %vm84_vm1, %v8913_v16 }
  0xeb   :  { %8917 = vmatmul.mubr.msk.f32.gmra.mrb[6].mxu0 %vm84_vm1, %v8913_v16  ;;  %1559 = vmatprep.mubr.f32.mxu1 %v11139_v0 }
  0xec   :  { %1470 = vmatprep.mubr.f32.mxu0 %v11139_v0 }
  0xee   :  { %8930 = vmatmul.mubr.msk.f32.vlgmr.msra.gmra.mrb[0].mxu1 %vm84_vm1, %v8922_v19 }
  0xef   :  { %8926 = vmatmul.mubr.msk.f32.vlgmr.msra.gmra.mrb[0].mxu0 %vm84_vm1, %v8922_v19  ;;  %1723 = vmatpush1.msra.mxu1 %v1616_v20 }
  0xf0   :  { %1634 = vmatpush1.msra.mxu0 %v1614_v21  ;;  %1565 = vmatprep.mubr.f32.mxu1 %v11139_v0  ;;  %v2072_v21 = vpop.permute.xlu0 %2071 }
  0xf1   :  { %1476 = vmatprep.mubr.f32.mxu0 %v11139_v0  ;;  %1860 = vmatprep.subr.mxu0 %v1842_v23 }
  0xf2   :  { %8931 = vmatmul.mubr.msk.f32.gmra.mrb[2].mxu1 %vm84_vm1, %v8923_v24  ;;  %1949 = vmatprep.subr.mxu1 %v1839_v25 }
  0xf3   :  { %8927 = vmatmul.mubr.msk.f32.gmra.mrb[2].mxu0 %vm84_vm1, %v8923_v24  ;;  %1571 = vmatprep.mubr.f32.mxu1 %v11139_v0 }
  0xf4   :  { %1482 = vmatprep.mubr.f32.mxu0 %v11139_v0 }
  0xf6   :  { %8932 = vmatmul.mubr.msk.f32.gmra.mrb[4].mxu1 %vm84_vm1, %v8924_v26 }
  0xf7   :  { %8928 = vmatmul.mubr.msk.f32.gmra.mrb[4].mxu0 %vm84_vm1, %v8924_v26  ;;  %1577 = vmatprep.mubr.f32.mxu1 %v11139_v0 }
  0xf8   :  { %1488 = vmatprep.mubr.f32.mxu0 %v11139_v0 }
  0xfa   :  { %8933 = vmatmul.mubr.msk.f32.gmra.mrb[6].mxu1 %vm84_vm1, %v8925_v27 }
  0xfb   :  { %8929 = vmatmul.mubr.msk.f32.gmra.mrb[6].mxu0 %vm84_vm1, %v8925_v27  ;;  %1786 = vmatprep.mubr.f32.mxu1 %v11139_v0 }
  0xfc   :  { %1697 = vmatprep.mubr.f32.mxu0 %v11139_v0 }
  0xfe   :  { %8942 = vmatmul.mubr.msk.f32.vlgmr.msra.gmra.mrb[0].mxu1 %vm84_vm1, %v8934_v29 }
  0xff   :  { %8938 = vmatmul.mubr.msk.f32.vlgmr.msra.gmra.mrb[0].mxu0 %vm84_vm1, %v8934_v29  ;;  %1950 = vmatpush1.msra.mxu1 %v1843_v30 }
 0x100   :  { %1861 = vmatpush1.msra.mxu0 %v1841_v31  ;;  %1792 = vmatprep.mubr.f32.mxu1 %v11139_v0 }
 0x101   :  { %1703 = vmatprep.mubr.f32.mxu0 %v11139_v0 }
 0x102   :  { %8943 = vmatmul.mubr.msk.f32.gmra.mrb[2].mxu1 %vm84_vm1, %v8935_v32 }
 0x103   :  { %8939 = vmatmul.mubr.msk.f32.gmra.mrb[2].mxu0 %vm84_vm1, %v8935_v32  ;;  %1798 = vmatprep.mubr.f32.mxu1 %v11139_v0 }
 0x104   :  { %1709 = vmatprep.mubr.f32.mxu0 %v11139_v0 }
 0x106   :  { %8944 = vmatmul.mubr.msk.f32.gmra.mrb[4].mxu1 %vm84_vm1, %v8936_v33 }
 0x107   :  { %8940 = vmatmul.mubr.msk.f32.gmra.mrb[4].mxu0 %vm84_vm1, %v8936_v33  ;;  %1804 = vmatprep.mubr.f32.mxu1 %v11139_v0 }
 0x108   :  { %1715 = vmatprep.mubr.f32.mxu0 %v11139_v0 }
 0x10a   :  { %8945 = vmatmul.mubr.msk.f32.gmra.mrb[6].mxu1 %vm84_vm1, %v8937_v34 }
 0x10b   :  { %8941 = vmatmul.mubr.msk.f32.gmra.mrb[6].mxu0 %vm84_vm1, %v8937_v34  ;;  %2013 = vmatprep.mubr.f32.mxu1 %v11139_v0 }
 0x10c   :  { %1924 = vmatprep.mubr.f32.mxu0 %v11139_v0 }
 0x10e   :  { %8954 = vmatmul.mubr.msk.f32.vlgmr.msra.gmra.mrb[0].mxu1 %vm84_vm1, %v8946_v35 }
 0x10f   :  { %8950 = vmatmul.mubr.msk.f32.vlgmr.msra.gmra.mrb[0].mxu0 %vm84_vm1, %v8946_v35  ;;  %2019 = vmatprep.mubr.f32.mxu1 %v11139_v0 }
 0x110   :  { %1930 = vmatprep.mubr.f32.mxu0 %v11139_v0 }
 0x112   :  { %8955 = vmatmul.mubr.msk.f32.gmra.mrb[2].mxu1 %vm84_vm1, %v8947_v36 }
 0x113   :  { %8951 = vmatmul.mubr.msk.f32.gmra.mrb[2].mxu0 %vm84_vm1, %v8947_v36  ;;  %2025 = vmatprep.mubr.f32.mxu1 %v11139_v0 }
 0x114   :  { %1936 = vmatprep.mubr.f32.mxu0 %v11139_v0 }
 0x116   :  { %8956 = vmatmul.mubr.msk.f32.gmra.mrb[4].mxu1 %vm84_vm1, %v8948_v37 }
 0x117   :  { %8952 = vmatmul.mubr.msk.f32.gmra.mrb[4].mxu0 %vm84_vm1, %v8948_v37  ;;  %2031 = vmatprep.mubr.f32.mxu1 %v11139_v0 }
 0x118   :  { %1942 = vmatprep.mubr.f32.mxu0 %v11139_v0 }
 0x11a   :  { %8957 = vmatmul.mubr.msk.f32.gmra.mrb[6].mxu1 %vm84_vm1, %v8949_v38 }
 0x11b   :  { %8953 = vmatmul.mubr.msk.f32.gmra.mrb[6].mxu0 %vm84_vm1, %v8949_v38  ;;  %2377 = vmatprep.mubr.f32.mxu1 %v11139_v0 }
 0x11c   :  { %2288 = vmatprep.mubr.f32.mxu0 %v11139_v0 }
 0x1e1   :  { %v2015_v40 = vpop.f32.mrb[0].mxu1 }
 0x1e2   :  { %v2076_v41 = vadd.f32 %v2057_v39, %v2015_v40  ;;  %v1926_v42 = vpop.f32.mrb[0].mxu0  ;;  %v2017_v43 = vpop.f32.mrb[1].mxu1 }
 0x1e3   :  { %v2074_v44 = vadd.f32 %v2057_v39, %v1926_v42  ;;  %v2077_v45 = vadd.f32 %v2057_v39, %v2017_v43  ;;  %v1928_v47 = vpop.f32.mrb[1].mxu0 }
 0x1e4   :  { %v2092_v48 = vmul.f32 0.2, %v2076_v41  ;;  %v2075_v49 = vadd.f32 %v2057_v39, %v1928_v47 }
 0x1e5   :  { %v2090_v50 = vmul.f32 0.2, %v2074_v44  ;;  %v2093_v51 = vmul.f32 0.2, %v2077_v45  ;;  %v2021_v52 = vpop.f32.mrb[2].mxu1 }
 0x1e6   :  { %v2091_v53 = vmul.f32 0.2, %v2075_v49  ;;  %v2080_v54 = vadd.f32 %v2062_v46, %v2021_v52  ;;  %v1932_v55 = vpop.f32.mrb[2].mxu0  ;;  %v2023_v56 = vpop.f32.mrb[3].mxu1  ;;  %v11592_v60 = vmax.f32 %v2076_v41, %v2092_v48 }
 0x1e7   :  { %v2078_v57 = vadd.f32 %v2062_v46, %v1932_v55  ;;  %v2081_v58 = vadd.f32 %v2062_v46, %v2023_v56  ;;  %v1934_v59 = vpop.f32.mrb[3].mxu0  ;;  %v11596_v1 = vmax.f32 %v2074_v44, %v2090_v50  ;;  %v11598_v2 = vmax.f32 %v2077_v45, %v2093_v51 }
 0x1e8   :  { %v11594_v61 = vmax.f32 %v2075_v49, %v2091_v53  ;;  %v2096_v62 = vmul.f32 0.2, %v2080_v54  ;;  %v2079_v63 = vadd.f32 %v2062_v46, %v1934_v59 }
 0x1e9   :  { %v2094_v3 = vmul.f32 0.2, %v2078_v57  ;;  %v2097_v4 = vmul.f32 0.2, %v2081_v58  ;;  %v2027_v6 = vpop.f32.mrb[4].mxu1 }
 0x1ea   :  { %v11600_v7 = vmax.f32 %v2080_v54, %v2096_v62  ;;  %v2095_v8 = vmul.f32 0.2, %v2079_v63  ;;  %v2084_v9 = vadd.f32 %v2067_v5, %v2027_v6  ;;  %v1938_v10 = vpop.f32.mrb[4].mxu0  ;;  %v2029_v11 = vpop.f32.mrb[5].mxu1  ;;  %v11604_v12 = vpack.i.bf16 %v11592_v60, %v11594_v61 }
 0x1eb   :  { %v11606_v13 = vmax.f32 %v2078_v57, %v2094_v3  ;;  %v11608_v14 = vmax.f32 %v2081_v58, %v2097_v4  ;;  %v2082_v15 = vadd.f32 %v2067_v5, %v1938_v10  ;;  %v2085_v16 = vadd.f32 %v2067_v5, %v2029_v11  ;;  %v1940_v17 = vpop.f32.mrb[5].mxu0 }
 0x1ec   :  { %v11610_v18 = vmax.f32 %v2079_v63, %v2095_v8  ;;  %v2100_v19 = vmul.f32 0.2, %v2084_v9  ;;  %v2083_v20 = vadd.f32 %v2067_v5, %v1940_v17  ;;  %10137 = vrot.lane.b32.xlu1 %v11604_v12, %s11140_s27  ;;  %v9330_v56 = vpack.c.bf16 %v11600_v7, %v11592_v60  ;;  %v8960_v60 = vld [vmem:[%s13480_s3 + $0x30] sm:$0xff] }
 0x1ed   :  { %v2098_v22 = vmul.f32 0.2, %v2082_v15  ;;  %v2101_v23 = vmul.f32 0.2, %v2085_v16  ;;  %v2033_v24 = vpop.f32.mrb[6].mxu1  ;;  %v11616_v25 = vpack.i.bf16 %v11608_v14, %v11598_v2  ;;  %v11620_v26 = vpack.i.bf16 %v11606_v13, %v11596_v1 }
 0x1ee   :  { %v11622_v27 = vmax.f32 %v2084_v9, %v2100_v19  ;;  %v2099_v28 = vmul.f32 0.2, %v2083_v20  ;;  %v2088_v29 = vadd.f32 %v2072_v21, %v2033_v24  ;;  %v1944_v30 = vpop.f32.mrb[6].mxu0  ;;  %v2035_v31 = vpop.f32.mrb[7].mxu1  ;;  %v11626_v32 = vpack.i.bf16 %v11600_v7, %v11610_v18 }
 0x1ef   :  { %v11628_v33 = vmax.f32 %v2082_v15, %v2098_v22  ;;  %v11630_v34 = vmax.f32 %v2085_v16, %v2101_v23  ;;  %v2086_v35 = vadd.f32 %v2072_v21, %v1944_v30  ;;  %v2089_v36 = vadd.f32 %v2072_v21, %v2035_v31  ;;  %v1946_v37 = vpop.f32.mrb[7].mxu0  ;;  %10147 = vrot.lane.b32.xlu0 %v11616_v25, %s11140_s27  ;;  %v2122_v30 = vld [vmem:[%s13481_s4] sm:$0xff] }
 0x1f0   :  { %v11634_v38 = vmax.f32 %v2083_v20, %v2099_v28  ;;  %v2104_v39 = vmul.f32 0.2, %v2088_v29  ;;  %v2087_v40 = vadd.f32 %v2072_v21, %v1946_v37  ;;  %10142 = vrot.lane.b32.xlu1 %v11620_v26, %s11140_s27  ;;  %v9320_v52 = vpack.c.bf16 %v11610_v18, %v11594_v61  ;;  %v8959_v18 = vld [vmem:[%s13480_s3 + $0x28] sm:$0xff] }
 0x1f1   :  { %v2102_v41 = vmul.f32 0.2, %v2086_v35  ;;  %v2105_v42 = vmul.f32 0.2, %v2089_v36  ;;  %v9322_v53 = vpack.c.bf16 %v11606_v13, %v11596_v1  ;;  %v9328_v54 = vpack.c.bf16 %v11608_v14, %v11598_v2 }
 0x1f2   :  { %v11638_v43 = vmax.f32 %v2088_v29, %v2104_v39  ;;  %v2103_v44 = vmul.f32 0.2, %v2087_v40  ;;  %v11642_v45 = vpack.i.bf16 %v11622_v27, %v11634_v38 }
 0x1f3   :  { %v11644_v46 = vmax.f32 %v2086_v35, %v2102_v41  ;;  %v11646_v47 = vmax.f32 %v2089_v36, %v2105_v42  ;;  %10152 = vrot.lane.b32.xlu0 %v11626_v32, %s11140_s27 }
 0x1f4   :  { %v11650_v48 = vmax.f32 %v2087_v40, %v2103_v44  ;;  %10157 = vrot.lane.b32.xlu1 %v11642_v45, %s11140_s27  ;;  %v9334_v59 = vpack.c.bf16 %v11638_v43, %v11622_v27  ;;  %v2123_v44 = vld [vmem:[%s13481_s4 + $0x8] sm:$0xff] }
 0x1f5   :  { %v11656_v49 = vpack.i.bf16 %v11644_v46, %v11628_v33  ;;  %v11660_v50 = vpack.i.bf16 %v11646_v47, %v11630_v34  ;;  %v9326_v57 = vpack.c.bf16 %v11644_v46, %v11628_v33  ;;  %v9332_v58 = vpack.c.bf16 %v11646_v47, %v11630_v34 }
 0x1f6   :  { %v11664_v51 = vpack.i.bf16 %v11638_v43, %v11650_v48  ;;  %v9324_v55 = vpack.c.bf16 %v11650_v48, %v11634_v38 }
 0x1f8   :  { %10167 = vrot.lane.b32.xlu0 %v11664_v51, %s11140_s27  ;;  %10162 = vrot.lane.b32.xlu1 %v11656_v49, %s11140_s27 }
 0x1fc   :  { %10172 = vrot.lane.b32.xlu0 %v11660_v50, %s11140_s27  ;;  %10177 = vrot.lane.b32.xlu1 %v11604_v12, %s11141_s10 }
 0x200   :  { %10182 = vrot.lane.b32.xlu0 %v11626_v32, %s11141_s10  ;;  %10187 = vrot.lane.b32.xlu1 %v11620_v26, %s11141_s10 }
 0x204   :  { %10192 = vrot.lane.b32.xlu0 %v11616_v25, %s11141_s10  ;;  %10197 = vrot.lane.b32.xlu1 %v11642_v45, %s11141_s10 }
 0x208   :  { %10207 = vrot.lane.b32.xlu0 %v11664_v51, %s11141_s10  ;;  %10202 = vrot.lane.b32.xlu1 %v11656_v49, %s11141_s10 }
 0x20c   :  { %10212 = vrot.lane.b32.xlu0 %v11660_v50, %s11141_s10  ;;  %10217 = vrot.lane.b32.xlu1 %v11604_v12, %s11142_s0 }
 0x210   :  { %10222 = vrot.lane.b32.xlu0 %v11626_v32, %s11142_s0  ;;  %10227 = vrot.lane.b32.xlu1 %v11620_v26, %s11142_s0 }
 0x214   :  { %10232 = vrot.lane.b32.xlu0 %v11616_v25, %s11142_s0  ;;  %10237 = vrot.lane.b32.xlu1 %v11642_v45, %s11142_s0 }
 0x218   :  { %10247 = vrot.lane.b32.xlu0 %v11664_v51, %s11142_s0  ;;  %10242 = vrot.lane.b32.xlu1 %v11656_v49, %s11142_s0 }
 0x21c   :  { %10252 = vrot.lane.b32.xlu0 %v11660_v50, %s11142_s0  ;;  %10257 = vrot.lane.b32.xlu1 %v11604_v12, %s11143_s11 }
 0x220   :  { %10262 = vrot.lane.b32.xlu0 %v11626_v32, %s11143_s11  ;;  %10267 = vrot.lane.b32.xlu1 %v11620_v26, %s11143_s11 }
 0x224   :  { %10272 = vrot.lane.b32.xlu0 %v11616_v25, %s11143_s11  ;;  %10277 = vrot.lane.b32.xlu1 %v11642_v45, %s11143_s11 }
 0x228   :  { %10287 = vrot.lane.b32.xlu0 %v11664_v51, %s11143_s11  ;;  %10282 = vrot.lane.b32.xlu1 %v11656_v49, %s11143_s11 }
 0x22c   :  { %10292 = vrot.lane.b32.xlu0 %v11660_v50, %s11143_s11  ;;  %10297 = vrot.lane.b32.xlu1 %v11604_v12, %s11144_s12 }
 0x230   :  { %10302 = vrot.lane.b32.xlu0 %v11626_v32, %s11144_s12  ;;  %10307 = vrot.lane.b32.xlu1 %v11620_v26, %s11144_s12 }
 0x234   :  { %10312 = vrot.lane.b32.xlu0 %v11616_v25, %s11144_s12  ;;  %10317 = vrot.lane.b32.xlu1 %v11642_v45, %s11144_s12 }
 0x238   :  { %10327 = vrot.lane.b32.xlu0 %v11664_v51, %s11144_s12  ;;  %10322 = vrot.lane.b32.xlu1 %v11656_v49, %s11144_s12 }
 0x23c   :  { %10332 = vrot.lane.b32.xlu0 %v11660_v50, %s11144_s12  ;;  %10337 = vrot.lane.b32.xlu1 %v11604_v12, %s11145_s13 }
 0x240   :  { %10342 = vrot.lane.b32.xlu0 %v11626_v32, %s11145_s13  ;;  %10347 = vrot.lane.b32.xlu1 %v11620_v26, %s11145_s13 }
 0x244   :  { %10352 = vrot.lane.b32.xlu0 %v11616_v25, %s11145_s13  ;;  %10357 = vrot.lane.b32.xlu1 %v11642_v45, %s11145_s13 }
 0x248   :  { %10367 = vrot.lane.b32.xlu0 %v11664_v51, %s11145_s13  ;;  %10362 = vrot.lane.b32.xlu1 %v11656_v49, %s11145_s13 }
 0x24c   :  { %10372 = vrot.lane.b32.xlu0 %v11660_v50, %s11145_s13  ;;  %10377 = vrot.lane.b32.xlu1 %v11604_v12, %s11146_s14 }
 0x250   :  { %10382 = vrot.lane.b32.xlu0 %v11626_v32, %s11146_s14  ;;  %10387 = vrot.lane.b32.xlu1 %v11620_v26, %s11146_s14 }
 0x254   :  { %10392 = vrot.lane.b32.xlu0 %v11616_v25, %s11146_s14  ;;  %10397 = vrot.lane.b32.xlu1 %v11642_v45, %s11146_s14 }
 0x258   :  { %10407 = vrot.lane.b32.xlu0 %v11664_v51, %s11146_s14  ;;  %10402 = vrot.lane.b32.xlu1 %v11656_v49, %s11146_s14 }
 0x25c   :  { %10412 = vrot.lane.b32.xlu0 %v11660_v50, %s11146_s14  ;;  %10417 = vrot.lane.b32.xlu1 %v11604_v12, %s11147_s15 }
 0x25e   :  { %v10138_v62 = vpop.permute.xlu1 %10137 }
 0x25f   :  { %v10140_v6 = vunpack.i.h.bf16 %v10138_v62  ;;  %v10139_v8 = vunpack.i.l.bf16 %v10138_v62 }
 0x260   :  { %10422 = vrot.lane.b32.xlu0 %v11626_v32, %s11147_s15  ;;  %10427 = vrot.lane.b32.xlu1 %v11620_v26, %s11147_s15 }
 0x261   :  { %v10148_v63 = vpop.permute.xlu0 %10147  ;;  %v2184_v21 = vsel %vm76_vm0, %v10139_v8, %v10140_v6 }
 0x262   :  { %v10150_v3 = vunpack.i.h.bf16 %v10148_v63  ;;  %v10149_v4 = vunpack.i.l.bf16 %v10148_v63  ;;  %v10143_v5 = vpop.permute.xlu1 %10142 }
 0x263   :  { %v10144_v9 = vunpack.i.l.bf16 %v10143_v5  ;;  %v10145_v12 = vunpack.i.h.bf16 %v10143_v5 }
 0x264   :  { %10432 = vrot.lane.b32.xlu0 %v11616_v25, %s11147_s15  ;;  %10437 = vrot.lane.b32.xlu1 %v11642_v45, %s11147_s15  ;;  %v9312_v10 = vpack.c.bf16 %v10150_v3, %v10149_v4  ;;  %v2185_v19 = vsel %vm76_vm0, %v10140_v6, %v10149_v4  ;;  %v2124_v45 = vld [vmem:[%s13481_s4 + $0x10] sm:$0xff] }
 0x265   :  { %v10153_v11 = vpop.permute.xlu0 %10152  ;;  %v2183_v20 = vsel %vm76_vm0, %v10144_v9, %v10139_v8 }
 0x266   :  { %v10155_v15 = vunpack.i.h.bf16 %v10153_v11  ;;  %v10154_v16 = vunpack.i.l.bf16 %v10153_v11  ;;  %9313 = vmatprep.subr.bf16.mxu1 %v9312_v10  ;;  %v10158_v17 = vpop.permute.xlu1 %10157  ;;  %v2125_v10 = vld [vmem:[%s13481_s4 + $0x18] sm:$0xff] }
 0x267   :  { %v10160_v24 = vunpack.i.h.bf16 %v10158_v17  ;;  %v10159_v26 = vunpack.i.l.bf16 %v10158_v17 }
 0x268   :  { %v2188_v22 = vsel %vm76_vm0, %v10155_v15, %v10150_v3  ;;  %v2186_v23 = vsel %vm76_vm0, %v10145_v12, %v10154_v16  ;;  %10447 = vrot.lane.b32.xlu0 %v11664_v51, %s11147_s15  ;;  %10442 = vrot.lane.b32.xlu1 %v11656_v49, %s11147_s15  ;;  %v2187_v25 = vsel %vm76_vm0, %v10154_v16, %v10155_v15  ;;  %v8958_v15 = vld [vmem:[%s13480_s3 + $0x20] sm:$0xff] }
 0x269   :  { %v9304_v28 = vpack.c.bf16 %v2187_v25, %v2184_v21  ;;  %v9314_v29 = vpack.c.bf16 %v2188_v22, %v2185_v19  ;;  %v9306_v31 = vpack.c.bf16 %v2186_v23, %v2183_v20  ;;  %v2190_v49 = vsel %vm76_vm0, %v10159_v26, %v10160_v24 }
 0x26a   :  { %v10168_v32 = vpop.permute.xlu0 %10167  ;;  %v10163_v35 = vpop.permute.xlu1 %10162 }
 0x26b   :  { %v10170_v36 = vunpack.i.h.bf16 %v10168_v32  ;;  %v10169_v37 = vunpack.i.l.bf16 %v10168_v32  ;;  %v10165_v39 = vunpack.i.h.bf16 %v10163_v35  ;;  %v10164_v40 = vunpack.i.l.bf16 %v10163_v35  ;;  %9305 = vmatprep.subr.bf16.mxu0 %v9304_v28  ;;  %9315 = vmatpush1.bf16.msra.mxu1 %v9314_v29  ;;  %v2126_v35 = vld [vmem:[%s13480_s3] sm:$0xff] }
 0x26c   :  { %10452 = vrot.lane.b32.xlu0 %v11660_v50, %s11147_s15  ;;  %4491 = vperm.xlu1 %10135, %v2122_v30  }
 0x26d   :  { %v2192_v41 = vsel %vm76_vm0, %v10165_v39, %v10169_v37  ;;  %v2189_v42 = vsel %vm76_vm0, %v10164_v40, %v10159_v26  ;;  %9307 = vmatpush1.bf16.msra.mxu0 %v9306_v31  ;;  %v2193_v51 = vsel %vm76_vm0, %v10169_v37, %v10170_v36 }
 0x26e   :  { %v10173_v62 = vpop.permute.xlu0 %10172  ;;  %v11819_v50 = vpop.permute.xlu1 %10177  ;;  %v9308_v63 = vpack.c.bf16 %v2193_v51, %v2190_v49  ;;  %v9310_v3 = vpack.c.bf16 %v2192_v41, %v2189_v42 }
 0x26f   :  { %v10175_v4 = vunpack.i.h.bf16 %v10173_v62  ;;  %v10174_v5 = vunpack.i.l.bf16 %v10173_v62  ;;  %v10180_v20 = vunpack.i.h.bf16 %v11819_v50  ;;  %v10179_v21 = vunpack.i.l.bf16 %v11819_v50 }
 0x270   :  { %4496 = vperm.xlu0 %10134, %v2123_v44   ;;  %4501 = vperm.xlu1 %10135, %v2124_v45  }
 0x271   :  { %v2194_v6 = vsel %vm76_vm0, %v10170_v36, %v10175_v4  ;;  %v2191_v8 = vsel %vm76_vm0, %v10160_v24, %v10174_v5  ;;  %9309 = vmatprep.subr.bf16.mxu0 %v9308_v63  ;;  %v9316_v9 = vpack.c.bf16 %v10175_v4, %v10174_v5  ;;  %v2630_v1 = vsel %vm478_vm2, %v10179_v21, %v10180_v20 }
 0x272   :  { %9311 = vmatpush1.bf16.msra.mxu0 %v9310_v3  ;;  %v10183_v11 = vpop.permute.xlu0 %10182  ;;  %v10188_v12 = vpop.permute.xlu1 %10187  ;;  %v9318_v16 = vpack.c.bf16 %v2194_v6, %v2191_v8  ;;  %v2127_v3 = vld [vmem:[%s13480_s3 + $0x8] sm:$0xff] }
 0x273   :  { %v10185_v17 = vunpack.i.h.bf16 %v10183_v11  ;;  %v10184_v19 = vunpack.i.l.bf16 %v10183_v11  ;;  %9321 = vmatprep.subr.bf16.mxu0 %v9320_v52  ;;  %9317 = vmatprep.subr.bf16.mxu1 %v9316_v9  ;;  %v10190_v7 = vunpack.i.h.bf16 %v10188_v12  ;;  %v10189_v34 = vunpack.i.l.bf16 %v10188_v12 }
 0x274   :  { %4506 = vperm.xlu0 %10134, %v2125_v10   ;;  %9319 = vmatpush1.bf16.msra.mxu1 %v9318_v16 }
 0x275   :  { %8962 = vmatmul.mubr.msk.f32.vlgmr.msra.gmra.mrb[8].mxu0 %vm2211_vm9, %v8958_v15  ;;  %9329 = vmatprep.subr.bf16.mxu1 %v9328_v54  ;;  %v2633_v52 = vsel %vm478_vm2, %v10184_v19, %v10185_v17  ;;  %v2632_v54 = vsel %vm478_vm2, %v10190_v7, %v10184_v19  ;;  %v2629_v27 = vsel %vm478_vm2, %v10189_v34, %v10179_v21 }
 0x276   :  { %9323 = vmatpush1.bf16.msra.mxu0 %v9322_v53  ;;  %v10193_v22 = vpop.permute.xlu0 %10192  ;;  %v11841_v61 = vpop.permute.xlu1 %10197  ;;  %2294 = vmatprep.mubr.f32.mxu0 %v11139_v0  ;;  %v9336_v2 = vpack.c.bf16 %v2633_v52, %v2630_v1  ;;  %v8961_v53 = vld [vmem:[%s13480_s3 + $0x38] sm:$0xff]  ;;  %v9338_v39 = vpack.c.bf16 %v2632_v54, %v2629_v27  ;;  %v8978_v54 = vld [vmem:[%s13480_s3 + $0x40] sm:$0xff] }
 0x277   :  { %v10195_v23 = vunpack.i.h.bf16 %v10193_v22  ;;  %v10194_v24 = vunpack.i.l.bf16 %v10193_v22  ;;  %9325 = vmatprep.subr.bf16.mxu0 %v9324_v55  ;;  %8966 = vmatmul.mubr.msk.f32.vlgmr.msra.gmra.mrb[8].mxu1 %vm2211_vm9, %v8958_v15  ;;  %v10200_v55 = vunpack.i.h.bf16 %v11841_v61  ;;  %v2129_v52 = vld [vmem:[%s13480_s3 + $0x18] sm:$0xff] }
 0x278   :  { %9331 = vmatpush1.bf16.msra.mxu1 %v9330_v56  ;;  %2383 = vmatprep.mubr.f32.mxu1 %v11139_v0  ;;  %v10199_v56 = vunpack.i.l.bf16 %v11841_v61 }
 0x279   :  { %8963 = vmatmul.mubr.msk.f32.gmra.mrb[10].mxu0 %vm2211_vm9, %v8959_v18  ;;  %9333 = vmatprep.subr.bf16.mxu1 %v9332_v58  ;;  %v9344_v38 = vpack.c.bf16 %v10195_v23, %v10194_v24  ;;  %v2631_v43 = vsel %vm478_vm2, %v10180_v20, %v10194_v24 }
 0x27a   :  { %9327 = vmatpush1.bf16.msra.mxu0 %v9326_v57  ;;  %v10208_v13 = vpop.permute.xlu0 %10207  ;;  %v10203_v14 = vpop.permute.xlu1 %10202  ;;  %2300 = vmatprep.mubr.f32.mxu0 %v11139_v0  ;;  %v2634_v57 = vsel %vm478_vm2, %v10185_v17, %v10195_v23  ;;  %v2636_v40 = vsel %vm478_vm2, %v10199_v56, %v10200_v55  ;;  %v2128_v17 = vld [vmem:[%s13480_s3 + $0x10] sm:$0xff] }
 0x27b   :  { %9337 = vmatprep.subr.bf16.mxu0 %v9336_v2  ;;  %8967 = vmatmul.mubr.msk.f32.gmra.mrb[10].mxu1 %vm2211_vm9, %v8959_v18  ;;  %v10210_v33 = vunpack.i.h.bf16 %v10208_v13  ;;  %v10209_v46 = vunpack.i.l.bf16 %v10208_v13  ;;  %v10205_v58 = vunpack.i.h.bf16 %v10203_v14  ;;  %v9346_v41 = vpack.c.bf16 %v2634_v57, %v2631_v43 }
 0x27c   :  { %9335 = vmatpush1.bf16.msra.mxu1 %v9334_v59  ;;  %2389 = vmatprep.mubr.f32.mxu1 %v11139_v0  ;;  %v10204_v59 = vunpack.i.l.bf16 %v10203_v14 }
 0x27d   :  { %8964 = vmatmul.mubr.msk.f32.gmra.mrb[12].mxu0 %vm2211_vm9, %v8960_v60  ;;  %9345 = vmatprep.subr.bf16.mxu1 %v9344_v38  ;;  %v2639_v25 = vsel %vm478_vm2, %v10209_v46, %v10210_v33  ;;  %v2638_v42 = vsel %vm478_vm2, %v10205_v58, %v10209_v46 }
 0x27e   :  { %v10213_v47 = vpop.permute.xlu0 %10212  ;;  %v11874_v48 = vpop.permute.xlu1 %10217  ;;  %2306 = vmatprep.mubr.f32.mxu0 %v11139_v0  ;;  %v2635_v44 = vsel %vm478_vm2, %v10204_v59, %v10199_v56  ;;  %v9340_v45 = vpack.c.bf16 %v2639_v25, %v2636_v40 }
 0x27f   :  { %8968 = vmatmul.mubr.msk.f32.gmra.mrb[12].mxu1 %vm2211_vm9, %v8960_v60  ;;  %v10215_v26 = vunpack.i.h.bf16 %v10213_v47  ;;  %v10214_v28 = vunpack.i.l.bf16 %v10213_v47  ;;  %v10220_v29 = vunpack.i.h.bf16 %v11874_v48  ;;  %v10219_v30 = vunpack.i.l.bf16 %v11874_v48 }
 0x280   :  { %2395 = vmatprep.mubr.f32.mxu1 %v11139_v0  ;;  %v9342_v10 = vpack.c.bf16 %v2638_v42, %v2635_v44 }
 0x281   :  { %8965 = vmatmul.mubr.msk.f32.gmra.mrb[14].mxu0 %vm2211_vm9, %v8961_v53  ;;  %v2637_v51 = vsel %vm478_vm2, %v10200_v55, %v10214_v28  ;;  %v2640_v62 = vsel %vm478_vm2, %v10210_v33, %v10215_v26  ;;  %v2901_v4 = vsel %vm705_vm3, %v10219_v30, %v10220_v29  ;;  %v9348_v8 = vpack.c.bf16 %v10215_v26, %v10214_v28 }
 0x282   :  { %v11892_v31 = vpop.permute.xlu0 %10222  ;;  %v10228_v32 = vpop.permute.xlu1 %10227  ;;  %2478 = vmatprep.mubr.f32.mxu0 %v11139_v0  ;;  %v9350_v16 = vpack.c.bf16 %v2640_v62, %v2637_v51  ;;  %v8980_v51 = vld [vmem:[%s13480_s3 + $0x50] sm:$0xff] }
 0x283   :  { %v10225_v36 = vunpack.i.h.bf16 %v11892_v31  ;;  %v10224_v37 = vunpack.i.l.bf16 %v11892_v31  ;;  %8969 = vmatmul.mubr.msk.f32.gmra.mrb[14].mxu1 %vm2211_vm9, %v8961_v53  ;;  %v10230_v19 = vunpack.i.h.bf16 %v10228_v32  ;;  %v10229_v20 = vunpack.i.l.bf16 %v10228_v32  ;;  %v8979_v32 = vld [vmem:[%s13480_s3 + $0x48] sm:$0xff] }
 0x284   :  { %2567 = vmatprep.mubr.f32.mxu1 %v11139_v0 }
 0x285   :  { %8970 = vmatmul.mubr.msk.f32.vlgmr.msra.gmra.mrb[8].mxu0 %vm2211_vm9, %v2126_v35  ;;  %v2904_v49 = vsel %vm705_vm3, %v10224_v37, %v10225_v36  ;;  %v2903_v23 = vsel %vm705_vm3, %v10230_v19, %v10224_v37  ;;  %v2900_v24 = vsel %vm705_vm3, %v10229_v20, %v10219_v30 }
 0x286   :  { %9339 = vmatpush1.bf16.msra.mxu0 %v9338_v39  ;;  %v10233_v50 = vpop.permute.xlu0 %10232  ;;  %v11909_v63 = vpop.permute.xlu1 %10237  ;;  %2484 = vmatprep.mubr.f32.mxu0 %v11139_v0  ;;  %v9352_v9 = vpack.c.bf16 %v2904_v49, %v2901_v4  ;;  %v9354_v55 = vpack.c.bf16 %v2903_v23, %v2900_v24  ;;  %v8990_v23 = vld [vmem:[%s13480_s3 + $0x60] sm:$0xff] }
 0x287   :  { %9341 = vmatprep.subr.bf16.mxu0 %v9340_v45  ;;  %v10235_v5 = vunpack.i.h.bf16 %v10233_v50  ;;  %v10234_v6 = vunpack.i.l.bf16 %v10233_v50  ;;  %8974 = vmatmul.mubr.msk.f32.vlgmr.msra.gmra.mrb[8].mxu1 %vm2211_vm9, %v2126_v35  ;;  %v10240_v2 = vunpack.i.h.bf16 %v11909_v63  ;;  %v10239_v13 = vunpack.i.l.bf16 %v11909_v63 }
 0x288   :  { %9347 = vmatpush1.bf16.msra.mxu1 %v9346_v41  ;;  %2573 = vmatprep.mubr.f32.mxu1 %v11139_v0 }
 0x289   :  { %8971 = vmatmul.mubr.msk.f32.gmra.mrb[10].mxu0 %vm2211_vm9, %v2127_v3  ;;  %9349 = vmatprep.subr.bf16.mxu1 %v9348_v8  ;;  %v9360_v11 = vpack.c.bf16 %v10235_v5, %v10234_v6  ;;  %v2902_v1 = vsel %vm705_vm3, %v10220_v29, %v10234_v6  ;;  %v2905_v14 = vsel %vm705_vm3, %v10225_v36, %v10235_v5  ;;  %v8981_v6 = vld [vmem:[%s13480_s3 + $0x58] sm:$0xff] }
 0x28a   :  { %9343 = vmatpush1.bf16.msra.mxu0 %v9342_v10  ;;  %v10248_v12 = vpop.permute.xlu0 %10247  ;;  %v10243_v15 = vpop.permute.xlu1 %10242  ;;  %2490 = vmatprep.mubr.f32.mxu0 %v11139_v0  ;;  %v2907_v56 = vsel %vm705_vm3, %v10239_v13, %v10240_v2  ;;  %v9362_v57 = vpack.c.bf16 %v2905_v14, %v2902_v1 }
 0x28b   :  { %9353 = vmatprep.subr.bf16.mxu0 %v9352_v9  ;;  %8975 = vmatmul.mubr.msk.f32.gmra.mrb[10].mxu1 %vm2211_vm9, %v2127_v3  ;;  %v10250_v21 = vunpack.i.h.bf16 %v10248_v12  ;;  %v10249_v22 = vunpack.i.l.bf16 %v10248_v12  ;;  %v10245_v60 = vunpack.i.h.bf16 %v10243_v15  ;;  %v10244_v7 = vunpack.i.l.bf16 %v10243_v15 }
 0x28c   :  { %9351 = vmatpush1.bf16.msra.mxu1 %v9350_v16  ;;  %2579 = vmatprep.mubr.f32.mxu1 %v11139_v0 }
 0x28d   :  { %8972 = vmatmul.mubr.msk.f32.gmra.mrb[12].mxu0 %vm2211_vm9, %v2128_v17  ;;  %9361 = vmatprep.subr.bf16.mxu1 %v9360_v11  ;;  %v2910_v38 = vsel %vm705_vm3, %v10249_v22, %v10250_v21  ;;  %v2909_v58 = vsel %vm705_vm3, %v10245_v60, %v10249_v22  ;;  %v2906_v59 = vsel %vm705_vm3, %v10244_v7, %v10239_v13 }
 0x28e   :  { %v10253_v61 = vpop.permute.xlu0 %10252  ;;  %v11926_v18 = vpop.permute.xlu1 %10257  ;;  %2496 = vmatprep.mubr.f32.mxu0 %v11139_v0  ;;  %v9356_v25 = vpack.c.bf16 %v2910_v38, %v2907_v56  ;;  %v9358_v41 = vpack.c.bf16 %v2909_v58, %v2906_v59 }
 0x28f   :  { %8976 = vmatmul.mubr.msk.f32.gmra.mrb[12].mxu1 %vm2211_vm9, %v2128_v17  ;;  %v10255_v34 = vunpack.i.h.bf16 %v10253_v61  ;;  %v10254_v33 = vunpack.i.l.bf16 %v10253_v61  ;;  %v10260_v46 = vunpack.i.h.bf16 %v11926_v18  ;;  %v10259_v47 = vunpack.i.l.bf16 %v11926_v18 }
 0x290   :  { %2585 = vmatprep.mubr.f32.mxu1 %v11139_v0 }
 0x291   :  { %8973 = vmatmul.mubr.msk.f32.gmra.mrb[14].mxu0 %vm2211_vm9, %v2129_v52  ;;  %v2908_v28 = vsel %vm705_vm3, %v10240_v2, %v10254_v33  ;;  %v2911_v29 = vsel %vm705_vm3, %v10250_v21, %v10255_v34  ;;  %v3172_v35 = vsel %vm932_vm4, %v10259_v47, %v10260_v46  ;;  %v9364_v39 = vpack.c.bf16 %v10255_v34, %v10254_v33 }
 0x292   :  { %v11944_v48 = vpop.permute.xlu0 %10262  ;;  %v10268_v53 = vpop.permute.xlu1 %10267  ;;  %2733 = vmatprep.mubr.f32.mxu0 %v11139_v0  ;;  %v9366_v49 = vpack.c.bf16 %v2911_v29, %v2908_v28  ;;  %v8992_v28 = vld [vmem:[%s13480_s3 + $0x70] sm:$0xff] }
 0x293   :  { %v10265_v27 = vunpack.i.h.bf16 %v11944_v48  ;;  %v10264_v43 = vunpack.i.l.bf16 %v11944_v48  ;;  %8977 = vmatmul.mubr.msk.f32.gmra.mrb[14].mxu1 %vm2211_vm9, %v2129_v52  ;;  %v10270_v62 = vunpack.i.h.bf16 %v10268_v53  ;;  %v10269_v50 = vunpack.i.l.bf16 %v10268_v53  ;;  %v8991_v53 = vld [vmem:[%s13480_s3 + $0x68] sm:$0xff] }
 0x294   :  { %2822 = vmatprep.mubr.f32.mxu1 %v11139_v0 }
 0x295   :  { %8982 = vmatmul.mubr.msk.f32.vlgmr.msra.gmra.mrb[8].mxu0 %vm2211_vm9, %v8978_v54  ;;  %v3175_v26 = vsel %vm932_vm4, %v10264_v43, %v10265_v27  ;;  %v3174_v8 = vsel %vm932_vm4, %v10270_v62, %v10264_v43  ;;  %v3171_v9 = vsel %vm932_vm4, %v10269_v50, %v10259_v47 }
 0x296   :  { %9355 = vmatpush1.bf16.msra.mxu0 %v9354_v55  ;;  %v10273_v30 = vpop.permute.xlu0 %10272  ;;  %v11961_v31 = vpop.permute.xlu1 %10277  ;;  %2739 = vmatprep.mubr.f32.mxu0 %v11139_v0  ;;  %v9368_v40 = vpack.c.bf16 %v3175_v26, %v3172_v35  ;;  %v9370_v2 = vpack.c.bf16 %v3174_v8, %v3171_v9  ;;  %v9002_v8 = vld [vmem:[%s13480_s3 + $0x80] sm:$0xff] }
 0x297   :  { %9357 = vmatprep.subr.bf16.mxu0 %v9356_v25  ;;  %v10275_v36 = vunpack.i.h.bf16 %v10273_v30  ;;  %v10274_v37 = vunpack.i.l.bf16 %v10273_v30  ;;  %8986 = vmatmul.mubr.msk.f32.vlgmr.msra.gmra.mrb[8].mxu1 %vm2211_vm9, %v8978_v54  ;;  %v10280_v11 = vunpack.i.h.bf16 %v11961_v31  ;;  %v10279_v12 = vunpack.i.l.bf16 %v11961_v31 }
 0x298   :  { %9363 = vmatpush1.bf16.msra.mxu1 %v9362_v57  ;;  %2828 = vmatprep.mubr.f32.mxu1 %v11139_v0 }
 0x299   :  { %8983 = vmatmul.mubr.msk.f32.gmra.mrb[10].mxu0 %vm2211_vm9, %v8979_v32  ;;  %9365 = vmatprep.subr.bf16.mxu1 %v9364_v39  ;;  %v9376_v42 = vpack.c.bf16 %v10275_v36, %v10274_v37  ;;  %v3173_v10 = vsel %vm932_vm4, %v10260_v46, %v10274_v37  ;;  %v3176_v15 = vsel %vm932_vm4, %v10265_v27, %v10275_v36  ;;  %v8993_v37 = vld [vmem:[%s13480_s3 + $0x78] sm:$0xff] }
 0x29a   :  { %9359 = vmatpush1.bf16.msra.mxu0 %v9358_v41  ;;  %v10288_v44 = vpop.permute.xlu0 %10287  ;;  %v10283_v45 = vpop.permute.xlu1 %10282  ;;  %2745 = vmatprep.mubr.f32.mxu0 %v11139_v0  ;;  %v3178_v13 = vsel %vm932_vm4, %v10279_v12, %v10280_v11  ;;  %v9378_v14 = vpack.c.bf16 %v3176_v15, %v3173_v10 }
 0x29b   :  { %9369 = vmatprep.subr.bf16.mxu0 %v9368_v40  ;;  %8987 = vmatmul.mubr.msk.f32.gmra.mrb[10].mxu1 %vm2211_vm9, %v8979_v32  ;;  %v10290_v63 = vunpack.i.h.bf16 %v10288_v44  ;;  %v10289_v3 = vunpack.i.l.bf16 %v10288_v44  ;;  %v10285_v16 = vunpack.i.h.bf16 %v10283_v45  ;;  %v10284_v17 = vunpack.i.l.bf16 %v10283_v45 }
 0x29c   :  { %9367 = vmatpush1.bf16.msra.mxu1 %v9366_v49  ;;  %2834 = vmatprep.mubr.f32.mxu1 %v11139_v0 }
 0x29d   :  { %8984 = vmatmul.mubr.msk.f32.gmra.mrb[12].mxu0 %vm2211_vm9, %v8980_v51  ;;  %9377 = vmatprep.subr.bf16.mxu1 %v9376_v42  ;;  %v3181_v19 = vsel %vm932_vm4, %v10289_v3, %v10290_v63  ;;  %v3180_v60 = vsel %vm932_vm4, %v10285_v16, %v10289_v3  ;;  %v3177_v7 = vsel %vm932_vm4, %v10284_v17, %v10279_v12 }
 0x29e   :  { %v10293_v4 = vpop.permute.xlu0 %10292  ;;  %v11978_v5 = vpop.permute.xlu1 %10297  ;;  %2751 = vmatprep.mubr.f32.mxu0 %v11139_v0  ;;  %v9372_v38 = vpack.c.bf16 %v3181_v19, %v3178_v13  ;;  %v9374_v57 = vpack.c.bf16 %v3180_v60, %v3177_v7 }
 0x29f   :  { %8988 = vmatmul.mubr.msk.f32.gmra.mrb[12].mxu1 %vm2211_vm9, %v8980_v51  ;;  %v10295_v20 = vunpack.i.h.bf16 %v10293_v4  ;;  %v10294_v21 = vunpack.i.l.bf16 %v10293_v4  ;;  %v10300_v22 = vunpack.i.h.bf16 %v11978_v5  ;;  %v10299_v61 = vunpack.i.l.bf16 %v11978_v5 }
 0x2a0   :  { %2840 = vmatprep.mubr.f32.mxu1 %v11139_v0 }
 0x2a1   :  { %8985 = vmatmul.mubr.msk.f32.gmra.mrb[14].mxu0 %vm2211_vm9, %v8981_v6  ;;  %v3179_v33 = vsel %vm932_vm4, %v10280_v11, %v10294_v21  ;;  %v3182_v46 = vsel %vm932_vm4, %v10290_v63, %v10295_v20  ;;  %v3443_v54 = vsel %vm1159_vm5, %v10299_v61, %v10300_v22  ;;  %v9380_v55 = vpack.c.bf16 %v10295_v20, %v10294_v21 }
 0x2a2   :  { %v11996_v18 = vpop.permute.xlu0 %10302  ;;  %v10308_v52 = vpop.permute.xlu1 %10307  ;;  %3004 = vmatprep.mubr.f32.mxu0 %v11139_v0  ;;  %v9382_v26 = vpack.c.bf16 %v3182_v46, %v3179_v33  ;;  %v9004_v33 = vld [vmem:[%s13480_s3 + $0x90] sm:$0xff] }
 0x2a3   :  { %v10305_v24 = vunpack.i.h.bf16 %v11996_v18  ;;  %v10304_v1 = vunpack.i.l.bf16 %v11996_v18  ;;  %8989 = vmatmul.mubr.msk.f32.gmra.mrb[14].mxu1 %vm2211_vm9, %v8981_v6  ;;  %v10310_v29 = vunpack.i.h.bf16 %v10308_v52  ;;  %v10309_v30 = vunpack.i.l.bf16 %v10308_v52  ;;  %v9003_v52 = vld [vmem:[%s13480_s3 + $0x88] sm:$0xff] }
 0x2a4   :  { %3093 = vmatprep.mubr.f32.mxu1 %v11139_v0 }
 0x2a5   :  { %8994 = vmatmul.mubr.msk.f32.vlgmr.msra.gmra.mrb[8].mxu0 %vm2211_vm9, %v8990_v23  ;;  %v3446_v34 = vsel %vm1159_vm5, %v10304_v1, %v10305_v24  ;;  %v3445_v39 = vsel %vm1159_vm5, %v10310_v29, %v10304_v1  ;;  %v3442_v40 = vsel %vm1159_vm5, %v10309_v30, %v10299_v61 }
 0x2a6   :  { %9371 = vmatpush1.bf16.msra.mxu0 %v9370_v2  ;;  %v10313_v47 = vpop.permute.xlu0 %10312  ;;  %v12013_v48 = vpop.permute.xlu1 %10317  ;;  %3010 = vmatprep.mubr.f32.mxu0 %v11139_v0  ;;  %v9384_v56 = vpack.c.bf16 %v3446_v34, %v3443_v54  ;;  %v9386_v11 = vpack.c.bf16 %v3445_v39, %v3442_v40  ;;  %v9014_v39 = vld [vmem:[%s13480_s3 + $0xa0] sm:$0xff] }
 0x2a7   :  { %9373 = vmatprep.subr.bf16.mxu0 %v9372_v38  ;;  %v10315_v27 = vunpack.i.h.bf16 %v10313_v47  ;;  %v10314_v43 = vunpack.i.l.bf16 %v10313_v47  ;;  %8998 = vmatmul.mubr.msk.f32.vlgmr.msra.gmra.mrb[8].mxu1 %vm2211_vm9, %v8990_v23  ;;  %v10320_v42 = vunpack.i.h.bf16 %v12013_v48  ;;  %v10319_v44 = vunpack.i.l.bf16 %v12013_v48 }
 0x2a8   :  { %9379 = vmatpush1.bf16.msra.mxu1 %v9378_v14  ;;  %3099 = vmatprep.mubr.f32.mxu1 %v11139_v0 }
 0x2a9   :  { %8995 = vmatmul.mubr.msk.f32.gmra.mrb[10].mxu0 %vm2211_vm9, %v8991_v53  ;;  %9381 = vmatprep.subr.bf16.mxu1 %v9380_v55  ;;  %v9392_v58 = vpack.c.bf16 %v10315_v27, %v10314_v43  ;;  %v3444_v41 = vsel %vm1159_vm5, %v10300_v22, %v10314_v43  ;;  %v3447_v45 = vsel %vm1159_vm5, %v10305_v24, %v10315_v27  ;;  %v9005_v43 = vld [vmem:[%s13480_s3 + $0x98] sm:$0xff] }
 0x2aa   :  { %9375 = vmatpush1.bf16.msra.mxu0 %v9374_v57  ;;  %v10328_v59 = vpop.permute.xlu0 %10327  ;;  %v10323_v25 = vpop.permute.xlu1 %10322  ;;  %3016 = vmatprep.mubr.f32.mxu0 %v11139_v0  ;;  %v3449_v12 = vsel %vm1159_vm5, %v10319_v44, %v10320_v42  ;;  %v9394_v15 = vpack.c.bf16 %v3447_v45, %v3444_v41 }
 0x2ab   :  { %9385 = vmatprep.subr.bf16.mxu0 %v9384_v56  ;;  %8999 = vmatmul.mubr.msk.f32.gmra.mrb[10].mxu1 %vm2211_vm9, %v8991_v53  ;;  %v10330_v31 = vunpack.i.h.bf16 %v10328_v59  ;;  %v10329_v32 = vunpack.i.l.bf16 %v10328_v59  ;;  %v10325_v49 = vunpack.i.h.bf16 %v10323_v25  ;;  %v10324_v51 = vunpack.i.l.bf16 %v10323_v25 }
 0x2ac   :  { %9383 = vmatpush1.bf16.msra.mxu1 %v9382_v26  ;;  %3105 = vmatprep.mubr.f32.mxu1 %v11139_v0 }
 0x2ad   :  { %8996 = vmatmul.mubr.msk.f32.gmra.mrb[12].mxu0 %vm2211_vm9, %v8992_v28  ;;  %9393 = vmatprep.subr.bf16.mxu1 %v9392_v58  ;;  %v3452_v62 = vsel %vm1159_vm5, %v10329_v32, %v10330_v31  ;;  %v3451_v16 = vsel %vm1159_vm5, %v10325_v49, %v10329_v32  ;;  %v3448_v17 = vsel %vm1159_vm5, %v10324_v51, %v10319_v44 }
 0x2ae   :  { %v10333_v35 = vpop.permute.xlu0 %10332  ;;  %v12030_v36 = vpop.permute.xlu1 %10337  ;;  %3022 = vmatprep.mubr.f32.mxu0 %v11139_v0  ;;  %v9388_v19 = vpack.c.bf16 %v3452_v62, %v3449_v12  ;;  %v9390_v14 = vpack.c.bf16 %v3451_v16, %v3448_v17 }
 0x2af   :  { %9000 = vmatmul.mubr.msk.f32.gmra.mrb[12].mxu1 %vm2211_vm9, %v8992_v28  ;;  %v10335_v50 = vunpack.i.h.bf16 %v10333_v35  ;;  %v10334_v63 = vunpack.i.l.bf16 %v10333_v35  ;;  %v10340_v3 = vunpack.i.h.bf16 %v12030_v36  ;;  %v10339_v4 = vunpack.i.l.bf16 %v12030_v36 }
 0x2b0   :  { %3111 = vmatprep.mubr.f32.mxu1 %v11139_v0 }
 0x2b1   :  { %8997 = vmatmul.mubr.msk.f32.gmra.mrb[14].mxu0 %vm2211_vm9, %v8993_v37  ;;  %v3450_v21 = vsel %vm1159_vm5, %v10320_v42, %v10334_v63  ;;  %v3453_v22 = vsel %vm1159_vm5, %v10330_v31, %v10335_v50  ;;  %v3714_v23 = vsel %vm1386_vm6, %v10339_v4, %v10340_v3  ;;  %v9396_v2 = vpack.c.bf16 %v10335_v50, %v10334_v63 }
 0x2b2   :  { %v12048_v5 = vpop.permute.xlu0 %10342  ;;  %v10348_v6 = vpop.permute.xlu1 %10347  ;;  %3275 = vmatprep.mubr.f32.mxu0 %v11139_v0  ;;  %v9398_v34 = vpack.c.bf16 %v3453_v22, %v3450_v21  ;;  %v9016_v21 = vld [vmem:[%s13480_s3 + $0xb0] sm:$0xff] }
 0x2b3   :  { %v10345_v9 = vunpack.i.h.bf16 %v12048_v5  ;;  %v10344_v10 = vunpack.i.l.bf16 %v12048_v5  ;;  %9001 = vmatmul.mubr.msk.f32.gmra.mrb[14].mxu1 %vm2211_vm9, %v8993_v37  ;;  %v10350_v46 = vunpack.i.h.bf16 %v10348_v6  ;;  %v10349_v47 = vunpack.i.l.bf16 %v10348_v6  ;;  %v9015_v6 = vld [vmem:[%s13480_s3 + $0xa8] sm:$0xff] }
 0x2b4   :  { %3364 = vmatprep.mubr.f32.mxu1 %v11139_v0 }
 0x2b5   :  { %9006 = vmatmul.mubr.msk.f32.vlgmr.msra.gmra.mrb[8].mxu0 %vm2211_vm9, %v9002_v8  ;;  %v3717_v20 = vsel %vm1386_vm6, %v10344_v10, %v10345_v9  ;;  %v3716_v55 = vsel %vm1386_vm6, %v10350_v46, %v10344_v10  ;;  %v3713_v56 = vsel %vm1386_vm6, %v10349_v47, %v10339_v4 }
 0x2b6   :  { %9387 = vmatpush1.bf16.msra.mxu0 %v9386_v11  ;;  %v10353_v61 = vpop.permute.xlu0 %10352  ;;  %v12065_v18 = vpop.permute.xlu1 %10357  ;;  %3281 = vmatprep.mubr.f32.mxu0 %v11139_v0  ;;  %v9400_v13 = vpack.c.bf16 %v3717_v20, %v3714_v23  ;;  %v9402_v42 = vpack.c.bf16 %v3716_v55, %v3713_v56  ;;  %v9026_v55 = vld [vmem:[%s13480_s3 + $0xc0] sm:$0xff] }
 0x2b7   :  { %9389 = vmatprep.subr.bf16.mxu0 %v9388_v19  ;;  %v10355_v24 = vunpack.i.h.bf16 %v10353_v61  ;;  %v10354_v1 = vunpack.i.l.bf16 %v10353_v61  ;;  %9010 = vmatmul.mubr.msk.f32.vlgmr.msra.gmra.mrb[8].mxu1 %vm2211_vm9, %v9002_v8  ;;  %v10360_v58 = vunpack.i.h.bf16 %v12065_v18  ;;  %v10359_v59 = vunpack.i.l.bf16 %v12065_v18 }
 0x2b8   :  { %9395 = vmatpush1.bf16.msra.mxu1 %v9394_v15  ;;  %3370 = vmatprep.mubr.f32.mxu1 %v11139_v0 }
 0x2b9   :  { %9007 = vmatmul.mubr.msk.f32.gmra.mrb[10].mxu0 %vm2211_vm9, %v9003_v52  ;;  %9397 = vmatprep.subr.bf16.mxu1 %v9396_v2  ;;  %v9408_v60 = vpack.c.bf16 %v10355_v24, %v10354_v1  ;;  %v3715_v57 = vsel %vm1386_vm6, %v10340_v3, %v10354_v1  ;;  %v3718_v25 = vsel %vm1386_vm6, %v10345_v9, %v10355_v24  ;;  %v9017_v1 = vld [vmem:[%s13480_s3 + $0xb8] sm:$0xff] }
 0x2ba   :  { %9391 = vmatpush1.bf16.msra.mxu0 %v9390_v14  ;;  %v10368_v7 = vpop.permute.xlu0 %10367  ;;  %v10363_v38 = vpop.permute.xlu1 %10362  ;;  %3287 = vmatprep.mubr.f32.mxu0 %v11139_v0  ;;  %v3720_v44 = vsel %vm1386_vm6, %v10359_v59, %v10360_v58  ;;  %v9410_v45 = vpack.c.bf16 %v3718_v25, %v3715_v57 }
 0x2bb   :  { %9401 = vmatprep.subr.bf16.mxu0 %v9400_v13  ;;  %9011 = vmatmul.mubr.msk.f32.gmra.mrb[10].mxu1 %vm2211_vm9, %v9003_v52  ;;  %v10370_v48 = vunpack.i.h.bf16 %v10368_v7  ;;  %v10369_v53 = vunpack.i.l.bf16 %v10368_v7  ;;  %v10365_v26 = vunpack.i.h.bf16 %v10363_v38  ;;  %v10364_v28 = vunpack.i.l.bf16 %v10363_v38 }
 0x2bc   :  { %9399 = vmatpush1.bf16.msra.mxu1 %v9398_v34  ;;  %3376 = vmatprep.mubr.f32.mxu1 %v11139_v0 }
 0x2bd   :  { %9008 = vmatmul.mubr.msk.f32.gmra.mrb[12].mxu0 %vm2211_vm9, %v9004_v33  ;;  %9409 = vmatprep.subr.bf16.mxu1 %v9408_v60  ;;  %v3723_v29 = vsel %vm1386_vm6, %v10369_v53, %v10370_v48  ;;  %v3722_v49 = vsel %vm1386_vm6, %v10365_v26, %v10369_v53  ;;  %v3719_v51 = vsel %vm1386_vm6, %v10364_v28, %v10359_v59 }
 0x2be   :  { %v10373_v54 = vpop.permute.xlu0 %10372  ;;  %v12082_v27 = vpop.permute.xlu1 %10377  ;;  %3293 = vmatprep.mubr.f32.mxu0 %v11139_v0  ;;  %v9404_v62 = vpack.c.bf16 %v3723_v29, %v3720_v44  ;;  %v9406_v15 = vpack.c.bf16 %v3722_v49, %v3719_v51 }
 0x2bf   :  { %9012 = vmatmul.mubr.msk.f32.gmra.mrb[12].mxu1 %vm2211_vm9, %v9004_v33  ;;  %v10375_v30 = vunpack.i.h.bf16 %v10373_v54  ;;  %v10374_v31 = vunpack.i.l.bf16 %v10373_v54  ;;  %v10380_v32 = vunpack.i.h.bf16 %v12082_v27  ;;  %v10379_v35 = vunpack.i.l.bf16 %v12082_v27 }
 0x2c0   :  { %3382 = vmatprep.mubr.f32.mxu1 %v11139_v0 }
 0x2c1   :  { %9009 = vmatmul.mubr.msk.f32.gmra.mrb[14].mxu0 %vm2211_vm9, %v9005_v43  ;;  %v3721_v63 = vsel %vm1386_vm6, %v10360_v58, %v10374_v31  ;;  %v3724_v3 = vsel %vm1386_vm6, %v10370_v48, %v10375_v30  ;;  %v3985_v8 = vsel %vm1613_vm7, %v10379_v35, %v10380_v32  ;;  %v9412_v11 = vpack.c.bf16 %v10375_v30, %v10374_v31 }
 0x2c2   :  { %v12100_v36 = vpop.permute.xlu0 %10382  ;;  %v10388_v37 = vpop.permute.xlu1 %10387  ;;  %3546 = vmatprep.mubr.f32.mxu0 %v11139_v0  ;;  %v9414_v20 = vpack.c.bf16 %v3724_v3, %v3721_v63 }
 0x2c3   :  { %v10385_v40 = vunpack.i.h.bf16 %v12100_v36  ;;  %v10384_v41 = vunpack.i.l.bf16 %v12100_v36  ;;  %9013 = vmatmul.mubr.msk.f32.gmra.mrb[14].mxu1 %vm2211_vm9, %v9005_v43  ;;  %v10390_v22 = vunpack.i.h.bf16 %v10388_v37  ;;  %v10389_v61 = vunpack.i.l.bf16 %v10388_v37  ;;  %v9027_v36 = vld [vmem:[%s13480_s3 + $0xc8] sm:$0xff] }
 0x2c4   :  { %3635 = vmatprep.mubr.f32.mxu1 %v11139_v0 }
 0x2c5   :  { %9018 = vmatmul.mubr.msk.f32.vlgmr.msra.gmra.mrb[8].mxu0 %vm2211_vm9, %v9014_v39  ;;  %v3988_v50 = vsel %vm1613_vm7, %v10384_v41, %v10385_v40  ;;  %v3987_v2 = vsel %vm1613_vm7, %v10390_v22, %v10384_v41  ;;  %v3984_v13 = vsel %vm1613_vm7, %v10389_v61, %v10379_v35 }
 0x2c6   :  { %9403 = vmatpush1.bf16.msra.mxu0 %v9402_v42  ;;  %v10393_v4 = vpop.permute.xlu0 %10392  ;;  %v12117_v5 = vpop.permute.xlu1 %10397  ;;  %3552 = vmatprep.mubr.f32.mxu0 %v11139_v0  ;;  %v9416_v12 = vpack.c.bf16 %v3988_v50, %v3985_v8  ;;  %v9418_v58 = vpack.c.bf16 %v3987_v2, %v3984_v13  ;;  %v9028_v50 = vld [vmem:[%s13480_s3 + $0xd0] sm:$0xff]  ;;  %v9029_v8 = vld [vmem:[%s13480_s3 + $0xd8] sm:$0xff] }
 0x2c7   :  { %9405 = vmatprep.subr.bf16.mxu0 %v9404_v62  ;;  %v10395_v9 = vunpack.i.h.bf16 %v10393_v4  ;;  %v10394_v10 = vunpack.i.l.bf16 %v10393_v4  ;;  %9022 = vmatmul.mubr.msk.f32.vlgmr.msra.gmra.mrb[8].mxu1 %vm2211_vm9, %v9014_v39  ;;  %v10400_v60 = vunpack.i.h.bf16 %v12117_v5  ;;  %v10399_v7 = vunpack.i.l.bf16 %v12117_v5 }
 0x2c8   :  { %9411 = vmatpush1.bf16.msra.mxu1 %v9410_v45  ;;  %3641 = vmatprep.mubr.f32.mxu1 %v11139_v0 }
 0x2c9   :  { %9019 = vmatmul.mubr.msk.f32.gmra.mrb[10].mxu0 %vm2211_vm9, %v9015_v6  ;;  %9413 = vmatprep.subr.bf16.mxu1 %v9412_v11  ;;  %v9424_v16 = vpack.c.bf16 %v10395_v9, %v10394_v10  ;;  %v3986_v14 = vsel %vm1613_vm7, %v10380_v32, %v10394_v10  ;;  %v3989_v38 = vsel %vm1613_vm7, %v10385_v40, %v10395_v9 }
 0x2ca   :  { %9407 = vmatpush1.bf16.msra.mxu0 %v9406_v15  ;;  %v10408_v17 = vpop.permute.xlu0 %10407  ;;  %v10403_v19 = vpop.permute.xlu1 %10402  ;;  %3558 = vmatprep.mubr.f32.mxu0 %v11139_v0  ;;  %v3991_v59 = vsel %vm1613_vm7, %v10399_v7, %v10400_v60  ;;  %v9426_v25 = vpack.c.bf16 %v3989_v38, %v3986_v14  ;;  %v9039_v14 = vld [vmem:[%s13480_s3 + $0xe8] sm:$0xff] }
 0x2cb   :  { %9417 = vmatprep.subr.bf16.mxu0 %v9416_v12  ;;  %9023 = vmatmul.mubr.msk.f32.gmra.mrb[10].mxu1 %vm2211_vm9, %v9015_v6  ;;  %v10410_v18 = vunpack.i.h.bf16 %v10408_v17  ;;  %v10409_v52 = vunpack.i.l.bf16 %v10408_v17  ;;  %v10405_v34 = vunpack.i.h.bf16 %v10403_v19  ;;  %v10404_v33 = vunpack.i.l.bf16 %v10403_v19  ;;  %v9038_v19 = vld [vmem:[%s13480_s3 + $0xe0] sm:$0xff] }
 0x2cc   :  { %9415 = vmatpush1.bf16.msra.mxu1 %v9414_v20  ;;  %3647 = vmatprep.mubr.f32.mxu1 %v11139_v0 }
 0x2cd   :  { %9020 = vmatmul.mubr.msk.f32.gmra.mrb[12].mxu0 %vm2211_vm9, %v9016_v21  ;;  %9425 = vmatprep.subr.bf16.mxu1 %v9424_v16  ;;  %v3994_v46 = vsel %vm1613_vm7, %v10409_v52, %v10410_v18  ;;  %v3993_v26 = vsel %vm1613_vm7, %v10405_v34, %v10409_v52  ;;  %v3990_v28 = vsel %vm1613_vm7, %v10404_v33, %v10399_v7 }
 0x2ce   :  { %v10413_v23 = vpop.permute.xlu0 %10412  ;;  %v12134_v24 = vpop.permute.xlu1 %10417  ;;  %3564 = vmatprep.mubr.f32.mxu0 %v11139_v0  ;;  %v9420_v29 = vpack.c.bf16 %v3994_v46, %v3991_v59  ;;  %v9422_v45 = vpack.c.bf16 %v3993_v26, %v3990_v28  ;;  %v9040_v46 = vld [vmem:[%s13480_s3 + $0xf0] sm:$0xff] }
 0x2cf   :  { %9024 = vmatmul.mubr.msk.f32.gmra.mrb[12].mxu1 %vm2211_vm9, %v9016_v21  ;;  %v10415_v47 = vunpack.i.h.bf16 %v10413_v23  ;;  %v10414_v48 = vunpack.i.l.bf16 %v10413_v23  ;;  %v10420_v53 = vunpack.i.h.bf16 %v12134_v24  ;;  %v10419_v54 = vunpack.i.l.bf16 %v12134_v24 }
 0x2d0   :  { %3653 = vmatprep.mubr.f32.mxu1 %v11139_v0 }
 0x2d1   :  { %9021 = vmatmul.mubr.msk.f32.gmra.mrb[14].mxu0 %vm2211_vm9, %v9017_v1  ;;  %v3992_v31 = vsel %vm1613_vm7, %v10400_v60, %v10414_v48  ;;  %v3995_v32 = vsel %vm1613_vm7, %v10410_v18, %v10415_v47  ;;  %v4256_v37 = vsel %vm1840_vm8, %v10419_v54, %v10420_v53  ;;  %v9428_v41 = vpack.c.bf16 %v10415_v47, %v10414_v48  ;;  %v9041_v47 = vld [vmem:[%s13480_s3 + $0xf8] sm:$0xff]  ;;  %v9050_v48 = vld [vmem:[%s13480_s3 + $0x100] sm:$0xff] }
 0x2d2   :  { %v12152_v27 = vpop.permute.xlu0 %10422  ;;  %v10428_v43 = vpop.permute.xlu1 %10427  ;;  %3817 = vmatprep.mubr.f32.mxu0 %v11139_v0  ;;  %v9430_v62 = vpack.c.bf16 %v3995_v32, %v3992_v31 }
 0x2d3   :  { %v10425_v56 = vunpack.i.h.bf16 %v12152_v27  ;;  %v10424_v57 = vunpack.i.l.bf16 %v12152_v27  ;;  %9025 = vmatmul.mubr.msk.f32.gmra.mrb[14].mxu1 %vm2211_vm9, %v9017_v1  ;;  %v10430_v63 = vunpack.i.h.bf16 %v10428_v43  ;;  %v10429_v3 = vunpack.i.l.bf16 %v10428_v43  ;;  %v9053_v27 = vld [vmem:[%s13480_s3 + $0x118] sm:$0xff] }
 0x2d4   :  { %3906 = vmatprep.mubr.f32.mxu1 %v11139_v0 }
 0x2d5   :  { %9030 = vmatmul.mubr.msk.f32.vlgmr.msra.gmra.mrb[8].mxu0 %vm2211_vm9, %v9026_v55  ;;  %v4259_v30 = vsel %vm1840_vm8, %v10424_v57, %v10425_v56  ;;  %v4258_v12 = vsel %vm1840_vm8, %v10430_v63, %v10424_v57  ;;  %v4255_v15 = vsel %vm1840_vm8, %v10429_v3, %v10419_v54  ;;  %v9052_v54 = vld [vmem:[%s13480_s3 + $0x110] sm:$0xff] }
 0x2d6   :  { %9419 = vmatpush1.bf16.msra.mxu0 %v9418_v58  ;;  %v10433_v35 = vpop.permute.xlu0 %10432  ;;  %3823 = vmatprep.mubr.f32.mxu0 %v11139_v0  ;;  %v9432_v42 = vpack.c.bf16 %v4259_v30, %v4256_v37  ;;  %v10438_v44 = vpop.permute.xlu1 %10437  ;;  %v9434_v52 = vpack.c.bf16 %v4258_v12, %v4255_v15 }
 0x2d7   :  { %9421 = vmatprep.subr.bf16.mxu0 %v9420_v29  ;;  %v10435_v39 = vunpack.i.h.bf16 %v10433_v35  ;;  %v10434_v40 = vunpack.i.l.bf16 %v10433_v35  ;;  %9034 = vmatmul.mubr.msk.f32.vlgmr.msra.gmra.mrb[8].mxu1 %vm2211_vm9, %v9026_v55  ;;  %v10440_v9 = vunpack.i.h.bf16 %v10438_v44  ;;  %v10439_v10 = vunpack.i.l.bf16 %v10438_v44 }
 0x2d8   :  { %9427 = vmatpush1.bf16.msra.mxu1 %v9426_v25  ;;  %3912 = vmatprep.mubr.f32.mxu1 %v11139_v0 }
 0x2d9   :  { %9031 = vmatmul.mubr.msk.f32.gmra.mrb[10].mxu0 %vm2211_vm9, %v9027_v36  ;;  %9429 = vmatprep.subr.bf16.mxu1 %v9428_v41  ;;  %v9440_v49 = vpack.c.bf16 %v10435_v39, %v10434_v40  ;;  %v4257_v21 = vsel %vm1840_vm8, %v10420_v53, %v10434_v40  ;;  %v4260_v22 = vsel %vm1840_vm8, %v10425_v56, %v10435_v39  ;;  %v9051_v53 = vld [vmem:[%s13480_s3 + $0x108] sm:$0xff] }
 0x2da   :  { %9423 = vmatpush1.bf16.msra.mxu0 %v9422_v45  ;;  %v10448_v51 = vpop.permute.xlu0 %10447  ;;  %3829 = vmatprep.mubr.f32.mxu0 %v11139_v0  ;;  %v10443_v6 = vpop.permute.xlu1 %10442  ;;  %v4262_v23 = vsel %vm1840_vm8, %v10439_v10, %v10440_v9  ;;  %v9442_v13 = vpack.c.bf16 %v4260_v22, %v4257_v21 }
 0x2db   :  { %9433 = vmatprep.subr.bf16.mxu0 %v9432_v42  ;;  %9035 = vmatmul.mubr.msk.f32.gmra.mrb[10].mxu1 %vm2211_vm9, %v9027_v36  ;;  %v10450_v4 = vunpack.i.h.bf16 %v10448_v51  ;;  %v10449_v5 = vunpack.i.l.bf16 %v10448_v51  ;;  %v10445_v16 = vunpack.i.h.bf16 %v10443_v6  ;;  %v10444_v17 = vunpack.i.l.bf16 %v10443_v6 }
 0x2dc   :  { %9431 = vmatpush1.bf16.msra.mxu1 %v9430_v62  ;;  %3918 = vmatprep.mubr.f32.mxu1 %v11139_v0 }
 0x2dd   :  { %9032 = vmatmul.mubr.msk.f32.gmra.mrb[12].mxu0 %vm2211_vm9, %v9028_v50  ;;  %9441 = vmatprep.subr.bf16.mxu1 %v9440_v49  ;;  %v4265_v20 = vsel %vm1840_vm8, %v10449_v5, %v10450_v4  ;;  %v4264_v1 = vsel %vm1840_vm8, %v10445_v16, %v10449_v5  ;;  %v4261_v2 = vsel %vm1840_vm8, %v10444_v17, %v10439_v10 }
 0x2de   :  { %3835 = vmatprep.mubr.f32.mxu0 %v11139_v0  ;;  %v10453_v11 = vpop.permute.xlu0 %10452  ;;  %v9436_v24 = vpack.c.bf16 %v4265_v20, %v4262_v23  ;;  %v9438_v34 = vpack.c.bf16 %v4264_v1, %v4261_v2 }
 0x2df   :  { %9036 = vmatmul.mubr.msk.f32.gmra.mrb[12].mxu1 %vm2211_vm9, %v9028_v50  ;;  %v10455_v61 = vunpack.i.h.bf16 %v10453_v11  ;;  %v10454_v18 = vunpack.i.l.bf16 %v10453_v11 }
 0x2e0   :  { %3924 = vmatprep.mubr.f32.mxu1 %v11139_v0 }
 0x2e1   :  { %9033 = vmatmul.mubr.msk.f32.gmra.mrb[14].mxu0 %vm2211_vm9, %v9029_v8  ;;  %v4263_v60 = vsel %vm1840_vm8, %v10440_v9, %v10454_v18  ;;  %v4266_v7 = vsel %vm1840_vm8, %v10450_v4, %v10455_v61  ;;  %v9444_v38 = vpack.c.bf16 %v10455_v61, %v10454_v18 }
 0x2e2   :  { %4088 = vmatprep.mubr.f32.mxu0 %v11139_v0  ;;  %v9446_v33 = vpack.c.bf16 %v4266_v7, %v4263_v60 }
 0x2e3   :  { %9037 = vmatmul.mubr.msk.f32.gmra.mrb[14].mxu1 %vm2211_vm9, %v9029_v8 }
 0x2e4   :  { %4177 = vmatprep.mubr.f32.mxu1 %v11139_v0 }
 0x2e5   :  { %9042 = vmatmul.mubr.msk.f32.vlgmr.msra.gmra.mrb[8].mxu0 %vm2211_vm9, %v9038_v19 }
 0x2e6   :  { %9435 = vmatpush1.bf16.msra.mxu0 %v9434_v52  ;;  %4094 = vmatprep.mubr.f32.mxu0 %v11139_v0 }
 0x2e7   :  { %9437 = vmatprep.subr.bf16.mxu0 %v9436_v24  ;;  %9046 = vmatmul.mubr.msk.f32.vlgmr.msra.gmra.mrb[8].mxu1 %vm2211_vm9, %v9038_v19 }
 0x2e8   :  { %9443 = vmatpush1.bf16.msra.mxu1 %v9442_v13  ;;  %4183 = vmatprep.mubr.f32.mxu1 %v11139_v0 }
 0x2e9   :  { %9043 = vmatmul.mubr.msk.f32.gmra.mrb[10].mxu0 %vm2211_vm9, %v9039_v14  ;;  %9445 = vmatprep.subr.bf16.mxu1 %v9444_v38 }
 0x2ea   :  { %9439 = vmatpush1.bf16.msra.mxu0 %v9438_v34  ;;  %4100 = vmatprep.mubr.f32.mxu0 %v11139_v0 }
 0x2eb   :  { %9047 = vmatmul.mubr.msk.f32.gmra.mrb[10].mxu1 %vm2211_vm9, %v9039_v14  ;;  %v4492_v43 = vpop.permute.xlu1 %4491 }
 0x2ec   :  { %9447 = vmatpush1.bf16.msra.mxu1 %v9446_v33  ;;  %4189 = vmatprep.mubr.f32.mxu1 %v11139_v0 }
 0x2ed   :  { %9044 = vmatmul.mubr.msk.f32.gmra.mrb[12].mxu0 %vm2211_vm9, %v9040_v46 }
 0x2ee   :  { %4106 = vmatprep.mubr.f32.mxu0 %v11139_v0 }
 0x2ef   :  { %9048 = vmatmul.mubr.msk.f32.gmra.mrb[12].mxu1 %vm2211_vm9, %v9040_v46  ;;  %v4497_v28 = vpop.permute.xlu0 %4496  ;;  %v4502_v62 = vpop.permute.xlu1 %4501 }
 0x2f0   :  { %4195 = vmatprep.mubr.f32.mxu1 %v11139_v0 }
 0x2f1   :  { %9045 = vmatmul.mubr.msk.f32.gmra.mrb[14].mxu0 %vm2211_vm9, %v9041_v47 }
 0x2f2   :  { %4359 = vmatprep.mubr.f32.mxu0 %v11139_v0 }
 0x2f3   :  { %9049 = vmatmul.mubr.msk.f32.gmra.mrb[14].mxu1 %vm2211_vm9, %v9041_v47  ;;  %v4507_v18 = vpop.permute.xlu0 %4506 }
 0x2f4   :  { %4448 = vmatprep.mubr.f32.mxu1 %v11139_v0 }
 0x2f5   :  { %9054 = vmatmul.mubr.msk.f32.vlgmr.msra.gmra.mrb[8].mxu0 %vm2211_vm9, %v9050_v48 }
 0x2f6   :  { %4365 = vmatprep.mubr.f32.mxu0 %v11139_v0 }
 0x2f7   :  { %9058 = vmatmul.mubr.msk.f32.vlgmr.msra.gmra.mrb[8].mxu1 %vm2211_vm9, %v9050_v48 }
 0x2f8   :  { %4454 = vmatprep.mubr.f32.mxu1 %v11139_v0 }
 0x2f9   :  { %9055 = vmatmul.mubr.msk.f32.gmra.mrb[10].mxu0 %vm2211_vm9, %v9051_v53 }
 0x2fa   :  { %4371 = vmatprep.mubr.f32.mxu0 %v11139_v0 }
 0x2fb   :  { %9059 = vmatmul.mubr.msk.f32.gmra.mrb[10].mxu1 %vm2211_vm9, %v9051_v53 }
 0x2fc   :  { %4460 = vmatprep.mubr.f32.mxu1 %v11139_v0 }
 0x2fd   :  { %9056 = vmatmul.mubr.msk.f32.gmra.mrb[12].mxu0 %vm2211_vm9, %v9052_v54 }
 0x2fe   :  { %4377 = vmatprep.mubr.f32.mxu0 %v11139_v0 }
 0x2ff   :  { %9060 = vmatmul.mubr.msk.f32.gmra.mrb[12].mxu1 %vm2211_vm9, %v9052_v54 }
 0x300   :  { %4466 = vmatprep.mubr.f32.mxu1 %v11139_v0 }
 0x301   :  { %9057 = vmatmul.mubr.msk.f32.gmra.mrb[14].mxu0 %vm2211_vm9, %v9053_v27 }
 0x302   :  { %4722 = vmatprep.mubr.f32.mxu0 %v11139_v0 }
 0x303   :  { %9061 = vmatmul.mubr.msk.f32.gmra.mrb[14].mxu1 %vm2211_vm9, %v9053_v27 }
 0x304   :  { %4811 = vmatprep.mubr.f32.mxu1 %v11139_v0 }
 0x3c8   :  { %v4361_v55 = vpop.f32.mrb[8].mxu0 }
 0x3c9   :  { %v4509_v56 = vadd.f32 %v4492_v43, %v4361_v55  ;;  %v4363_v57 = vpop.f32.mrb[9].mxu0 }
 0x3ca   :  { %v4510_v58 = vadd.f32 %v4492_v43, %v4363_v57  ;;  %v4450_v59 = vpop.f32.mrb[8].mxu1 }
 0x3cb   :  { %v4511_v25 = vadd.f32 %v4492_v43, %v4450_v59  ;;  %v4452_v26 = vpop.f32.mrb[9].mxu1  ;;  %v4525_v29 = vmul.f32 0.2, %v4509_v56 }
 0x3cc   :  { %v4526_v30 = vmul.f32 0.2, %v4510_v58  ;;  %v4367_v31 = vpop.f32.mrb[10].mxu0  ;;  %v4512_v32 = vadd.f32 %v4492_v43, %v4452_v26 }
 0x3cd   :  { %v4527_v35 = vmul.f32 0.2, %v4511_v25  ;;  %v4513_v36 = vadd.f32 %v4497_v28, %v4367_v31  ;;  %v4369_v37 = vpop.f32.mrb[11].mxu0  ;;  %v12272_v50 = vmax.f32 %v4509_v56, %v4525_v29 }
 0x3ce   :  { %v4528_v39 = vmul.f32 0.2, %v4512_v32  ;;  %v4514_v40 = vadd.f32 %v4497_v28, %v4369_v37  ;;  %v4456_v41 = vpop.f32.mrb[10].mxu1  ;;  %v12268_v42 = vmax.f32 %v4510_v58, %v4526_v30 }
 0x3cf   :  { %v12270_v44 = vmax.f32 %v4511_v25, %v4527_v35  ;;  %v4529_v45 = vmul.f32 0.2, %v4513_v36  ;;  %v4515_v49 = vadd.f32 %v4497_v28, %v4456_v41  ;;  %v4458_v51 = vpop.f32.mrb[11].mxu1 }
 0x3d0   :  { %v12274_v63 = vmax.f32 %v4512_v32, %v4528_v39  ;;  %v4530_v3 = vmul.f32 0.2, %v4514_v40  ;;  %v4373_v4 = vpop.f32.mrb[12].mxu0  ;;  %v4516_v5 = vadd.f32 %v4497_v28, %v4458_v51 }
 0x3d1   :  { %v12276_v6 = vmax.f32 %v4513_v36, %v4529_v45  ;;  %v4531_v8 = vmul.f32 0.2, %v4515_v49  ;;  %v4517_v9 = vadd.f32 %v4502_v62, %v4373_v4  ;;  %v4375_v10 = vpop.f32.mrb[13].mxu0  ;;  %v12280_v11 = vpack.i.bf16 %v12270_v44, %v12268_v42 }
 0x3d2   :  { %v12282_v12 = vmax.f32 %v4514_v40, %v4530_v3  ;;  %v4532_v15 = vmul.f32 0.2, %v4516_v5  ;;  %v4518_v16 = vadd.f32 %v4502_v62, %v4375_v10  ;;  %v4462_v17 = vpop.f32.mrb[12].mxu1 }
 0x3d3   :  { %v12284_v19 = vmax.f32 %v4515_v49, %v4531_v8  ;;  %v4533_v20 = vmul.f32 0.2, %v4517_v9  ;;  %v4519_v21 = vadd.f32 %v4502_v62, %v4462_v17  ;;  %v4464_v22 = vpop.f32.mrb[13].mxu1  ;;  %10457 = vrot.lane.b32.xlu1 %v12280_v11, %s11140_s27  ;;  %v12290_v61 = vpack.i.bf16 %v12276_v6, %v12272_v50 }
 0x3d4   :  { %v12292_v52 = vmax.f32 %v4516_v5, %v4532_v15  ;;  %v4534_v23 = vmul.f32 0.2, %v4518_v16  ;;  %v4520_v1 = vadd.f32 %v4502_v62, %v4464_v22  ;;  %v4379_v2 = vpop.f32.mrb[14].mxu0  ;;  %v9464_v35 = vpack.c.bf16 %v12282_v12, %v12268_v42 }
 0x3d5   :  { %v12294_v24 = vmax.f32 %v4517_v9, %v4533_v20  ;;  %v4535_v13 = vmul.f32 0.2, %v4519_v21  ;;  %v4521_v14 = vadd.f32 %v4507_v18, %v4379_v2  ;;  %v4381_v60 = vpop.f32.mrb[15].mxu0  ;;  %v12298_v7 = vpack.i.bf16 %v12284_v19, %v12282_v12  ;;  %v4567_v12 = vld [vmem:[#allocation2 + $0x28] sm:$0xff] }
 0x3d6   :  { %v12300_v38 = vmax.f32 %v4518_v16, %v4534_v23  ;;  %v4536_v34 = vmul.f32 0.2, %v4520_v1  ;;  %v4522_v33 = vadd.f32 %v4507_v18, %v4381_v60  ;;  %v4468_v46 = vpop.f32.mrb[14].mxu1  ;;  %v12304_v47 = vpack.i.bf16 %v12292_v52, %v12274_v63  ;;  %v4557_v23 = vld [vmem:[%s13483_s6] sm:$0xff] }
 0x3d7   :  { %v12306_v48 = vmax.f32 %v4519_v21, %v4535_v13  ;;  %v4537_v53 = vmul.f32 0.2, %v4521_v14  ;;  %v4523_v54 = vadd.f32 %v4507_v18, %v4468_v46  ;;  %v4470_v27 = vpop.f32.mrb[15].mxu1  ;;  %10467 = vrot.lane.b32.xlu1 %v12290_v61, %s11140_s27  ;;  %v9466_v36 = vpack.c.bf16 %v12276_v6, %v12272_v50 }
 0x3d8   :  { %v12310_v43 = vmax.f32 %v4520_v1, %v4536_v34  ;;  %v4538_v55 = vmul.f32 0.2, %v4522_v33  ;;  %v4524_v56 = vadd.f32 %v4507_v18, %v4470_v27  ;;  %10462 = vrot.lane.b32.xlu0 %v12304_v47, %s11140_s27  ;;  %v9472_v37 = vpack.c.bf16 %v12292_v52, %v12274_v63 }
 0x3d9   :  { %v12314_v57 = vmax.f32 %v4521_v14, %v4537_v53  ;;  %v4539_v58 = vmul.f32 0.2, %v4523_v54  ;;  %v12318_v59 = vpack.i.bf16 %v12306_v48, %v12300_v38  ;;  %v9474_v40 = vpack.c.bf16 %v12284_v19, %v12270_v44 }
 0x3da   :  { %v12320_v25 = vmax.f32 %v4522_v33, %v4538_v55  ;;  %v4540_v26 = vmul.f32 0.2, %v4524_v56 }
 0x3db   :  { %v12322_v28 = vmax.f32 %v4523_v54, %v4539_v58  ;;  %10477 = vrot.lane.b32.xlu1 %v12318_v59, %s11140_s27  ;;  %v12328_v29 = vpack.i.bf16 %v12314_v57, %v12294_v24  ;;  %v9470_v41 = vpack.c.bf16 %v12314_v57, %v12294_v24  ;;  %v4559_v58 = vld [vmem:[%s13483_s6 + $0x10] sm:$0xff] }
 0x3dc   :  { %v12330_v30 = vmax.f32 %v4524_v56, %v4540_v26  ;;  %10472 = vrot.lane.b32.xlu0 %v12298_v7, %s11140_s27  ;;  %v9468_v39 = vpack.c.bf16 %v12320_v25, %v12300_v38  ;;  %v4568_v38 = vld [vmem:[#allocation2 + $0x30] sm:$0xff] }
 0x3dd   :  { %v12336_v31 = vpack.i.bf16 %v12322_v28, %v12320_v25  ;;  %v9478_v49 = vpack.c.bf16 %v12322_v28, %v12306_v48 }
 0x3de   :  { %v12340_v32 = vpack.i.bf16 %v12330_v30, %v12310_v43  ;;  %v9476_v45 = vpack.c.bf16 %v12330_v30, %v12310_v43 }
 0x3df   :  { %10482 = vrot.lane.b32.xlu1 %v12328_v29, %s11140_s27 }
 0x3e0   :  { %10487 = vrot.lane.b32.xlu0 %v12336_v31, %s11140_s27 }
 0x3e3   :  { %10497 = vrot.lane.b32.xlu1 %v12280_v11, %s11141_s10 }
 0x3e4   :  { %10492 = vrot.lane.b32.xlu0 %v12340_v32, %s11140_s27 }
 0x3e7   :  { %10507 = vrot.lane.b32.xlu1 %v12290_v61, %s11141_s10 }
 0x3e8   :  { %10502 = vrot.lane.b32.xlu0 %v12298_v7, %s11141_s10 }
 0x3eb   :  { %10517 = vrot.lane.b32.xlu1 %v12318_v59, %s11141_s10 }
 0x3ec   :  { %10512 = vrot.lane.b32.xlu0 %v12304_v47, %s11141_s10 }
 0x3ef   :  { %10522 = vrot.lane.b32.xlu1 %v12328_v29, %s11141_s10 }
 0x3f0   :  { %10527 = vrot.lane.b32.xlu0 %v12336_v31, %s11141_s10 }
 0x3f3   :  { %10537 = vrot.lane.b32.xlu1 %v12280_v11, %s11142_s0 }
 0x3f4   :  { %10532 = vrot.lane.b32.xlu0 %v12340_v32, %s11141_s10 }
 0x3f7   :  { %10547 = vrot.lane.b32.xlu1 %v12290_v61, %s11142_s0 }
 0x3f8   :  { %10542 = vrot.lane.b32.xlu0 %v12298_v7, %s11142_s0 }
 0x3fb   :  { %10557 = vrot.lane.b32.xlu1 %v12318_v59, %s11142_s0 }
 0x3fc   :  { %10552 = vrot.lane.b32.xlu0 %v12304_v47, %s11142_s0 }
 0x3ff   :  { %10562 = vrot.lane.b32.xlu1 %v12328_v29, %s11142_s0 }
 0x400   :  { %10567 = vrot.lane.b32.xlu0 %v12336_v31, %s11142_s0 }
 0x403   :  { %10577 = vrot.lane.b32.xlu1 %v12280_v11, %s11143_s11 }
 0x404   :  { %10572 = vrot.lane.b32.xlu0 %v12340_v32, %s11142_s0 }
 0x407   :  { %10587 = vrot.lane.b32.xlu1 %v12290_v61, %s11143_s11 }
 0x408   :  { %10582 = vrot.lane.b32.xlu0 %v12298_v7, %s11143_s11 }
 0x40b   :  { %10597 = vrot.lane.b32.xlu1 %v12318_v59, %s11143_s11 }
 0x40c   :  { %10592 = vrot.lane.b32.xlu0 %v12304_v47, %s11143_s11 }
 0x40f   :  { %10602 = vrot.lane.b32.xlu1 %v12328_v29, %s11143_s11 }
 0x410   :  { %10607 = vrot.lane.b32.xlu0 %v12336_v31, %s11143_s11 }
 0x413   :  { %10617 = vrot.lane.b32.xlu1 %v12280_v11, %s11144_s12 }
 0x414   :  { %10612 = vrot.lane.b32.xlu0 %v12340_v32, %s11143_s11 }
 0x417   :  { %10627 = vrot.lane.b32.xlu1 %v12290_v61, %s11144_s12 }
 0x418   :  { %10622 = vrot.lane.b32.xlu0 %v12298_v7, %s11144_s12 }
 0x41b   :  { %10637 = vrot.lane.b32.xlu1 %v12318_v59, %s11144_s12 }
 0x41c   :  { %10632 = vrot.lane.b32.xlu0 %v12304_v47, %s11144_s12 }
 0x41f   :  { %10642 = vrot.lane.b32.xlu1 %v12328_v29, %s11144_s12 }
 0x420   :  { %10647 = vrot.lane.b32.xlu0 %v12336_v31, %s11144_s12 }
 0x423   :  { %10657 = vrot.lane.b32.xlu1 %v12280_v11, %s11145_s13 }
 0x424   :  { %10652 = vrot.lane.b32.xlu0 %v12340_v32, %s11144_s12 }
 0x427   :  { %10667 = vrot.lane.b32.xlu1 %v12290_v61, %s11145_s13 }
 0x428   :  { %10662 = vrot.lane.b32.xlu0 %v12298_v7, %s11145_s13 }
 0x42b   :  { %10677 = vrot.lane.b32.xlu1 %v12318_v59, %s11145_s13 }
 0x42c   :  { %10672 = vrot.lane.b32.xlu0 %v12304_v47, %s11145_s13 }
 0x42f   :  { %10682 = vrot.lane.b32.xlu1 %v12328_v29, %s11145_s13 }
 0x430   :  { %10687 = vrot.lane.b32.xlu0 %v12336_v31, %s11145_s13 }
 0x433   :  { %10697 = vrot.lane.b32.xlu1 %v12280_v11, %s11146_s14 }
 0x434   :  { %10692 = vrot.lane.b32.xlu0 %v12340_v32, %s11145_s13 }
 0x437   :  { %10707 = vrot.lane.b32.xlu1 %v12290_v61, %s11146_s14 }
 0x438   :  { %10702 = vrot.lane.b32.xlu0 %v12298_v7, %s11146_s14 }
 0x43b   :  { %10717 = vrot.lane.b32.xlu1 %v12318_v59, %s11146_s14 }
 0x43c   :  { %10712 = vrot.lane.b32.xlu0 %v12304_v47, %s11146_s14 }
 0x43f   :  { %10722 = vrot.lane.b32.xlu1 %v12328_v29, %s11146_s14 }
 0x440   :  { %10727 = vrot.lane.b32.xlu0 %v12336_v31, %s11146_s14 }
 0x443   :  { %10737 = vrot.lane.b32.xlu1 %v12280_v11, %s11147_s15 }
 0x444   :  { %10732 = vrot.lane.b32.xlu0 %v12340_v32, %s11146_s14 }
 0x445   :  { %v10458_v51 = vpop.permute.xlu1 %10457 }
 0x446   :  { %v10460_v8 = vunpack.i.h.bf16 %v10458_v51  ;;  %v10459_v9 = vunpack.i.l.bf16 %v10458_v51 }
 0x447   :  { %10747 = vrot.lane.b32.xlu1 %v12290_v61, %s11147_s15 }
 0x448   :  { %10742 = vrot.lane.b32.xlu0 %v12298_v7, %s11147_s15  ;;  %v4619_v1 = vsel %vm76_vm0, %v10459_v9, %v10460_v8 }
 0x449   :  { %v10468_v62 = vpop.permute.xlu1 %10467 }
 0x44a   :  { %v10463_v3 = vpop.permute.xlu0 %10462  ;;  %v10469_v10 = vunpack.i.l.bf16 %v10468_v62  ;;  %v10470_v17 = vunpack.i.h.bf16 %v10468_v62  ;;  %v4558_v62 = vld [vmem:[%s13483_s6 + $0x8] sm:$0xff] }
 0x44b   :  { %v10465_v4 = vunpack.i.h.bf16 %v10463_v3  ;;  %v10464_v5 = vunpack.i.l.bf16 %v10463_v3  ;;  %10757 = vrot.lane.b32.xlu1 %v12318_v59, %s11147_s15 }
 0x44c   :  { %10752 = vrot.lane.b32.xlu0 %v12304_v47, %s11147_s15  ;;  %v4618_v22 = vsel %vm76_vm0, %v10469_v10, %v10459_v9 }
 0x44d   :  { %v10478_v11 = vpop.permute.xlu1 %10477  ;;  %v9456_v15 = vpack.c.bf16 %v10465_v4, %v10464_v5  ;;  %v4620_v61 = vsel %vm76_vm0, %v10460_v8, %v10464_v5 }
 0x44e   :  { %v10473_v16 = vpop.permute.xlu0 %10472  ;;  %v10480_v18 = vunpack.i.h.bf16 %v10478_v11  ;;  %v10479_v2 = vunpack.i.l.bf16 %v10478_v11 }
 0x44f   :  { %v10475_v20 = vunpack.i.h.bf16 %v10473_v16  ;;  %v10474_v21 = vunpack.i.l.bf16 %v10473_v16  ;;  %9457 = vmatprep.subr.bf16.mxu1 %v9456_v15  ;;  %10762 = vrot.lane.b32.xlu1 %v12328_v29, %s11147_s15  ;;  %v4566_v15 = vld [vmem:[#allocation2 + $0x20] sm:$0xff] }
 0x450   :  { %10767 = vrot.lane.b32.xlu0 %v12336_v31, %s11147_s15  ;;  %v4625_v29 = vsel %vm76_vm0, %v10479_v2, %v10480_v18 }
 0x451   :  { %v4623_v13 = vsel %vm76_vm0, %v10475_v20, %v10465_v4  ;;  %v4621_v14 = vsel %vm76_vm0, %v10470_v17, %v10474_v21  ;;  %v10483_v60 = vpop.permute.xlu1 %10482  ;;  %v4622_v7 = vsel %vm76_vm0, %v10474_v21, %v10475_v20  ;;  %v4560_v17 = vld [vmem:[%s13483_s6 + $0x18] sm:$0xff] }
 0x452   :  { %v10485_v34 = vunpack.i.h.bf16 %v10483_v60  ;;  %v10484_v33 = vunpack.i.l.bf16 %v10483_v60  ;;  %v10488_v46 = vpop.permute.xlu0 %10487  ;;  %v9448_v47 = vpack.c.bf16 %v4622_v7, %v4619_v1  ;;  %v9458_v53 = vpack.c.bf16 %v4623_v13, %v4620_v61  ;;  %v4561_v60 = vld [vmem:[#allocation2] sm:$0xff] }
 0x453   :  { %v10490_v54 = vunpack.i.h.bf16 %v10488_v46  ;;  %v10489_v27 = vunpack.i.l.bf16 %v10488_v46  ;;  %6925 = vperm.xlu1 %10135, %v4557_v23   ;;  %v9450_v55 = vpack.c.bf16 %v4621_v14, %v4618_v22 }
 0x454   :  { %v4624_v56 = vsel %vm76_vm0, %v10484_v33, %v10479_v2  ;;  %9449 = vmatprep.subr.bf16.mxu0 %v9448_v47  ;;  %9459 = vmatpush1.bf16.msra.mxu1 %v9458_v53 }
 0x455   :  { %v4627_v59 = vsel %vm76_vm0, %v10485_v34, %v10489_v27  ;;  %10772 = vrot.lane.b32.xlu0 %v12340_v32, %s11147_s15  ;;  %9451 = vmatpush1.bf16.msra.mxu0 %v9450_v55  ;;  %v12490_v26 = vpop.permute.xlu1 %10497  ;;  %v4628_v31 = vsel %vm76_vm0, %v10489_v27, %v10490_v54 }
 0x456   :  { %v10493_v51 = vpop.permute.xlu0 %10492  ;;  %v9452_v3 = vpack.c.bf16 %v4628_v31, %v4625_v29  ;;  %v9454_v4 = vpack.c.bf16 %v4627_v59, %v4624_v56  ;;  %v10500_v21 = vunpack.i.h.bf16 %v12490_v26  ;;  %v10499_v22 = vunpack.i.l.bf16 %v12490_v26  ;;  %v4562_v29 = vld [vmem:[#allocation2 + $0x8] sm:$0xff] }
 0x457   :  { %v10495_v5 = vunpack.i.h.bf16 %v10493_v51  ;;  %v10494_v8 = vunpack.i.l.bf16 %v10493_v51  ;;  %6935 = vperm.xlu1 %10135, %v4559_v58  }
 0x458   :  { %9453 = vmatprep.subr.bf16.mxu0 %v9452_v3  ;;  %v5064_v50 = vsel %vm478_vm2, %v10499_v22, %v10500_v21 }
 0x459   :  { %v4626_v32 = vsel %vm76_vm0, %v10480_v18, %v10494_v8  ;;  %v4629_v9 = vsel %vm76_vm0, %v10490_v54, %v10495_v5  ;;  %6930 = vperm.xlu0 %10134, %v4558_v62   ;;  %v10508_v10 = vpop.permute.xlu1 %10507  ;;  %9455 = vmatpush1.bf16.msra.mxu0 %v9454_v4  ;;  %v9460_v11 = vpack.c.bf16 %v10495_v5, %v10494_v8 }
 0x45a   :  { %v12499_v16 = vpop.permute.xlu0 %10502  ;;  %9465 = vmatprep.subr.bf16.mxu0 %v9464_v35  ;;  %v9462_v20 = vpack.c.bf16 %v4629_v9, %v4626_v32  ;;  %v10510_v6 = vunpack.i.h.bf16 %v10508_v10 }
 0x45b   :  { %v10505_v61 = vunpack.i.h.bf16 %v12499_v16  ;;  %v10504_v18 = vunpack.i.l.bf16 %v12499_v16  ;;  %9461 = vmatprep.subr.bf16.mxu1 %v9460_v11 }
 0x45c   :  { %9062 = vmatmul.mubr.msk.f32.vlgmr.msra.gmra.mrb[16].mxu0 %vm2211_vm9, %v4566_v15  ;;  %9463 = vmatpush1.bf16.msra.mxu1 %v9462_v20  ;;  %v4563_v20 = vld [vmem:[#allocation2 + $0x10] sm:$0xff] }
 0x45d   :  { %6940 = vperm.xlu0 %10134, %v4560_v17   ;;  %v12512_v42 = vpop.permute.xlu1 %10517  ;;  %9467 = vmatpush1.bf16.msra.mxu0 %v9466_v36  ;;  %v5067_v35 = vsel %vm478_vm2, %v10504_v18, %v10505_v61  ;;  %v10509_v36 = vunpack.i.l.bf16 %v10508_v10 }
 0x45e   :  { %9473 = vmatprep.subr.bf16.mxu1 %v9472_v37  ;;  %v10513_v23 = vpop.permute.xlu0 %10512  ;;  %9469 = vmatprep.subr.bf16.mxu0 %v9468_v39  ;;  %v9480_v63 = vpack.c.bf16 %v5067_v35, %v5064_v50  ;;  %v5066_v37 = vsel %vm478_vm2, %v10510_v6, %v10504_v18  ;;  %v10520_v24 = vunpack.i.h.bf16 %v12512_v42  ;;  %v10519_v43 = vunpack.i.l.bf16 %v12512_v42  ;;  %v4564_v50 = vld [vmem:[#allocation2 + $0x18] sm:$0xff] }
 0x45f   :  { %v10515_v1 = vunpack.i.h.bf16 %v10513_v23  ;;  %v10514_v2 = vunpack.i.l.bf16 %v10513_v23  ;;  %4728 = vmatprep.mubr.f32.mxu0 %v11139_v0  ;;  %9066 = vmatmul.mubr.msk.f32.vlgmr.msra.gmra.mrb[16].mxu1 %vm2211_vm9, %v4566_v15  ;;  %v5063_v19 = vsel %vm478_vm2, %v10509_v36, %v10499_v22 }
 0x460   :  { %9063 = vmatmul.mubr.msk.f32.gmra.mrb[18].mxu0 %vm2211_vm9, %v4567_v12  ;;  %9475 = vmatpush1.bf16.msra.mxu1 %v9474_v40  ;;  %v4569_v40 = vld [vmem:[#allocation2 + $0x38] sm:$0xff]  ;;  %v9482_v48 = vpack.c.bf16 %v5066_v37, %v5063_v19  ;;  %v5070_v7 = vsel %vm478_vm2, %v10519_v43, %v10520_v24  ;;  %v5027_v19 = vld [vmem:[#allocation2 + $0x40] sm:$0xff] }
 0x461   :  { %v10523_v52 = vpop.permute.xlu1 %10522  ;;  %9471 = vmatpush1.bf16.msra.mxu0 %v9470_v41  ;;  %9477 = vmatprep.subr.bf16.mxu1 %v9476_v45  ;;  %v9488_v44 = vpack.c.bf16 %v10515_v1, %v10514_v2  ;;  %v5065_v33 = vsel %vm478_vm2, %v10500_v21, %v10514_v2  ;;  %v5068_v46 = vsel %vm478_vm2, %v10505_v61, %v10515_v1 }
 0x462   :  { %v10528_v25 = vpop.permute.xlu0 %10527  ;;  %4817 = vmatprep.mubr.f32.mxu1 %v11139_v0  ;;  %9481 = vmatprep.subr.bf16.mxu0 %v9480_v63  ;;  %v10524_v41 = vunpack.i.l.bf16 %v10523_v52  ;;  %v10525_v13 = vunpack.i.h.bf16 %v10523_v52  ;;  %v9490_v4 = vpack.c.bf16 %v5068_v46, %v5065_v33 }
 0x463   :  { %4734 = vmatprep.mubr.f32.mxu0 %v11139_v0  ;;  %9067 = vmatmul.mubr.msk.f32.gmra.mrb[18].mxu1 %vm2211_vm9, %v4567_v12  ;;  %v10530_v57 = vunpack.i.h.bf16 %v10528_v25  ;;  %v10529_v30 = vunpack.i.l.bf16 %v10528_v25 }
 0x464   :  { %9064 = vmatmul.mubr.msk.f32.gmra.mrb[20].mxu0 %vm2211_vm9, %v4568_v38  ;;  %9479 = vmatpush1.bf16.msra.mxu1 %v9478_v49  ;;  %v5069_v47 = vsel %vm478_vm2, %v10524_v41, %v10519_v43 }
 0x465   :  { %v12550_v39 = vpop.permute.xlu1 %10537  ;;  %9489 = vmatprep.subr.bf16.mxu1 %v9488_v44  ;;  %4823 = vmatprep.mubr.f32.mxu1 %v11139_v0  ;;  %v5073_v34 = vsel %vm478_vm2, %v10529_v30, %v10530_v57  ;;  %v5072_v27 = vsel %vm478_vm2, %v10525_v13, %v10529_v30 }
 0x466   :  { %v10533_v45 = vpop.permute.xlu0 %10532  ;;  %4740 = vmatprep.mubr.f32.mxu0 %v11139_v0  ;;  %v10540_v28 = vunpack.i.h.bf16 %v12550_v39  ;;  %v10539_v49 = vunpack.i.l.bf16 %v12550_v39  ;;  %v9484_v59 = vpack.c.bf16 %v5073_v34, %v5070_v7  ;;  %v9486_v5 = vpack.c.bf16 %v5072_v27, %v5069_v47 }
 0x467   :  { %9068 = vmatmul.mubr.msk.f32.gmra.mrb[20].mxu1 %vm2211_vm9, %v4568_v38  ;;  %v10534_v53 = vunpack.i.l.bf16 %v10533_v45  ;;  %v10535_v55 = vunpack.i.h.bf16 %v10533_v45 }
 0x468   :  { %9065 = vmatmul.mubr.msk.f32.gmra.mrb[22].mxu0 %vm2211_vm9, %v4569_v40  ;;  %4829 = vmatprep.mubr.f32.mxu1 %v11139_v0  ;;  %v5335_v31 = vsel %vm705_vm3, %v10539_v49, %v10540_v28 }
 0x469   :  { %v10548_v14 = vpop.permute.xlu1 %10547  ;;  %4912 = vmatprep.mubr.f32.mxu0 %v11139_v0  ;;  %v5071_v62 = vsel %vm478_vm2, %v10520_v24, %v10534_v53  ;;  %v5074_v32 = vsel %vm478_vm2, %v10530_v57, %v10535_v55  ;;  %v9492_v11 = vpack.c.bf16 %v10535_v55, %v10534_v53 }
 0x46a   :  { %v12567_v54 = vpop.permute.xlu0 %10542  ;;  %v10550_v15 = vunpack.i.h.bf16 %v10548_v14  ;;  %v10549_v16 = vunpack.i.l.bf16 %v10548_v14  ;;  %v9494_v61 = vpack.c.bf16 %v5074_v32, %v5071_v62  ;;  %v5028_v14 = vld [vmem:[#allocation2 + $0x48] sm:$0xff] }
 0x46b   :  { %v10545_v56 = vunpack.i.h.bf16 %v12567_v54  ;;  %v10544_v58 = vunpack.i.l.bf16 %v12567_v54  ;;  %9069 = vmatmul.mubr.msk.f32.gmra.mrb[22].mxu1 %vm2211_vm9, %v4569_v40 }
 0x46c   :  { %9070 = vmatmul.mubr.msk.f32.vlgmr.msra.gmra.mrb[16].mxu0 %vm2211_vm9, %v4561_v60  ;;  %5001 = vmatprep.mubr.f32.mxu1 %v11139_v0  ;;  %v5334_v18 = vsel %vm705_vm3, %v10549_v16, %v10539_v49 }
 0x46d   :  { %9483 = vmatpush1.bf16.msra.mxu0 %v9482_v48  ;;  %v12575_v26 = vpop.permute.xlu1 %10557  ;;  %4918 = vmatprep.mubr.f32.mxu0 %v11139_v0  ;;  %v5338_v51 = vsel %vm705_vm3, %v10544_v58, %v10545_v56  ;;  %v5337_v42 = vsel %vm705_vm3, %v10550_v15, %v10544_v58 }
 0x46e   :  { %9485 = vmatprep.subr.bf16.mxu0 %v9484_v59  ;;  %v10553_v3 = vpop.permute.xlu0 %10552  ;;  %v9496_v8 = vpack.c.bf16 %v5338_v51, %v5335_v31  ;;  %v10560_v12 = vunpack.i.h.bf16 %v12575_v26  ;;  %v10559_v35 = vunpack.i.l.bf16 %v12575_v26  ;;  %v9498_v52 = vpack.c.bf16 %v5337_v42, %v5334_v18  ;;  %v5298_v18 = vld [vmem:[#allocation2 + $0x60] sm:$0xff] }
 0x46f   :  { %v10555_v9 = vunpack.i.h.bf16 %v10553_v3  ;;  %v10554_v10 = vunpack.i.l.bf16 %v10553_v3  ;;  %9074 = vmatmul.mubr.msk.f32.vlgmr.msra.gmra.mrb[16].mxu1 %vm2211_vm9, %v4561_v60 }
 0x470   :  { %9491 = vmatpush1.bf16.msra.mxu1 %v9490_v4  ;;  %9071 = vmatmul.mubr.msk.f32.gmra.mrb[18].mxu0 %vm2211_vm9, %v4562_v29  ;;  %v5341_v37 = vsel %vm705_vm3, %v10559_v35, %v10560_v12 }
 0x471   :  { %9487 = vmatpush1.bf16.msra.mxu0 %v9486_v5  ;;  %9493 = vmatprep.subr.bf16.mxu1 %v9492_v11  ;;  %v10563_v17 = vpop.permute.xlu1 %10562  ;;  %v9504_v21 = vpack.c.bf16 %v10555_v9, %v10554_v10  ;;  %v5336_v43 = vsel %vm705_vm3, %v10540_v28, %v10554_v10  ;;  %v5339_v57 = vsel %vm705_vm3, %v10545_v56, %v10555_v9  ;;  %v5030_v11 = vld [vmem:[#allocation2 + $0x58] sm:$0xff] }
 0x472   :  { %9497 = vmatprep.subr.bf16.mxu0 %v9496_v8  ;;  %v10568_v22 = vpop.permute.xlu0 %10567  ;;  %5007 = vmatprep.mubr.f32.mxu1 %v11139_v0  ;;  %v10564_v6 = vunpack.i.l.bf16 %v10563_v17  ;;  %v10565_v63 = vunpack.i.h.bf16 %v10563_v17  ;;  %v9506_v46 = vpack.c.bf16 %v5339_v57, %v5336_v43 }
 0x473   :  { %4924 = vmatprep.mubr.f32.mxu0 %v11139_v0  ;;  %9075 = vmatmul.mubr.msk.f32.gmra.mrb[18].mxu1 %vm2211_vm9, %v4562_v29  ;;  %v10570_v23 = vunpack.i.h.bf16 %v10568_v22  ;;  %v10569_v1 = vunpack.i.l.bf16 %v10568_v22  ;;  %v5029_v29 = vld [vmem:[#allocation2 + $0x50] sm:$0xff] }
 0x474   :  { %9495 = vmatpush1.bf16.msra.mxu1 %v9494_v61  ;;  %9072 = vmatmul.mubr.msk.f32.gmra.mrb[20].mxu0 %vm2211_vm9, %v4563_v20  ;;  %v5340_v30 = vsel %vm705_vm3, %v10564_v6, %v10559_v35 }
 0x475   :  { %9505 = vmatprep.subr.bf16.mxu1 %v9504_v21  ;;  %v12596_v2 = vpop.permute.xlu1 %10577  ;;  %5013 = vmatprep.mubr.f32.mxu1 %v11139_v0  ;;  %v5344_v24 = vsel %vm705_vm3, %v10569_v1, %v10570_v23  ;;  %v5343_v45 = vsel %vm705_vm3, %v10565_v63, %v10569_v1 }
 0x476   :  { %v10573_v36 = vpop.permute.xlu0 %10572  ;;  %4930 = vmatprep.mubr.f32.mxu0 %v11139_v0  ;;  %v10580_v38 = vunpack.i.h.bf16 %v12596_v2  ;;  %v10579_v25 = vunpack.i.l.bf16 %v12596_v2  ;;  %v9500_v39 = vpack.c.bf16 %v5344_v24, %v5341_v37  ;;  %v9502_v47 = vpack.c.bf16 %v5343_v45, %v5340_v30 }
 0x477   :  { %9076 = vmatmul.mubr.msk.f32.gmra.mrb[20].mxu1 %vm2211_vm9, %v4563_v20  ;;  %v10574_v40 = vunpack.i.l.bf16 %v10573_v36  ;;  %v10575_v13 = vunpack.i.h.bf16 %v10573_v36 }
 0x478   :  { %9073 = vmatmul.mubr.msk.f32.gmra.mrb[22].mxu0 %vm2211_vm9, %v4564_v50  ;;  %5019 = vmatprep.mubr.f32.mxu1 %v11139_v0  ;;  %v5606_v60 = vsel %vm932_vm4, %v10579_v25, %v10580_v38 }
 0x479   :  { %v10588_v44 = vpop.permute.xlu1 %10587  ;;  %5167 = vmatprep.mubr.f32.mxu0 %v11139_v0  ;;  %v5342_v34 = vsel %vm705_vm3, %v10560_v12, %v10574_v40  ;;  %v5345_v54 = vsel %vm705_vm3, %v10570_v23, %v10575_v13  ;;  %v9508_v56 = vpack.c.bf16 %v10575_v13, %v10574_v40 }
 0x47a   :  { %v12615_v41 = vpop.permute.xlu0 %10582  ;;  %v10590_v58 = vunpack.i.h.bf16 %v10588_v44  ;;  %v10589_v59 = vunpack.i.l.bf16 %v10588_v44  ;;  %v9510_v62 = vpack.c.bf16 %v5345_v54, %v5342_v34  ;;  %v5299_v44 = vld [vmem:[#allocation2 + $0x68] sm:$0xff] }
 0x47b   :  { %v10585_v48 = vunpack.i.h.bf16 %v12615_v41  ;;  %v10584_v49 = vunpack.i.l.bf16 %v12615_v41  ;;  %9077 = vmatmul.mubr.msk.f32.gmra.mrb[22].mxu1 %vm2211_vm9, %v4564_v50 }
 0x47c   :  { %9078 = vmatmul.mubr.msk.f32.vlgmr.msra.gmra.mrb[16].mxu0 %vm2211_vm9, %v5027_v19  ;;  %5256 = vmatprep.mubr.f32.mxu1 %v11139_v0  ;;  %v5605_v3 = vsel %vm932_vm4, %v10589_v59, %v10579_v25 }
 0x47d   :  { %9499 = vmatpush1.bf16.msra.mxu0 %v9498_v52  ;;  %v12623_v28 = vpop.permute.xlu1 %10597  ;;  %5173 = vmatprep.mubr.f32.mxu0 %v11139_v0  ;;  %v5609_v7 = vsel %vm932_vm4, %v10584_v49, %v10585_v48  ;;  %v5608_v4 = vsel %vm932_vm4, %v10590_v58, %v10584_v49 }
 0x47e   :  { %9501 = vmatprep.subr.bf16.mxu0 %v9500_v39  ;;  %v10593_v33 = vpop.permute.xlu0 %10592  ;;  %v9512_v53 = vpack.c.bf16 %v5609_v7, %v5606_v60  ;;  %v10600_v5 = vunpack.i.h.bf16 %v12623_v28  ;;  %v10599_v8 = vunpack.i.l.bf16 %v12623_v28  ;;  %v9514_v20 = vpack.c.bf16 %v5608_v4, %v5605_v3  ;;  %v5300_v60 = vld [vmem:[#allocation2 + $0x70] sm:$0xff]  ;;  %v5569_v3 = vld [vmem:[#allocation2 + $0x80] sm:$0xff] }
 0x47f   :  { %v10595_v27 = vunpack.i.h.bf16 %v10593_v33  ;;  %v10594_v55 = vunpack.i.l.bf16 %v10593_v33  ;;  %9082 = vmatmul.mubr.msk.f32.vlgmr.msra.gmra.mrb[16].mxu1 %vm2211_vm9, %v5027_v19 }
 0x480   :  { %9507 = vmatpush1.bf16.msra.mxu1 %v9506_v46  ;;  %9079 = vmatmul.mubr.msk.f32.gmra.mrb[18].mxu0 %vm2211_vm9, %v5028_v14  ;;  %v5612_v42 = vsel %vm932_vm4, %v10599_v8, %v10600_v5 }
 0x481   :  { %9503 = vmatpush1.bf16.msra.mxu0 %v9502_v47  ;;  %9509 = vmatprep.subr.bf16.mxu1 %v9508_v56  ;;  %v10603_v26 = vpop.permute.xlu1 %10602  ;;  %v9520_v31 = vpack.c.bf16 %v10595_v27, %v10594_v55  ;;  %v5607_v35 = vsel %vm932_vm4, %v10580_v38, %v10594_v55  ;;  %v5610_v23 = vsel %vm932_vm4, %v10585_v48, %v10595_v27  ;;  %v5301_v56 = vld [vmem:[#allocation2 + $0x78] sm:$0xff] }
 0x482   :  { %9513 = vmatprep.subr.bf16.mxu0 %v9512_v53  ;;  %v10608_v51 = vpop.permute.xlu0 %10607  ;;  %5262 = vmatprep.mubr.f32.mxu1 %v11139_v0  ;;  %v10604_v15 = vunpack.i.l.bf16 %v10603_v26  ;;  %v10605_v17 = vunpack.i.h.bf16 %v10603_v26  ;;  %v9522_v57 = vpack.c.bf16 %v5610_v23, %v5607_v35 }
 0x483   :  { %5179 = vmatprep.mubr.f32.mxu0 %v11139_v0  ;;  %9083 = vmatmul.mubr.msk.f32.gmra.mrb[18].mxu1 %vm2211_vm9, %v5028_v14  ;;  %v10610_v32 = vunpack.i.h.bf16 %v10608_v51  ;;  %v10609_v9 = vunpack.i.l.bf16 %v10608_v51 }
 0x484   :  { %9511 = vmatpush1.bf16.msra.mxu1 %v9510_v62  ;;  %9080 = vmatmul.mubr.msk.f32.gmra.mrb[20].mxu0 %vm2211_vm9, %v5029_v29  ;;  %v5611_v1 = vsel %vm932_vm4, %v10604_v15, %v10599_v8 }
 0x485   :  { %9521 = vmatprep.subr.bf16.mxu1 %v9520_v31  ;;  %v12644_v10 = vpop.permute.xlu1 %10617  ;;  %5268 = vmatprep.mubr.f32.mxu1 %v11139_v0  ;;  %v5615_v12 = vsel %vm932_vm4, %v10609_v9, %v10610_v32  ;;  %v5614_v36 = vsel %vm932_vm4, %v10605_v17, %v10609_v9 }
 0x486   :  { %v10613_v16 = vpop.permute.xlu0 %10612  ;;  %5185 = vmatprep.mubr.f32.mxu0 %v11139_v0  ;;  %v10620_v21 = vunpack.i.h.bf16 %v12644_v10  ;;  %v10619_v22 = vunpack.i.l.bf16 %v12644_v10  ;;  %v9516_v2 = vpack.c.bf16 %v5615_v12, %v5612_v42  ;;  %v9518_v30 = vpack.c.bf16 %v5614_v36, %v5611_v1 }
 0x487   :  { %9084 = vmatmul.mubr.msk.f32.gmra.mrb[20].mxu1 %vm2211_vm9, %v5029_v29  ;;  %v10614_v50 = vunpack.i.l.bf16 %v10613_v16  ;;  %v10615_v63 = vunpack.i.h.bf16 %v10613_v16 }
 0x488   :  { %9081 = vmatmul.mubr.msk.f32.gmra.mrb[22].mxu0 %vm2211_vm9, %v5030_v11  ;;  %5274 = vmatprep.mubr.f32.mxu1 %v11139_v0  ;;  %v5877_v19 = vsel %vm1159_vm5, %v10619_v22, %v10620_v21 }
 0x489   :  { %v10628_v61 = vpop.permute.xlu1 %10627  ;;  %5438 = vmatprep.mubr.f32.mxu0 %v11139_v0  ;;  %v5613_v24 = vsel %vm932_vm4, %v10600_v5, %v10614_v50  ;;  %v5616_v41 = vsel %vm932_vm4, %v10610_v32, %v10615_v63  ;;  %v9524_v45 = vpack.c.bf16 %v10615_v63, %v10614_v50 }
 0x48a   :  { %v12663_v6 = vpop.permute.xlu0 %10622  ;;  %v10630_v49 = vunpack.i.h.bf16 %v10628_v61  ;;  %v10629_v39 = vunpack.i.l.bf16 %v10628_v61  ;;  %v9526_v7 = vpack.c.bf16 %v5616_v41, %v5613_v24  ;;  %v5570_v61 = vld [vmem:[#allocation2 + $0x88] sm:$0xff] }
 0x48b   :  { %v10625_v52 = vunpack.i.h.bf16 %v12663_v6  ;;  %v10624_v25 = vunpack.i.l.bf16 %v12663_v6  ;;  %9085 = vmatmul.mubr.msk.f32.gmra.mrb[22].mxu1 %vm2211_vm9, %v5030_v11 }
 0x48c   :  { %9086 = vmatmul.mubr.msk.f32.vlgmr.msra.gmra.mrb[16].mxu0 %vm2211_vm9, %v5298_v18  ;;  %5527 = vmatprep.mubr.f32.mxu1 %v11139_v0  ;;  %v5876_v33 = vsel %vm1159_vm5, %v10629_v39, %v10619_v22 }
 0x48d   :  { %9515 = vmatpush1.bf16.msra.mxu0 %v9514_v20  ;;  %v12671_v38 = vpop.permute.xlu1 %10637  ;;  %5444 = vmatprep.mubr.f32.mxu0 %v11139_v0  ;;  %v5880_v37 = vsel %vm1159_vm5, %v10624_v25, %v10625_v52  ;;  %v5879_v46 = vsel %vm1159_vm5, %v10630_v49, %v10624_v25 }
 0x48e   :  { %9517 = vmatprep.subr.bf16.mxu0 %v9516_v2  ;;  %v10633_v43 = vpop.permute.xlu0 %10632  ;;  %v9528_v40 = vpack.c.bf16 %v5880_v37, %v5877_v19  ;;  %v10640_v47 = vunpack.i.h.bf16 %v12671_v38  ;;  %v10639_v53 = vunpack.i.l.bf16 %v12671_v38  ;;  %v9530_v29 = vpack.c.bf16 %v5879_v46, %v5876_v33  ;;  %v5571_v19 = vld [vmem:[#allocation2 + $0x90] sm:$0xff]  ;;  %v5840_v33 = vld [vmem:[#allocation2 + $0xa0] sm:$0xff] }
 0x48f   :  { %v10635_v13 = vunpack.i.h.bf16 %v10633_v43  ;;  %v10634_v48 = vunpack.i.l.bf16 %v10633_v43  ;;  %9090 = vmatmul.mubr.msk.f32.vlgmr.msra.gmra.mrb[16].mxu1 %vm2211_vm9, %v5298_v18 }
 0x490   :  { %9523 = vmatpush1.bf16.msra.mxu1 %v9522_v57  ;;  %9087 = vmatmul.mubr.msk.f32.gmra.mrb[18].mxu0 %vm2211_vm9, %v5299_v44  ;;  %v5883_v4 = vsel %vm1159_vm5, %v10639_v53, %v10640_v47 }
 0x491   :  { %v9536_v28 = vpack.c.bf16 %v10635_v13, %v10634_v48  ;;  %9519 = vmatpush1.bf16.msra.mxu0 %v9518_v30  ;;  %9525 = vmatprep.subr.bf16.mxu1 %v9524_v45  ;;  %v10643_v14 = vpop.permute.xlu1 %10642  ;;  %v5878_v8 = vsel %vm1159_vm5, %v10620_v21, %v10634_v48  ;;  %v5881_v32 = vsel %vm1159_vm5, %v10625_v52, %v10635_v13  ;;  %v5572_v48 = vld [vmem:[#allocation2 + $0x98] sm:$0xff] }
 0x492   :  { %9529 = vmatprep.subr.bf16.mxu0 %v9528_v40  ;;  %v10648_v34 = vpop.permute.xlu0 %10647  ;;  %5533 = vmatprep.mubr.f32.mxu1 %v11139_v0  ;;  %v10644_v58 = vunpack.i.l.bf16 %v10643_v14  ;;  %v10645_v26 = vunpack.i.h.bf16 %v10643_v14  ;;  %v9538_v12 = vpack.c.bf16 %v5881_v32, %v5878_v8 }
 0x493   :  { %5450 = vmatprep.mubr.f32.mxu0 %v11139_v0  ;;  %9091 = vmatmul.mubr.msk.f32.gmra.mrb[18].mxu1 %vm2211_vm9, %v5299_v44  ;;  %v10650_v54 = vunpack.i.h.bf16 %v10648_v34  ;;  %v10649_v27 = vunpack.i.l.bf16 %v10648_v34 }
 0x494   :  { %9527 = vmatpush1.bf16.msra.mxu1 %v9526_v7  ;;  %9088 = vmatmul.mubr.msk.f32.gmra.mrb[20].mxu0 %vm2211_vm9, %v5300_v60  ;;  %v5882_v9 = vsel %vm1159_vm5, %v10644_v58, %v10639_v53 }
 0x495   :  { %9537 = vmatprep.subr.bf16.mxu1 %v9536_v28  ;;  %v12692_v55 = vpop.permute.xlu1 %10657  ;;  %5539 = vmatprep.mubr.f32.mxu1 %v11139_v0  ;;  %v5886_v5 = vsel %vm1159_vm5, %v10649_v27, %v10650_v54  ;;  %v5885_v16 = vsel %vm1159_vm5, %v10645_v26, %v10649_v27 }
 0x496   :  { %v10653_v59 = vpop.permute.xlu0 %10652  ;;  %5456 = vmatprep.mubr.f32.mxu0 %v11139_v0  ;;  %v10660_v31 = vunpack.i.h.bf16 %v12692_v55  ;;  %v10659_v51 = vunpack.i.l.bf16 %v12692_v55  ;;  %v9532_v10 = vpack.c.bf16 %v5886_v5, %v5883_v4  ;;  %v9534_v35 = vpack.c.bf16 %v5885_v16, %v5882_v9 }
 0x497   :  { %9092 = vmatmul.mubr.msk.f32.gmra.mrb[20].mxu1 %vm2211_vm9, %v5300_v60  ;;  %v10654_v11 = vunpack.i.l.bf16 %v10653_v59  ;;  %v10655_v17 = vunpack.i.h.bf16 %v10653_v59 }
 0x498   :  { %9089 = vmatmul.mubr.msk.f32.gmra.mrb[22].mxu0 %vm2211_vm9, %v5301_v56  ;;  %5545 = vmatprep.mubr.f32.mxu1 %v11139_v0  ;;  %v6148_v18 = vsel %vm1386_vm6, %v10659_v51, %v10660_v31 }
 0x499   :  { %v10668_v62 = vpop.permute.xlu1 %10667  ;;  %5709 = vmatprep.mubr.f32.mxu0 %v11139_v0  ;;  %v5884_v23 = vsel %vm1159_vm5, %v10640_v47, %v10654_v11  ;;  %v5887_v6 = vsel %vm1159_vm5, %v10650_v54, %v10655_v17  ;;  %v9540_v36 = vpack.c.bf16 %v10655_v17, %v10654_v11 }
 0x49a   :  { %v12711_v15 = vpop.permute.xlu0 %10662  ;;  %v10670_v25 = vunpack.i.h.bf16 %v10668_v62  ;;  %v10669_v2 = vunpack.i.l.bf16 %v10668_v62  ;;  %v9542_v37 = vpack.c.bf16 %v5887_v6, %v5884_v23  ;;  %v5841_v62 = vld [vmem:[#allocation2 + $0xa8] sm:$0xff] }
 0x49b   :  { %v10665_v20 = vunpack.i.h.bf16 %v12711_v15  ;;  %v10664_v22 = vunpack.i.l.bf16 %v12711_v15  ;;  %9093 = vmatmul.mubr.msk.f32.gmra.mrb[22].mxu1 %vm2211_vm9, %v5301_v56 }
 0x49c   :  { %9094 = vmatmul.mubr.msk.f32.vlgmr.msra.gmra.mrb[16].mxu0 %vm2211_vm9, %v5569_v3  ;;  %5798 = vmatprep.mubr.f32.mxu1 %v11139_v0  ;;  %v6147_v43 = vsel %vm1386_vm6, %v10669_v2, %v10659_v51 }
 0x49d   :  { %9531 = vmatpush1.bf16.msra.mxu0 %v9530_v29  ;;  %v12719_v21 = vpop.permute.xlu1 %10677  ;;  %5715 = vmatprep.mubr.f32.mxu0 %v11139_v0  ;;  %v6151_v42 = vsel %vm1386_vm6, %v10664_v22, %v10665_v20  ;;  %v6150_v57 = vsel %vm1386_vm6, %v10670_v25, %v10664_v22 }
 0x49e   :  { %9533 = vmatprep.subr.bf16.mxu0 %v9532_v10  ;;  %v10673_v1 = vpop.permute.xlu0 %10672  ;;  %v9544_v50 = vpack.c.bf16 %v6151_v42, %v6148_v18  ;;  %v10680_v30 = vunpack.i.h.bf16 %v12719_v21  ;;  %v10679_v40 = vunpack.i.l.bf16 %v12719_v21  ;;  %v9546_v14 = vpack.c.bf16 %v6150_v57, %v6147_v43  ;;  %v5842_v18 = vld [vmem:[#allocation2 + $0xb0] sm:$0xff]  ;;  %v6111_v43 = vld [vmem:[#allocation2 + $0xc0] sm:$0xff] }
 0x49f   :  { %v10675_v63 = vunpack.i.h.bf16 %v10673_v1  ;;  %v10674_v52 = vunpack.i.l.bf16 %v10673_v1  ;;  %9098 = vmatmul.mubr.msk.f32.vlgmr.msra.gmra.mrb[16].mxu1 %vm2211_vm9, %v5569_v3 }
 0x4a0   :  { %9539 = vmatpush1.bf16.msra.mxu1 %v9538_v12  ;;  %9095 = vmatmul.mubr.msk.f32.gmra.mrb[18].mxu0 %vm2211_vm9, %v5570_v61  ;;  %v6154_v46 = vsel %vm1386_vm6, %v10679_v40, %v10680_v30 }
 0x4a1   :  { %v9552_v38 = vpack.c.bf16 %v10675_v63, %v10674_v52  ;;  %9535 = vmatpush1.bf16.msra.mxu0 %v9534_v35  ;;  %9541 = vmatprep.subr.bf16.mxu1 %v9540_v36  ;;  %v10683_v44 = vpop.permute.xlu1 %10682  ;;  %v6149_v53 = vsel %vm1386_vm6, %v10660_v31, %v10674_v52  ;;  %v6152_v54 = vsel %vm1386_vm6, %v10665_v20, %v10675_v63  ;;  %v5843_v52 = vld [vmem:[#allocation2 + $0xb8] sm:$0xff] }
 0x4a2   :  { %9545 = vmatprep.subr.bf16.mxu0 %v9544_v50  ;;  %v10688_v24 = vpop.permute.xlu0 %10687  ;;  %5804 = vmatprep.mubr.f32.mxu1 %v11139_v0  ;;  %v10684_v49 = vunpack.i.l.bf16 %v10683_v44  ;;  %v10685_v28 = vunpack.i.h.bf16 %v10683_v44  ;;  %v9554_v5 = vpack.c.bf16 %v6152_v54, %v6149_v53 }
 0x4a3   :  { %5721 = vmatprep.mubr.f32.mxu0 %v11139_v0  ;;  %9099 = vmatmul.mubr.msk.f32.gmra.mrb[18].mxu1 %vm2211_vm9, %v5570_v61  ;;  %v10690_v41 = vunpack.i.h.bf16 %v10688_v24  ;;  %v10689_v45 = vunpack.i.l.bf16 %v10688_v24 }
 0x4a4   :  { %9543 = vmatpush1.bf16.msra.mxu1 %v9542_v37  ;;  %9096 = vmatmul.mubr.msk.f32.gmra.mrb[20].mxu0 %vm2211_vm9, %v5571_v19  ;;  %v6153_v27 = vsel %vm1386_vm6, %v10684_v49, %v10679_v40 }
 0x4a5   :  { %9553 = vmatprep.subr.bf16.mxu1 %v9552_v38  ;;  %v12740_v13 = vpop.permute.xlu1 %10697  ;;  %5810 = vmatprep.mubr.f32.mxu1 %v11139_v0  ;;  %v6157_v47 = vsel %vm1386_vm6, %v10689_v45, %v10690_v41  ;;  %v6156_v59 = vsel %vm1386_vm6, %v10685_v28, %v10689_v45 }
 0x4a6   :  { %v10693_v39 = vpop.permute.xlu0 %10692  ;;  %5727 = vmatprep.mubr.f32.mxu0 %v11139_v0  ;;  %v10700_v60 = vunpack.i.h.bf16 %v12740_v13  ;;  %v10699_v7 = vunpack.i.l.bf16 %v12740_v13  ;;  %v9548_v55 = vpack.c.bf16 %v6157_v47, %v6154_v46  ;;  %v9550_v8 = vpack.c.bf16 %v6156_v59, %v6153_v27 }
 0x4a7   :  { %9100 = vmatmul.mubr.msk.f32.gmra.mrb[20].mxu1 %vm2211_vm9, %v5571_v19  ;;  %v10694_v56 = vunpack.i.l.bf16 %v10693_v39  ;;  %v10695_v26 = vunpack.i.h.bf16 %v10693_v39 }
 0x4a8   :  { %9097 = vmatmul.mubr.msk.f32.gmra.mrb[22].mxu0 %vm2211_vm9, %v5572_v48  ;;  %5816 = vmatprep.mubr.f32.mxu1 %v11139_v0  ;;  %v6419_v3 = vsel %vm1613_vm7, %v10699_v7, %v10700_v60 }
 0x4a9   :  { %v10708_v34 = vpop.permute.xlu1 %10707  ;;  %5980 = vmatprep.mubr.f32.mxu0 %v11139_v0  ;;  %v6155_v32 = vsel %vm1386_vm6, %v10680_v30, %v10694_v56  ;;  %v6158_v15 = vsel %vm1386_vm6, %v10690_v41, %v10695_v26  ;;  %v9556_v16 = vpack.c.bf16 %v10695_v26, %v10694_v56 }
 0x4aa   :  { %v12759_v58 = vpop.permute.xlu0 %10702  ;;  %v10710_v22 = vunpack.i.h.bf16 %v10708_v34  ;;  %v10709_v10 = vunpack.i.l.bf16 %v10708_v34  ;;  %v9558_v42 = vpack.c.bf16 %v6158_v15, %v6155_v32 }
 0x4ab   :  { %v10705_v29 = vunpack.i.h.bf16 %v12759_v58  ;;  %v10704_v51 = vunpack.i.l.bf16 %v12759_v58  ;;  %9101 = vmatmul.mubr.msk.f32.gmra.mrb[22].mxu1 %vm2211_vm9, %v5572_v48 }
 0x4ac   :  { %9102 = vmatmul.mubr.msk.f32.vlgmr.msra.gmra.mrb[16].mxu0 %vm2211_vm9, %v5840_v33  ;;  %6069 = vmatprep.mubr.f32.mxu1 %v11139_v0  ;;  %v6418_v35 = vsel %vm1613_vm7, %v10709_v10, %v10699_v7 }
 0x4ad   :  { %9547 = vmatpush1.bf16.msra.mxu0 %v9546_v14  ;;  %v12767_v31 = vpop.permute.xlu1 %10717  ;;  %5986 = vmatprep.mubr.f32.mxu0 %v11139_v0  ;;  %v6422_v4 = vsel %vm1613_vm7, %v10704_v51, %v10705_v29  ;;  %v6421_v23 = vsel %vm1613_vm7, %v10710_v22, %v10704_v51 }
 0x4ae   :  { %9549 = vmatprep.subr.bf16.mxu0 %v9548_v55  ;;  %v10713_v9 = vpop.permute.xlu0 %10712  ;;  %v9560_v11 = vpack.c.bf16 %v6422_v4, %v6419_v3  ;;  %v10720_v1 = vunpack.i.h.bf16 %v12767_v31  ;;  %v10719_v50 = vunpack.i.l.bf16 %v12767_v31  ;;  %v9562_v44 = vpack.c.bf16 %v6421_v23, %v6418_v35  ;;  %v6113_v55 = vld [vmem:[#allocation2 + $0xd0] sm:$0xff] }
 0x4af   :  { %v10715_v17 = vunpack.i.h.bf16 %v10713_v9  ;;  %v10714_v20 = vunpack.i.l.bf16 %v10713_v9  ;;  %9106 = vmatmul.mubr.msk.f32.vlgmr.msra.gmra.mrb[16].mxu1 %vm2211_vm9, %v5840_v33  ;;  %v6114_v9 = vld [vmem:[#allocation2 + $0xd8] sm:$0xff] }
 0x4b0   :  { %9555 = vmatpush1.bf16.msra.mxu1 %v9554_v5  ;;  %9103 = vmatmul.mubr.msk.f32.gmra.mrb[18].mxu0 %vm2211_vm9, %v5841_v62  ;;  %v6425_v57 = vsel %vm1613_vm7, %v10719_v50, %v10720_v1 }
 0x4b1   :  { %v9568_v21 = vpack.c.bf16 %v10715_v17, %v10714_v20  ;;  %9551 = vmatpush1.bf16.msra.mxu0 %v9550_v8  ;;  %9557 = vmatprep.subr.bf16.mxu1 %v9556_v16  ;;  %v10723_v61 = vpop.permute.xlu1 %10722  ;;  %v6420_v40 = vsel %vm1613_vm7, %v10700_v60, %v10714_v20  ;;  %v6423_v41 = vsel %vm1613_vm7, %v10705_v29, %v10715_v17  ;;  %v6112_v60 = vld [vmem:[#allocation2 + $0xc8] sm:$0xff] }
 0x4b2   :  { %9561 = vmatprep.subr.bf16.mxu0 %v9560_v11  ;;  %v10728_v12 = vpop.permute.xlu0 %10727  ;;  %6075 = vmatprep.mubr.f32.mxu1 %v11139_v0  ;;  %v10724_v25 = vunpack.i.l.bf16 %v10723_v61  ;;  %v10725_v38 = vunpack.i.h.bf16 %v10723_v61  ;;  %v9570_v46 = vpack.c.bf16 %v6423_v41, %v6420_v40  ;;  %v6656_v40 = vld [vmem:[#allocation2 + $0x118] sm:$0xff] }
 0x4b3   :  { %5992 = vmatprep.mubr.f32.mxu0 %v11139_v0  ;;  %9107 = vmatmul.mubr.msk.f32.gmra.mrb[18].mxu1 %vm2211_vm9, %v5841_v62  ;;  %v10730_v6 = vunpack.i.h.bf16 %v10728_v12  ;;  %v10729_v36 = vunpack.i.l.bf16 %v10728_v12 }
 0x4b4   :  { %9559 = vmatpush1.bf16.msra.mxu1 %v9558_v42  ;;  %9104 = vmatmul.mubr.msk.f32.gmra.mrb[20].mxu0 %vm2211_vm9, %v5842_v18  ;;  %v6424_v45 = vsel %vm1613_vm7, %v10724_v25, %v10719_v50 }
 0x4b5   :  { %9569 = vmatprep.subr.bf16.mxu1 %v9568_v21  ;;  %v12788_v63 = vpop.permute.xlu1 %10737  ;;  %6081 = vmatprep.mubr.f32.mxu1 %v11139_v0  ;;  %v6428_v30 = vsel %vm1613_vm7, %v10729_v36, %v10730_v6  ;;  %v6427_v39 = vsel %vm1613_vm7, %v10725_v38, %v10729_v36  ;;  %v6382_v21 = vld [vmem:[#allocation2 + $0xe0] sm:$0xff] }
 0x4b6   :  { %v10733_v2 = vpop.permute.xlu0 %10732  ;;  %5998 = vmatprep.mubr.f32.mxu0 %v11139_v0  ;;  %v10740_v19 = vunpack.i.h.bf16 %v12788_v63  ;;  %v10739_v37 = vunpack.i.l.bf16 %v12788_v63  ;;  %v9564_v13 = vpack.c.bf16 %v6428_v30, %v6425_v57  ;;  %v9566_v47 = vpack.c.bf16 %v6427_v39, %v6424_v45  ;;  %v6383_v63 = vld [vmem:[#allocation2 + $0xe8] sm:$0xff]  ;;  %v6655_v30 = vld [vmem:[#allocation2 + $0x110] sm:$0xff] }
 0x4b7   :  { %9108 = vmatmul.mubr.msk.f32.gmra.mrb[20].mxu1 %vm2211_vm9, %v5842_v18  ;;  %v10734_v48 = vunpack.i.l.bf16 %v10733_v2  ;;  %v10735_v28 = vunpack.i.h.bf16 %v10733_v2  ;;  %v6654_v57 = vld [vmem:[#allocation2 + $0x108] sm:$0xff] }
 0x4b8   :  { %9105 = vmatmul.mubr.msk.f32.gmra.mrb[22].mxu0 %vm2211_vm9, %v5843_v52  ;;  %6087 = vmatprep.mubr.f32.mxu1 %v11139_v0  ;;  %v6690_v34 = vsel %vm1840_vm8, %v10739_v37, %v10740_v19 }
 0x4b9   :  { %v12797_v24 = vpop.permute.xlu1 %10747  ;;  %6251 = vmatprep.mubr.f32.mxu0 %v11139_v0  ;;  %v6426_v53 = vsel %vm1613_vm7, %v10720_v1, %v10734_v48  ;;  %v6429_v56 = vsel %vm1613_vm7, %v10730_v6, %v10735_v28  ;;  %v9572_v58 = vpack.c.bf16 %v10735_v28, %v10734_v48 }
 0x4ba   :  { %v12809_v49 = vpop.permute.xlu0 %10742  ;;  %v9574_v31 = vpack.c.bf16 %v6429_v56, %v6426_v53  ;;  %v10750_v3 = vunpack.i.h.bf16 %v12797_v24  ;;  %v10749_v4 = vunpack.i.l.bf16 %v12797_v24  ;;  %v6385_v24 = vld [vmem:[#allocation2 + $0xf8] sm:$0xff] }
 0x4bb   :  { %v10745_v14 = vunpack.i.h.bf16 %v12809_v49  ;;  %v10744_v7 = vunpack.i.l.bf16 %v12809_v49  ;;  %9109 = vmatmul.mubr.msk.f32.gmra.mrb[22].mxu1 %vm2211_vm9, %v5843_v52 }
 0x4bc   :  { %9110 = vmatmul.mubr.msk.f32.vlgmr.msra.gmra.mrb[16].mxu0 %vm2211_vm9, %v6111_v43  ;;  %6340 = vmatprep.mubr.f32.mxu1 %v11139_v0  ;;  %v6689_v16 = vsel %vm1840_vm8, %v10749_v4, %v10739_v37 }
 0x4bd   :  { %9563 = vmatpush1.bf16.msra.mxu0 %v9562_v44  ;;  %6257 = vmatprep.mubr.f32.mxu0 %v11139_v0  ;;  %v6693_v33 = vsel %vm1840_vm8, %v10744_v7, %v10745_v14  ;;  %v10758_v59 = vpop.permute.xlu1 %10757  ;;  %v6692_v17 = vsel %vm1840_vm8, %v10750_v3, %v10744_v7 }
 0x4be   :  { %9565 = vmatprep.subr.bf16.mxu0 %v9564_v13  ;;  %v10753_v54 = vpop.permute.xlu0 %10752  ;;  %v9576_v27 = vpack.c.bf16 %v6693_v33, %v6690_v34  ;;  %v10760_v11 = vunpack.i.h.bf16 %v10758_v59  ;;  %v10759_v15 = vunpack.i.l.bf16 %v10758_v59  ;;  %v9578_v18 = vpack.c.bf16 %v6692_v17, %v6689_v16 }
 0x4bf   :  { %v10755_v26 = vunpack.i.h.bf16 %v10753_v54  ;;  %v10754_v29 = vunpack.i.l.bf16 %v10753_v54  ;;  %9114 = vmatmul.mubr.msk.f32.vlgmr.msra.gmra.mrb[16].mxu1 %vm2211_vm9, %v6111_v43  ;;  %v6653_v43 = vld [vmem:[#allocation2 + $0x100] sm:$0xff] }
 0x4c0   :  { %9571 = vmatpush1.bf16.msra.mxu1 %v9570_v46  ;;  %9111 = vmatmul.mubr.msk.f32.gmra.mrb[18].mxu0 %vm2211_vm9, %v6112_v60  ;;  %v6696_v42 = vsel %vm1840_vm8, %v10759_v15, %v10760_v11 }
 0x4c1   :  { %v9584_v51 = vpack.c.bf16 %v10755_v26, %v10754_v29  ;;  %9567 = vmatpush1.bf16.msra.mxu0 %v9566_v47  ;;  %9573 = vmatprep.subr.bf16.mxu1 %v9572_v58  ;;  %v10763_v5 = vpop.permute.xlu1 %10762  ;;  %v6691_v12 = vsel %vm1840_vm8, %v10740_v19, %v10754_v29  ;;  %v6694_v35 = vsel %vm1840_vm8, %v10745_v14, %v10755_v26  ;;  %v6384_v19 = vld [vmem:[#allocation2 + $0xf0] sm:$0xff] }
 0x4c2   :  { %9577 = vmatprep.subr.bf16.mxu0 %v9576_v27  ;;  %v10768_v62 = vpop.permute.xlu0 %10767  ;;  %6346 = vmatprep.mubr.f32.mxu1 %v11139_v0  ;;  %v10765_v20 = vunpack.i.h.bf16 %v10763_v5  ;;  %v10764_v22 = vunpack.i.l.bf16 %v10763_v5  ;;  %v9586_v52 = vpack.c.bf16 %v6694_v35, %v6691_v12 }
 0x4c3   :  { %6263 = vmatprep.mubr.f32.mxu0 %v11139_v0  ;;  %9115 = vmatmul.mubr.msk.f32.gmra.mrb[18].mxu1 %vm2211_vm9, %v6112_v60  ;;  %v10770_v8 = vunpack.i.h.bf16 %v10768_v62  ;;  %v10769_v32 = vunpack.i.l.bf16 %v10768_v62 }
 0x4c4   :  { %9575 = vmatpush1.bf16.msra.mxu1 %v9574_v31  ;;  %9112 = vmatmul.mubr.msk.f32.gmra.mrb[20].mxu0 %vm2211_vm9, %v6113_v55  ;;  %v6695_v50 = vsel %vm1840_vm8, %v10764_v22, %v10759_v15 }
 0x4c5   :  { %9585 = vmatprep.subr.bf16.mxu1 %v9584_v51  ;;  %6352 = vmatprep.mubr.f32.mxu1 %v11139_v0  ;;  %v6699_v61 = vsel %vm1840_vm8, %v10769_v32, %v10770_v8  ;;  %v6698_v6 = vsel %vm1840_vm8, %v10765_v20, %v10769_v32 }
 0x4c6   :  { %6269 = vmatprep.mubr.f32.mxu0 %v11139_v0  ;;  %v9580_v36 = vpack.c.bf16 %v6699_v61, %v6696_v42  ;;  %v9582_v25 = vpack.c.bf16 %v6698_v6, %v6695_v50 }
 0x4c7   :  { %9116 = vmatmul.mubr.msk.f32.gmra.mrb[20].mxu1 %vm2211_vm9, %v6113_v55  ;;  %v10773_v10 = vpop.permute.xlu0 %10772 }
 0x4c8   :  { %9113 = vmatmul.mubr.msk.f32.gmra.mrb[22].mxu0 %vm2211_vm9, %v6114_v9  ;;  %6358 = vmatprep.mubr.f32.mxu1 %v11139_v0  ;;  %v10775_v23 = vunpack.i.h.bf16 %v10773_v10  ;;  %v10774_v1 = vunpack.i.l.bf16 %v10773_v10 }
 0x4c9   :  { %6522 = vmatprep.mubr.f32.mxu0 %v11139_v0 }
 0x4ca   :  { %v6697_v2 = vsel %vm1840_vm8, %v10760_v11, %v10774_v1  ;;  %v6700_v38 = vsel %vm1840_vm8, %v10770_v8, %v10775_v23  ;;  %v9588_v44 = vpack.c.bf16 %v10775_v23, %v10774_v1 }
 0x4cb   :  { %9117 = vmatmul.mubr.msk.f32.gmra.mrb[22].mxu1 %vm2211_vm9, %v6114_v9  ;;  %v9590_v37 = vpack.c.bf16 %v6700_v38, %v6697_v2 }
 0x4cc   :  { %9118 = vmatmul.mubr.msk.f32.vlgmr.msra.gmra.mrb[16].mxu0 %vm2211_vm9, %v6382_v21  ;;  %6611 = vmatprep.mubr.f32.mxu1 %v11139_v0 }
 0x4cd   :  { %9579 = vmatpush1.bf16.msra.mxu0 %v9578_v18  ;;  %6528 = vmatprep.mubr.f32.mxu0 %v11139_v0 }
 0x4ce   :  { %9581 = vmatprep.subr.bf16.mxu0 %v9580_v36 }
 0x4cf   :  { %9122 = vmatmul.mubr.msk.f32.vlgmr.msra.gmra.mrb[16].mxu1 %vm2211_vm9, %v6382_v21 }
 0x4d0   :  { %9587 = vmatpush1.bf16.msra.mxu1 %v9586_v52  ;;  %9119 = vmatmul.mubr.msk.f32.gmra.mrb[18].mxu0 %vm2211_vm9, %v6383_v63 }
 0x4d1   :  { %9583 = vmatpush1.bf16.msra.mxu0 %v9582_v25  ;;  %9589 = vmatprep.subr.bf16.mxu1 %v9588_v44 }
 0x4d2   :  { %6617 = vmatprep.mubr.f32.mxu1 %v11139_v0  ;;  %6534 = vmatprep.mubr.f32.mxu0 %v11139_v0  ;;  %v6926_v41 = vpop.permute.xlu1 %6925 }
 0x4d3   :  { %9123 = vmatmul.mubr.msk.f32.gmra.mrb[18].mxu1 %vm2211_vm9, %v6383_v63 }
 0x4d4   :  { %9591 = vmatpush1.bf16.msra.mxu1 %v9590_v37  ;;  %9120 = vmatmul.mubr.msk.f32.gmra.mrb[20].mxu0 %vm2211_vm9, %v6384_v19 }
 0x4d5   :  { %6623 = vmatprep.mubr.f32.mxu1 %v11139_v0  ;;  %6540 = vmatprep.mubr.f32.mxu0 %v11139_v0 }
 0x4d6   :  { %v6936_v56 = vpop.permute.xlu1 %6935 }
 0x4d7   :  { %9124 = vmatmul.mubr.msk.f32.gmra.mrb[20].mxu1 %vm2211_vm9, %v6384_v19 }
 0x4d8   :  { %9121 = vmatmul.mubr.msk.f32.gmra.mrb[22].mxu0 %vm2211_vm9, %v6385_v24  ;;  %6629 = vmatprep.mubr.f32.mxu1 %v11139_v0  ;;  %v6931_v28 = vpop.permute.xlu0 %6930 }
 0x4d9   :  { %6793 = vmatprep.mubr.f32.mxu0 %v11139_v0 }
 0x4db   :  { %9125 = vmatmul.mubr.msk.f32.gmra.mrb[22].mxu1 %vm2211_vm9, %v6385_v24 }
 0x4dc   :  { %9126 = vmatmul.mubr.msk.f32.vlgmr.msra.gmra.mrb[16].mxu0 %vm2211_vm9, %v6653_v43  ;;  %6882 = vmatprep.mubr.f32.mxu1 %v11139_v0  ;;  %v6941_v22 = vpop.permute.xlu0 %6940 }
 0x4dd   :  { %6799 = vmatprep.mubr.f32.mxu0 %v11139_v0 }
 0x4df   :  { %9130 = vmatmul.mubr.msk.f32.vlgmr.msra.gmra.mrb[16].mxu1 %vm2211_vm9, %v6653_v43 }
 0x4e0   :  { %9127 = vmatmul.mubr.msk.f32.gmra.mrb[18].mxu0 %vm2211_vm9, %v6654_v57  ;;  %6888 = vmatprep.mubr.f32.mxu1 %v11139_v0 }
 0x4e1   :  { %6805 = vmatprep.mubr.f32.mxu0 %v11139_v0 }
 0x4e3   :  { %9131 = vmatmul.mubr.msk.f32.gmra.mrb[18].mxu1 %vm2211_vm9, %v6654_v57 }
 0x4e4   :  { %9128 = vmatmul.mubr.msk.f32.gmra.mrb[20].mxu0 %vm2211_vm9, %v6655_v30  ;;  %6894 = vmatprep.mubr.f32.mxu1 %v11139_v0 }
 0x4e5   :  { %6811 = vmatprep.mubr.f32.mxu0 %v11139_v0 }
 0x4e7   :  { %9132 = vmatmul.mubr.msk.f32.gmra.mrb[20].mxu1 %vm2211_vm9, %v6655_v30 }
 0x4e8   :  { %9129 = vmatmul.mubr.msk.f32.gmra.mrb[22].mxu0 %vm2211_vm9, %v6656_v40  ;;  %6900 = vmatprep.mubr.f32.mxu1 %v11139_v0 }
 0x4e9   :  { %7118 = vmatprep.mubr.f32.mxu0 %v11139_v0 }
 0x4eb   :  { %9133 = vmatmul.mubr.msk.f32.gmra.mrb[22].mxu1 %vm2211_vm9, %v6656_v40 }
 0x4ec   :  { %9213 = vmatprep.mubr.msk.f32.mxu1 %vm11150_vm10, %v11139_v0 }
 0x5af   :  { %v6795_v45 = vpop.f32.mrb[16].mxu0 }
 0x5b0   :  { %v6943_v48 = vadd.f32 %v6926_v41, %v6795_v45  ;;  %v6797_v49 = vpop.f32.mrb[17].mxu0 }
 0x5b1   :  { %v6944_v39 = vadd.f32 %v6926_v41, %v6797_v49 }
 0x5b2   :  { %v6959_v14 = vmul.f32 0.2, %v6943_v48  ;;  %v6884_v7 = vpop.f32.mrb[16].mxu1 }
 0x5b3   :  { %v6960_v13 = vmul.f32 0.2, %v6944_v39  ;;  %v6945_v60 = vadd.f32 %v6926_v41, %v6884_v7  ;;  %v6801_v34 = vpop.f32.mrb[18].mxu0  ;;  %v6886_v33 = vpop.f32.mrb[17].mxu1 }
 0x5b4   :  { %v6947_v46 = vadd.f32 %v6931_v28, %v6801_v34  ;;  %v6946_v47 = vadd.f32 %v6926_v41, %v6886_v33  ;;  %v6803_v53 = vpop.f32.mrb[19].mxu0  ;;  %v12887_v58 = vmax.f32 %v6943_v48, %v6959_v14 }
 0x5b5   :  { %v6961_v54 = vmul.f32 0.2, %v6945_v60  ;;  %v6948_v27 = vadd.f32 %v6931_v28, %v6803_v53  ;;  %v12889_v51 = vmax.f32 %v6944_v39, %v6960_v13 }
 0x5b6   :  { %v6963_v59 = vmul.f32 0.2, %v6947_v46  ;;  %v6962_v26 = vmul.f32 0.2, %v6946_v47  ;;  %v6890_v29 = vpop.f32.mrb[18].mxu1 }
 0x5b7   :  { %v12891_v55 = vmax.f32 %v6945_v60, %v6961_v54  ;;  %v6964_v31 = vmul.f32 0.2, %v6948_v27  ;;  %v6949_v62 = vadd.f32 %v6931_v28, %v6890_v29  ;;  %v6807_v3 = vpop.f32.mrb[20].mxu0  ;;  %v6892_v4 = vpop.f32.mrb[19].mxu1 }
 0x5b8   :  { %v12893_v5 = vmax.f32 %v6947_v46, %v6963_v59  ;;  %v6978_v8 = vmax.f32 %v6946_v47, %v6962_v26  ;;  %v6951_v32 = vadd.f32 %v6936_v56, %v6807_v3  ;;  %v6950_v9 = vadd.f32 %v6931_v28, %v6892_v4  ;;  %v6809_v11 = vpop.f32.mrb[21].mxu0 }
 0x5b9   :  { %v12895_v15 = vmax.f32 %v6948_v27, %v6964_v31  ;;  %v6965_v16 = vmul.f32 0.2, %v6949_v62  ;;  %v6952_v17 = vadd.f32 %v6936_v56, %v6809_v11  ;;  %v12899_v20 = vpack.i.bf16 %v12891_v55, %v12889_v51  ;;  %v6991_v31 = vld [vmem:[%s13485_s8] sm:$0xf] }
 0x5ba   :  { %v6967_v10 = vmul.f32 0.2, %v6951_v32  ;;  %v6966_v21 = vmul.f32 0.2, %v6950_v9  ;;  %v6896_v61 = vpop.f32.mrb[20].mxu1  ;;  %v12921_v41 = vpack.i.bf16 %v12893_v5, %v12887_v58  ;;  %v9608_v54 = vpack.c.bf16 %v12893_v5, %v12887_v58 }
 0x5bb   :  { %v12901_v18 = vmax.f32 %v6949_v62, %v6965_v16  ;;  %v6968_v42 = vmul.f32 0.2, %v6952_v17  ;;  %v6953_v12 = vadd.f32 %v6936_v56, %v6896_v61  ;;  %v6898_v35 = vpop.f32.mrb[21].mxu1  ;;  %10777 = vrot.lane.b32.xlu1 %v12899_v20, %s11140_s27  ;;  %v6813_v23 = vpop.f32.mrb[22].mxu0  ;;  %v9606_v47 = vpack.c.bf16 %v12895_v15, %v12889_v51  ;;  %v6992_v5 = vld [vmem:[%s13484_s7] sm:$0xf] }
 0x5bc   :  { %v12905_v1 = vmax.f32 %v6951_v32, %v6967_v10  ;;  %v6982_v50 = vmax.f32 %v6950_v9, %v6966_v21  ;;  %v6954_v6 = vadd.f32 %v6936_v56, %v6898_v35  ;;  %v6955_v36 = vadd.f32 %v6941_v22, %v6813_v23  ;;  %v6815_v63 = vpop.f32.mrb[23].mxu0 }
 0x5bd   :  { %v12907_v52 = vmax.f32 %v6952_v17, %v6968_v42  ;;  %v6969_v25 = vmul.f32 0.2, %v6953_v12  ;;  %v6956_v2 = vadd.f32 %v6941_v22, %v6815_v63  ;;  %v12911_v38 = vpack.i.bf16 %v12901_v18, %v12895_v15 }
 0x5be   :  { %v6970_v44 = vmul.f32 0.2, %v6954_v6  ;;  %v6971_v19 = vmul.f32 0.2, %v6955_v36  ;;  %v6902_v37 = vpop.f32.mrb[22].mxu1  ;;  %v12913_v24 = vpack.i.bf16 %v6982_v50, %v6978_v8  ;;  %v9615_v53 = vpack.c.bf16 %v12901_v18, %v12891_v55 }
 0x5bf   :  { %v12915_v43 = vmax.f32 %v6953_v12, %v6969_v25  ;;  %v6972_v57 = vmul.f32 0.2, %v6956_v2  ;;  %v6957_v30 = vadd.f32 %v6941_v22, %v6902_v37  ;;  %v6904_v40 = vpop.f32.mrb[23].mxu1  ;;  %10782 = vrot.lane.b32.xlu1 %v12899_v20, %s11141_s10  ;;  %v11149_v27 = vmov 0.0|0.0  }
 0x5c0   :  { %v6986_v45 = vmax.f32 %v6954_v6, %v6970_v44  ;;  %v12923_v48 = vmax.f32 %v6955_v36, %v6971_v19  ;;  %v6958_v49 = vadd.f32 %v6941_v22, %v6904_v40  ;;  %10797 = vrot.lane.b32.xlu0 %v12913_v24, %s11142_s0  ;;  %9600 = vmatprep.subr.bf16.mxu1 %v11149_v27 }
 0x5c1   :  { %v12927_v39 = vmax.f32 %v6956_v2, %v6972_v57  ;;  %v6973_v28 = vmul.f32 0.2, %v6957_v30  ;;  %v12935_v13 = vpack.i.bf16 %v12915_v43, %v12907_v52 }
 0x5c2   :  { %v6974_v14 = vmul.f32 0.2, %v6958_v49  ;;  %v12941_v34 = vpack.i.bf16 %v12923_v48, %v12905_v1  ;;  %v9612_v26 = vpack.c.bf16 %v12923_v48, %v12905_v1 }
 0x5c3   :  { %v12929_v7 = vmax.f32 %v6957_v30, %v6973_v28  ;;  %10787 = vrot.lane.b32.xlu1 %v12899_v20, %s11142_s0  ;;  %v9610_v56 = vpack.c.bf16 %v12927_v39, %v12907_v52 }
 0x5c4   :  { %v6990_v60 = vmax.f32 %v6958_v49, %v6974_v14  ;;  %10802 = vrot.lane.b32.xlu0 %v12913_v24, %s11143_s11 }
 0x5c5   :  { %v12945_v33 = vpack.i.bf16 %v12929_v7, %v12927_v39  ;;  %v9618_v59 = vpack.c.bf16 %v12929_v7, %v12915_v43 }
 0x5c6   :  { %v12947_v46 = vpack.i.bf16 %v6990_v60, %v6986_v45 }
 0x5c7   :  { %10792 = vrot.lane.b32.xlu1 %v12899_v20, %s11143_s11 }
 0x5c8   :  { %10827 = vrot.lane.b32.xlu0 %v12911_v38, %s11140_s27 }
 0x5cb   :  { %10807 = vrot.lane.b32.xlu1 %v12921_v41, %s11140_s27 }
 0x5cc   :  { %10832 = vrot.lane.b32.xlu0 %v12911_v38, %s11141_s10 }
 0x5cf   :  { %10812 = vrot.lane.b32.xlu1 %v12921_v41, %s11141_s10 }
 0x5d0   :  { %10837 = vrot.lane.b32.xlu0 %v12911_v38, %s11142_s0 }
 0x5d3   :  { %10817 = vrot.lane.b32.xlu1 %v12921_v41, %s11142_s0 }
 0x5d4   :  { %10842 = vrot.lane.b32.xlu0 %v12911_v38, %s11143_s11 }
 0x5d7   :  { %10822 = vrot.lane.b32.xlu1 %v12921_v41, %s11143_s11 }
 0x5d8   :  { %10847 = vrot.lane.b32.xlu0 %v12935_v13, %s11140_s27 }
 0x5db   :  { %10857 = vrot.lane.b32.xlu1 %v12935_v13, %s11142_s0 }
 0x5dc   :  { %10852 = vrot.lane.b32.xlu0 %v12935_v13, %s11141_s10 }
 0x5df   :  { %10862 = vrot.lane.b32.xlu1 %v12935_v13, %s11143_s11 }
 0x5e0   :  { %10867 = vrot.lane.b32.xlu0 %v12947_v46, %s11142_s0 }
 0x5e3   :  { %10887 = vrot.lane.b32.xlu1 %v12941_v34, %s11142_s0 }
 0x5e4   :  { %10872 = vrot.lane.b32.xlu0 %v12947_v46, %s11143_s11 }
 0x5e7   :  { %10892 = vrot.lane.b32.xlu1 %v12941_v34, %s11143_s11 }
 0x5e8   :  { %10877 = vrot.lane.b32.xlu0 %v12941_v34, %s11140_s27 }
 0x5eb   :  { %10897 = vrot.lane.b32.xlu1 %v12945_v33, %s11140_s27 }
 0x5ec   :  { %10882 = vrot.lane.b32.xlu0 %v12941_v34, %s11141_s10 }
 0x5ef   :  { %10902 = vrot.lane.b32.xlu1 %v12899_v20, %s11144_s12 }
 0x5f0   :  { %10907 = vrot.lane.b32.xlu0 %v12911_v38, %s11144_s12 }
 0x5f3   :  { %10912 = vrot.lane.b32.xlu1 %v12921_v41, %s11144_s12 }
 0x5f4   :  { %10917 = vrot.lane.b32.xlu0 %v12913_v24, %s11144_s12 }
 0x5f7   :  { %10922 = vrot.lane.b32.xlu1 %v12935_v13, %s11144_s12 }
 0x5f8   :  { %10937 = vrot.lane.b32.xlu0 %v12947_v46, %s11144_s12 }
 0x5fb   :  { %10927 = vrot.lane.b32.xlu1 %v12945_v33, %s11141_s10 }
 0x5fc   :  { %10947 = vrot.lane.b32.xlu0 %v12911_v38, %s11145_s13 }
 0x5ff   :  { %10932 = vrot.lane.b32.xlu1 %v12941_v34, %s11144_s12 }
 0x600   :  { %10957 = vrot.lane.b32.xlu0 %v12913_v24, %s11145_s13 }
 0x603   :  { %10942 = vrot.lane.b32.xlu1 %v12899_v20, %s11145_s13 }
 0x604   :  { %10972 = vrot.lane.b32.xlu0 %v12947_v46, %s11145_s13 }
 0x607   :  { %10952 = vrot.lane.b32.xlu1 %v12921_v41, %s11145_s13 }
 0x608   :  { %10982 = vrot.lane.b32.xlu0 %v12945_v33, %s11142_s0 }
 0x60b   :  { %10962 = vrot.lane.b32.xlu1 %v12935_v13, %s11145_s13 }
 0x60c   :  { %10987 = vrot.lane.b32.xlu0 %v12911_v38, %s11146_s14 }
 0x60f   :  { %10967 = vrot.lane.b32.xlu1 %v12941_v34, %s11145_s13 }
 0x610   :  { %10997 = vrot.lane.b32.xlu0 %v12945_v33, %s11143_s11 }
 0x613   :  { %10977 = vrot.lane.b32.xlu1 %v12899_v20, %s11146_s14 }
 0x614   :  { %11002 = vrot.lane.b32.xlu0 %v12913_v24, %s11146_s14 }
 0x617   :  { %10992 = vrot.lane.b32.xlu1 %v12921_v41, %s11146_s14 }
 0x618   :  { %11017 = vrot.lane.b32.xlu0 %v12945_v33, %s11144_s12 }
 0x61b   :  { %11007 = vrot.lane.b32.xlu1 %v12935_v13, %s11146_s14 }
 0x61c   :  { %11022 = vrot.lane.b32.xlu0 %v12947_v46, %s11146_s14 }
 0x61f   :  { %11012 = vrot.lane.b32.xlu1 %v12941_v34, %s11146_s14 }
 0x620   :  { %11032 = vrot.lane.b32.xlu0 %v12945_v33, %s11145_s13 }
 0x623   :  { %11027 = vrot.lane.b32.xlu1 %v12899_v20, %s11147_s15 }
 0x624   :  { %11037 = vrot.lane.b32.xlu0 %v12911_v38, %s11147_s15 }
 0x627   :  { %11042 = vrot.lane.b32.xlu1 %v12921_v41, %s11147_s15 }
 0x628   :  { %11047 = vrot.lane.b32.xlu0 %v12945_v33, %s11146_s14 }
 0x62b   :  { %11057 = vrot.lane.b32.xlu1 %v12935_v13, %s11147_s15 }
 0x62c   :  { %11052 = vrot.lane.b32.xlu0 %v12913_v24, %s11147_s15 }
 0x62d   :  { %v10778_v29 = vpop.permute.xlu1 %10777 }
 0x62e   :  { %v10780_v32 = vunpack.i.h.bf16 %v10778_v29  ;;  %v10779_v9 = vunpack.i.l.bf16 %v10778_v29 }
 0x62f   :  { %11062 = vrot.lane.b32.xlu1 %v12941_v34, %s11147_s15 }
 0x630   :  { %11067 = vrot.lane.b32.xlu0 %v12945_v33, %s11147_s15  ;;  %v7032_v12 = vsel %vm76_vm0, %v10779_v9, %v10780_v32 }
 0x631   :  { %v13075_v62 = vpop.permute.xlu1 %10782 }
 0x632   :  { %v13077_v3 = vpop.permute.xlu0 %10797 }
 0x633   :  { %8768 = vperm.xlu1 %10135, %v6991_v31   ;;  %v10800_v1 = vunpack.i.h.bf16 %v13077_v3 }
 0x634   :  { %11072 = vrot.lane.b32.xlu0 %v12947_v46, %s11147_s15 }
 0x635   :  { %v13081_v4 = vpop.permute.xlu1 %10787 }
 0x636   :  { %v10803_v8 = vpop.permute.xlu0 %10802  ;;  %v10790_v43 = vunpack.i.h.bf16 %v13081_v4  ;;  %v10789_v7 = vunpack.i.l.bf16 %v13081_v4 }
 0x637   :  { %v10804_v16 = vunpack.i.l.bf16 %v10803_v8  ;;  %v10805_v24 = vunpack.i.h.bf16 %v10803_v8 }
 0x639   :  { %v13083_v11 = vpop.permute.xlu1 %10792 }
 0x63a   :  { %v10795_v17 = vunpack.i.h.bf16 %v13083_v11  ;;  %v10828_v20 = vpop.permute.xlu0 %10827 }
 0x63b   :  { %v10830_v22 = vunpack.i.h.bf16 %v10828_v20  ;;  %v10829_v10 = vunpack.i.l.bf16 %v10828_v20 }
 0x63c   :  { %v13089_v21 = vsel %vm932_vm4, %v10795_v17, %v10804_v16 }
 0x63d   :  { %v9601_v61 = vpack.c.bf16 %v10830_v22, %v10780_v32  ;;  %v10808_v42 = vpop.permute.xlu1 %10807  ;;  %v7034_v35 = vsel %vm76_vm0, %v10829_v10, %v10830_v22 }
 0x63e   :  { %v10810_v23 = vunpack.i.h.bf16 %v10808_v42  ;;  %v10809_v50 = vunpack.i.l.bf16 %v10808_v42  ;;  %v13093_v6 = vpop.permute.xlu0 %10832  ;;  %v9592_v36 = vpack.c.bf16 %v7034_v35, %v7032_v12 }
 0x63f   :  { %9602 = vmatpush3.bf16.msra.mxu1 %v9601_v61 }
 0x640   :  { %v7031_v63 = vsel %vm76_vm0, %v10809_v50, %v10779_v9  ;;  %v7033_v25 = vsel %vm76_vm0, %v10810_v23, %v10829_v10  ;;  %9593 = vmatprep.subr.bf16.mxu0 %v9592_v36  ;;  %9603 = vmatprep.subr.bf16.mxu1 %v11149_v27 }
 0x641   :  { %v9594_v2 = vpack.c.bf16 %v7033_v25, %v7031_v63  ;;  %v13098_v38 = vpop.permute.xlu1 %10812  ;;  %v9134_v25 = vld [vmem:[%s13484_s7 + $0x4] sm:$0xf] }
 0x642   :  { %v13100_v44 = vpop.permute.xlu0 %10837 }
 0x643   :  { %9595 = vmatpush1.bf16.msra.mxu0 %v9594_v2  ;;  %v10835_v2 = vunpack.i.h.bf16 %v13093_v6  ;;  %v10839_v52 = vunpack.i.l.bf16 %v13100_v44 }
 0x645   :  { %v13102_v19 = vpop.permute.xlu1 %10817 }
 0x646   :  { %v13104_v37 = vpop.permute.xlu0 %10842 }
 0x647   :  { %v10845_v57 = vunpack.i.h.bf16 %v13104_v37 }
 0x649   :  { %v13110_v30 = vsel %vm932_vm4, %v10845_v57, %v10805_v24  ;;  %v13112_v40 = vpop.permute.xlu1 %10822  ;;  %v10834_v24 = vunpack.i.l.bf16 %v13093_v6  ;;  %v10814_v6 = vunpack.i.l.bf16 %v13098_v38 }
 0x64a   :  { %v9657_v41 = vpack.c.bf16 %v13110_v30, %v13089_v21  ;;  %v10848_v45 = vpop.permute.xlu0 %10847 }
 0x64b   :  { %v10850_v29 = vunpack.i.h.bf16 %v10848_v45  ;;  %v10849_v31 = vunpack.i.l.bf16 %v10848_v45  ;;  %v10785_v45 = vunpack.i.h.bf16 %v13075_v62  ;;  %v7368_v51 = vsel %vm478_vm2, %v10834_v24, %v10835_v2 }
 0x64d   :  { %v13116_v49 = vpop.permute.xlu1 %10857  ;;  %v7036_v10 = vsel %vm76_vm0, %v10849_v31, %v10850_v29 }
 0x64e   :  { %v13118_v28 = vpop.permute.xlu0 %10852 }
 0x64f   :  { %v10855_v39 = vunpack.i.h.bf16 %v13118_v28 }
 0x651   :  { %v13120_v14 = vpop.permute.xlu1 %10862 }
 0x652   :  { %v13122_v13 = vpop.permute.xlu0 %10867 }
 0x655   :  { %v13124_v60 = vpop.permute.xlu1 %10887 }
 0x656   :  { %v13126_v34 = vpop.permute.xlu0 %10872 }
 0x659   :  { %v13128_v33 = vpop.permute.xlu1 %10892 }
 0x65a   :  { %v10878_v46 = vpop.permute.xlu0 %10877 }
 0x65b   :  { %v10879_v8 = vunpack.i.l.bf16 %v10878_v46  ;;  %v10880_v9 = vunpack.i.h.bf16 %v10878_v46  ;;  %v10784_v46 = vunpack.i.l.bf16 %v13075_v62 }
 0x65d   :  { %v10898_v32 = vpop.permute.xlu1 %10897  ;;  %v7035_v61 = vsel %vm76_vm0, %v10879_v8, %v10849_v31  ;;  %v10815_v31 = vunpack.i.h.bf16 %v13098_v38  ;;  %v7366_v55 = vsel %vm478_vm2, %v10784_v46, %v10785_v45  ;;  %v7365_v18 = vsel %vm478_vm2, %v10814_v6, %v10784_v46  ;;  %v9139_v46 = vld [vmem:[%s13484_s7 + $0x8] sm:$0xf] }
 0x65e   :  { %v10900_v16 = vunpack.i.h.bf16 %v10898_v32  ;;  %v10899_v20 = vunpack.i.l.bf16 %v10898_v32  ;;  %v13130_v22 = vpop.permute.xlu0 %10882  ;;  %v9620_v58 = vpack.c.bf16 %v7368_v51, %v7366_v55  ;;  %v9629_v38 = vpack.c.bf16 %v10835_v2, %v10785_v45 }
 0x65f   :  { %v7571_v45 = vsel %vm705_vm3, %v10789_v7, %v10790_v43  ;;  %v10844_v55 = vunpack.i.l.bf16 %v13104_v37 }
 0x660   :  { %v9604_v42 = vpack.c.bf16 %v10900_v16, %v10850_v29  ;;  %v7037_v12 = vsel %vm76_vm0, %v10880_v9, %v10899_v20  ;;  %v7038_v35 = vsel %vm76_vm0, %v10899_v20, %v10900_v16  ;;  %v10885_v9 = vunpack.i.h.bf16 %v13130_v22 }
 0x661   :  { %v9598_v23 = vpack.c.bf16 %v7037_v12, %v7035_v61  ;;  %v13136_v50 = vpop.permute.xlu1 %10902  ;;  %v9596_v36 = vpack.c.bf16 %v7038_v35, %v7036_v10 }
 0x662   :  { %v13138_v63 = vpop.permute.xlu0 %10907  ;;  %9605 = vmatpush3.bf16.msra.mxu1 %v9604_v42  ;;  %v10799_v42 = vunpack.i.l.bf16 %v13077_v3 }
 0x663   :  { %9597 = vmatprep.subr.bf16.mxu0 %v9596_v36  ;;  %9614 = vmatprep.subr.bf16.mxu1 %v11149_v27 }
 0x664   :  { %9599 = vmatpush1.bf16.msra.mxu0 %v9598_v23  ;;  %v7572_v3 = vsel %vm705_vm3, %v10790_v43, %v10799_v42  ;;  %v10904_v42 = vunpack.i.l.bf16 %v13136_v50 }
 0x665   :  { %v13148_v29 = vpop.permute.xlu1 %10912  ;;  %9607 = vmatprep.subr.bf16.mxu0 %v9606_v47  ;;  %9214 = vmatmul.mubr.msk.f32.vlgmr.msra.gmra.mrb[24].mxu1 %vm2211_vm9, %v9134_v25  ;;  %v7367_v47 = vsel %vm478_vm2, %v10815_v31, %v10834_v24 }
 0x666   :  { %v13156_v8 = vpop.permute.xlu0 %10917  ;;  %9616 = vmatpush3.bf16.msra.mxu1 %v9615_v53  ;;  %9224 = vmatprep.mubr.msk.f32.mxu1 %vm11150_vm10, %v11139_v0  ;;  %v10840_v53 = vunpack.i.h.bf16 %v13100_v44  ;;  %v10820_v44 = vunpack.i.h.bf16 %v13102_v19 }
 0x667   :  { %9135 = vmatmul.mubr.msk.f32.vlgmr.msra.gmra.mrb[24].mxu0 %vm2211_vm9, %v9134_v25  ;;  %9617 = vmatprep.subr.bf16.mxu1 %v11149_v27 }
 0x668   :  { %9609 = vmatpush1.bf16.msra.mxu0 %v9608_v54  ;;  %7262 = vmatprep.mubr.f32.mxu0 %v11139_v0  ;;  %v10854_v54 = vunpack.i.l.bf16 %v13118_v28  ;;  %v10819_v28 = vunpack.i.l.bf16 %v13102_v19  ;;  %v7574_v4 = vsel %vm705_vm3, %v10839_v52, %v10840_v53  ;;  %v7575_v12 = vsel %vm705_vm3, %v10840_v53, %v10800_v1 }
 0x669   :  { %v13170_v15 = vpop.permute.xlu1 %10922  ;;  %9611 = vmatprep.subr.bf16.mxu0 %v9610_v56  ;;  %v10884_v56 = vunpack.i.l.bf16 %v13130_v22  ;;  %v7573_v2 = vsel %vm705_vm3, %v10820_v44, %v10839_v52  ;;  %v9634_v31 = vpack.c.bf16 %v7574_v4, %v7571_v45  ;;  %v9643_v6 = vpack.c.bf16 %v7575_v12, %v7572_v3 }
 0x66a   :  { %v13179_v62 = vpop.permute.xlu0 %10937  ;;  %9619 = vmatpush3.bf16.msra.mxu1 %v9618_v59  ;;  %v9622_v59 = vpack.c.bf16 %v7367_v47, %v7365_v18  ;;  %v7570_v25 = vsel %vm705_vm3, %v10819_v28, %v10789_v7  ;;  %v10825_v47 = vunpack.i.h.bf16 %v13112_v40  ;;  %v10824_v53 = vunpack.i.l.bf16 %v13112_v40 }
 0x66b   :  { %9628 = vmatprep.subr.bf16.mxu1 %v11149_v27  ;;  %v7369_v48 = vsel %vm478_vm2, %v10884_v56, %v10854_v54  ;;  %v9636_v51 = vpack.c.bf16 %v7573_v2, %v7570_v25  ;;  %v10889_v40 = vunpack.i.l.bf16 %v13124_v60  ;;  %v10870_v44 = vunpack.i.h.bf16 %v13122_v13 }
 0x66c   :  { %9613 = vmatpush1.bf16.msra.mxu0 %v9612_v26  ;;  %v7370_v26 = vsel %vm478_vm2, %v10854_v54, %v10855_v39  ;;  %v10869_v54 = vunpack.i.l.bf16 %v13122_v13  ;;  %v10910_v12 = vunpack.i.h.bf16 %v13138_v63  ;;  %v10915_v25 = vunpack.i.h.bf16 %v13148_v29 }
 0x66d   :  { %v10928_v32 = vpop.permute.xlu1 %10927  ;;  %9621 = vmatprep.subr.bf16.mxu0 %v9620_v58  ;;  %9225 = vmatmul.mubr.msk.f32.vlgmr.msra.gmra.mrb[26].mxu1 %vm2211_vm9, %v6992_v5  ;;  %v10860_v58 = vunpack.i.h.bf16 %v13116_v49  ;;  %v10914_v2 = vunpack.i.l.bf16 %v13148_v29  ;;  %v10919_v45 = vunpack.i.l.bf16 %v13156_v8  ;;  %v10939_v30 = vunpack.i.l.bf16 %v13179_v62 }
 0x66e   :  { %v10930_v16 = vunpack.i.h.bf16 %v10928_v32  ;;  %v10929_v20 = vunpack.i.l.bf16 %v10928_v32  ;;  %v13201_v10 = vpop.permute.xlu0 %10947  ;;  %9630 = vmatpush3.bf16.msra.mxu1 %v9629_v38  ;;  %9235 = vmatprep.mubr.msk.f32.mxu1 %vm11150_vm10, %v11139_v0  ;;  %v13252_v38 = vsel %vm932_vm4, %v10825_v47, %v10844_v55  ;;  %v10890_v32 = vunpack.i.h.bf16 %v13124_v60 }
 0x66f   :  { %9137 = vmatmul.mubr.msk.f32.vlgmr.msra.gmra.mrb[24].mxu0 %vm2211_vm9, %v6992_v5  ;;  %9631 = vmatprep.subr.bf16.mxu1 %v11149_v27  ;;  %v10859_v5 = vunpack.i.l.bf16 %v13116_v49  ;;  %v7578_v1 = vsel %vm705_vm3, %v10860_v58, %v10869_v54  ;;  %v10894_v60 = vunpack.i.l.bf16 %v13128_v33 }
 0x670   :  { %v9632_v19 = vpack.c.bf16 %v10930_v16, %v10855_v39  ;;  %v7371_v22 = vsel %vm478_vm2, %v10885_v9, %v10929_v20  ;;  %9623 = vmatpush1.bf16.msra.mxu0 %v9622_v59  ;;  %v7372_v61 = vsel %vm478_vm2, %v10929_v20, %v10930_v16  ;;  %7452 = vmatprep.mubr.f32.mxu0 %v11139_v0  ;;  %v10794_v39 = vunpack.i.l.bf16 %v13083_v11 }
 0x671   :  { %v9626_v35 = vpack.c.bf16 %v7371_v22, %v7369_v48  ;;  %v13216_v23 = vpop.permute.xlu1 %10932  ;;  %v9624_v36 = vpack.c.bf16 %v7372_v61, %v7370_v26  ;;  %v7577_v7 = vsel %vm705_vm3, %v10859_v5, %v10860_v58  ;;  %v7779_v59 = vsel %vm932_vm4, %v10844_v55, %v10845_v57 }
 0x672   :  { %v13220_v24 = vpop.permute.xlu0 %10957  ;;  %9633 = vmatpush3.bf16.msra.mxu1 %v9632_v19  ;;  %v13249_v56 = vsel %vm932_vm4, %v10824_v53, %v10794_v39  ;;  %v10865_v16 = vunpack.i.h.bf16 %v13120_v14  ;;  %v10864_v20 = vunpack.i.l.bf16 %v13120_v14  ;;  %v10874_v48 = vunpack.i.l.bf16 %v13126_v34 }
 0x673   :  { %9625 = vmatprep.subr.bf16.mxu0 %v9624_v36  ;;  %9642 = vmatprep.subr.bf16.mxu1 %v11149_v27  ;;  %v7576_v26 = vsel %vm705_vm3, %v10889_v40, %v10859_v5  ;;  %v10905_v19 = vunpack.i.h.bf16 %v13136_v50  ;;  %v9142_v50 = vld [vmem:[%s13484_s7 + $0xc] sm:$0xf]  ;;  %v9650_v3 = vpack.c.bf16 %v13252_v38, %v13249_v56  ;;  %v10920_v55 = vunpack.i.h.bf16 %v13156_v8 }
 0x674   :  { %9627 = vmatpush1.bf16.msra.mxu0 %v9626_v35  ;;  %v10909_v35 = vunpack.i.l.bf16 %v13138_v63  ;;  %v10875_v63 = vunpack.i.h.bf16 %v13126_v34  ;;  %v7783_v11 = vsel %vm932_vm4, %v10865_v16, %v10874_v48  ;;  %v10925_v8 = vunpack.i.h.bf16 %v13170_v15 }
 0x675   :  { %v13229_v18 = vpop.permute.xlu1 %10942  ;;  %9635 = vmatprep.subr.bf16.mxu0 %v9634_v31  ;;  %9236 = vmatmul.mubr.msk.f32.vlgmr.msra.gmra.mrb[28].mxu1 %vm2211_vm9, %v9139_v46  ;;  %v7981_v58 = vsel %vm1159_vm5, %v10904_v42, %v10905_v19  ;;  %v7982_v54 = vsel %vm1159_vm5, %v10905_v19, %v10919_v45  ;;  %v10924_v40 = vunpack.i.l.bf16 %v13170_v15  ;;  %v7985_v21 = vsel %vm1159_vm5, %v10910_v12, %v10920_v55 }
 0x676   :  { %v13236_v52 = vpop.permute.xlu0 %10972  ;;  %9644 = vmatpush3.bf16.msra.mxu1 %v9643_v6  ;;  %9246 = vmatprep.mubr.msk.f32.mxu1 %vm11150_vm10, %v11139_v0  ;;  %v7782_v6 = vsel %vm932_vm4, %v10864_v20, %v10865_v16  ;;  %v7984_v5 = vsel %vm1159_vm5, %v10909_v35, %v10910_v12  ;;  %v10945_v48 = vunpack.i.h.bf16 %v13229_v18  ;;  %v7988_v19 = vsel %vm1159_vm5, %v10925_v8, %v10939_v30 }
 0x677   :  { %9140 = vmatmul.mubr.msk.f32.vlgmr.msra.gmra.mrb[24].mxu0 %vm2211_vm9, %v9139_v46  ;;  %9645 = vmatprep.subr.bf16.mxu1 %v11149_v27  ;;  %v7776_v46 = vsel %vm932_vm4, %v10794_v39, %v10795_v17  ;;  %v10895_v17 = vunpack.i.h.bf16 %v13128_v33  ;;  %v13301_v39 = vsel %vm1159_vm5, %v10915_v25, %v10909_v35  ;;  %v13304_v33 = vsel %vm1159_vm5, %v10914_v2, %v10904_v42 }
 0x678   :  { %9637 = vmatpush1.bf16.msra.mxu0 %v9636_v51  ;;  %7661 = vmatprep.mubr.f32.mxu0 %v11139_v0  ;;  %v9648_v29 = vpack.c.bf16 %v7779_v59, %v7776_v46  ;;  %v7781_v51 = vsel %vm932_vm4, %v10894_v60, %v10864_v20  ;;  %v9664_v16 = vpack.c.bf16 %v13301_v39, %v13304_v33  ;;  %v10934_v20 = vunpack.i.l.bf16 %v13216_v23  ;;  %v9148_v39 = vld [vmem:[%s13484_s7 + $0x14] sm:$0xf] }
 0x679   :  { %v13246_v49 = vpop.permute.xlu1 %10952  ;;  %v7987_v60 = vsel %vm1159_vm5, %v10924_v40, %v10925_v8  ;;  %v10975_v45 = vunpack.i.h.bf16 %v13236_v52 }
 0x67a   :  { %v10983_v43 = vpop.permute.xlu0 %10982  ;;  %v10954_v42 = vunpack.i.l.bf16 %v13246_v49  ;;  %v7986_v25 = vsel %vm1159_vm5, %v10934_v20, %v10924_v40 }
 0x67b   :  { %v10985_v28 = vunpack.i.h.bf16 %v10983_v43  ;;  %v10984_v9 = vunpack.i.l.bf16 %v10983_v43 }
 0x67d   :  { %v7581_v37 = vsel %vm705_vm3, %v10985_v28, %v10870_v44  ;;  %v7579_v57 = vsel %vm705_vm3, %v10890_v32, %v10984_v9  ;;  %v13267_v4 = vpop.permute.xlu1 %10962  ;;  %v7580_v13 = vsel %vm705_vm3, %v10984_v9, %v10985_v28  ;;  %v10950_v44 = vunpack.i.h.bf16 %v13201_v10 }
 0x67e   :  { %v9646_v22 = vpack.c.bf16 %v7581_v37, %v7578_v1  ;;  %v9640_v14 = vpack.c.bf16 %v7579_v57, %v7576_v26  ;;  %v13272_v61 = vpop.permute.xlu0 %10987  ;;  %v9638_v36 = vpack.c.bf16 %v7580_v13, %v7577_v7  ;;  %v10949_v32 = vunpack.i.l.bf16 %v13201_v10  ;;  %v9145_v26 = vld [vmem:[%s13484_s7 + $0x10] sm:$0xf] }
 0x67f   :  { %v9662_v9 = vpack.c.bf16 %v7984_v5, %v7981_v58  ;;  %v10960_v1 = vunpack.i.h.bf16 %v13220_v24  ;;  %v9671_v37 = vpack.c.bf16 %v7985_v21, %v7982_v54  ;;  %v10940_v57 = vunpack.i.h.bf16 %v13179_v62 }
 0x680   :  { %9647 = vmatpush3.bf16.msra.mxu1 %v9646_v22  ;;  %9639 = vmatprep.subr.bf16.mxu0 %v9638_v36  ;;  %v10944_v10 = vunpack.i.l.bf16 %v13229_v18  ;;  %v10959_v22 = vunpack.i.l.bf16 %v13220_v24  ;;  %v10935_v62 = vunpack.i.h.bf16 %v13216_v23  ;;  %v8189_v36 = vsel %vm1386_vm6, %v10949_v32, %v10950_v44 }
 0x681   :  { %v13289_v31 = vpop.permute.xlu1 %10967  ;;  %9656 = vmatprep.subr.bf16.mxu1 %v11149_v27  ;;  %9641 = vmatpush1.bf16.msra.mxu0 %v9640_v14  ;;  %v10955_v14 = vunpack.i.h.bf16 %v13246_v49  ;;  %v8190_v2 = vsel %vm1386_vm6, %v10950_v44, %v10960_v1  ;;  %v10974_v23 = vunpack.i.l.bf16 %v13236_v52 }
 0x682   :  { %v10998_v47 = vpop.permute.xlu0 %10997  ;;  %9649 = vmatprep.subr.bf16.mxu0 %v9648_v29  ;;  %v8187_v24 = vsel %vm1386_vm6, %v10945_v48, %v10959_v22  ;;  %v8185_v29 = vsel %vm1386_vm6, %v10954_v42, %v10944_v10  ;;  %v10970_v30 = vunpack.i.h.bf16 %v13289_v31  ;;  %v9151_v42 = vld [vmem:[%s13484_s7 + $0x18] sm:$0xf] }
 0x683   :  { %v11000_v53 = vunpack.i.h.bf16 %v10998_v47  ;;  %v10999_v34 = vunpack.i.l.bf16 %v10998_v47  ;;  %9247 = vmatmul.mubr.msk.f32.vlgmr.msra.gmra.mrb[30].mxu1 %vm2211_vm9, %v9142_v50  ;;  %v9685_v33 = vpack.c.bf16 %v8190_v2, %v8187_v24 }
 0x684   :  { %9658 = vmatpush3.bf16.msra.mxu1 %v9657_v41  ;;  %9257 = vmatprep.mubr.msk.f32.mxu1 %vm11150_vm10, %v11139_v0 }
 0x685   :  { %v7786_v56 = vsel %vm932_vm4, %v11000_v53, %v10875_v63  ;;  %v7784_v38 = vsel %vm932_vm4, %v10895_v17, %v10999_v34  ;;  %9143 = vmatmul.mubr.msk.f32.vlgmr.msra.gmra.mrb[24].mxu0 %vm2211_vm9, %v9142_v50  ;;  %v13317_v43 = vpop.permute.xlu1 %10977  ;;  %9659 = vmatprep.subr.bf16.mxu1 %v11149_v27  ;;  %v7785_v7 = vsel %vm932_vm4, %v10999_v34, %v11000_v53  ;;  %v10964_v17 = vunpack.i.l.bf16 %v13267_v4 }
 0x686   :  { %v9660_v41 = vpack.c.bf16 %v7786_v56, %v7783_v11  ;;  %v9654_v59 = vpack.c.bf16 %v7784_v38, %v7781_v51  ;;  %9651 = vmatpush1.bf16.msra.mxu0 %v9650_v3  ;;  %v13323_v15 = vpop.permute.xlu0 %11002  ;;  %7866 = vmatprep.mubr.f32.mxu0 %v11139_v0  ;;  %v9652_v28 = vpack.c.bf16 %v7785_v7, %v7782_v6  ;;  %v10965_v6 = vunpack.i.h.bf16 %v13267_v4 }
 0x687   :  { %v8186_v3 = vsel %vm1386_vm6, %v10944_v10, %v10945_v48  ;;  %v8188_v63 = vsel %vm1386_vm6, %v10955_v14, %v10949_v32  ;;  %v10969_v51 = vunpack.i.l.bf16 %v13289_v31  ;;  %v10980_v53 = vunpack.i.h.bf16 %v13317_v43 }
 0x688   :  { %9661 = vmatpush3.bf16.msra.mxu1 %v9660_v41  ;;  %9653 = vmatprep.subr.bf16.mxu0 %v9652_v28  ;;  %v10979_v34 = vunpack.i.l.bf16 %v13317_v43  ;;  %v11004_v58 = vunpack.i.l.bf16 %v13323_v15  ;;  %v9678_v54 = vpack.c.bf16 %v8188_v63, %v8185_v29  ;;  %v10990_v4 = vunpack.i.h.bf16 %v13272_v61 }
 0x689   :  { %v13338_v13 = vpop.permute.xlu1 %10992  ;;  %9670 = vmatprep.subr.bf16.mxu1 %v11149_v27  ;;  %v9676_v40 = vpack.c.bf16 %v8189_v36, %v8186_v3  ;;  %v8193_v56 = vsel %vm1386_vm6, %v10965_v6, %v10974_v23  ;;  %v11005_v38 = vunpack.i.h.bf16 %v13323_v15  ;;  %v8192_v44 = vsel %vm1386_vm6, %v10964_v17, %v10965_v6 }
 0x68a   :  { %9655 = vmatpush1.bf16.msra.mxu0 %v9654_v59  ;;  %v11018_v12 = vpop.permute.xlu0 %11017  ;;  %v10995_v43 = vunpack.i.h.bf16 %v13338_v13  ;;  %v10994_v7 = vunpack.i.l.bf16 %v13338_v13  ;;  %v10989_v32 = vunpack.i.l.bf16 %v13272_v61  ;;  %v8191_v28 = vsel %vm1386_vm6, %v10969_v51, %v10964_v17 }
 0x68b   :  { %v11020_v18 = vunpack.i.h.bf16 %v11018_v12  ;;  %v11019_v35 = vunpack.i.l.bf16 %v11018_v12  ;;  %9663 = vmatprep.subr.bf16.mxu0 %v9662_v9  ;;  %9258 = vmatmul.mubr.msk.f32.vlgmr.msra.gmra.mrb[32].mxu1 %vm2211_vm9, %v9145_v26  ;;  %v8392_v15 = vsel %vm1613_vm7, %v10980_v53, %v11004_v58  ;;  %v8391_v9 = vsel %vm1613_vm7, %v10979_v34, %v10980_v53 }
 0x68c   :  { %9672 = vmatpush3.bf16.msra.mxu1 %v9671_v37  ;;  %9268 = vmatprep.mubr.msk.f32.mxu1 %vm11150_vm10, %v11139_v0  ;;  %v8395_v61 = vsel %vm1613_vm7, %v10990_v4, %v11005_v38  ;;  %v8393_v48 = vsel %vm1613_vm7, %v10995_v43, %v10989_v32  ;;  %v8394_v14 = vsel %vm1613_vm7, %v10989_v32, %v10990_v4 }
 0x68d   :  { %v7991_v49 = vsel %vm1159_vm5, %v11020_v18, %v10940_v57  ;;  %v7989_v46 = vsel %vm1159_vm5, %v10935_v62, %v11019_v35  ;;  %9146 = vmatmul.mubr.msk.f32.vlgmr.msra.gmra.mrb[24].mxu0 %vm2211_vm9, %v9145_v26  ;;  %v13359_v50 = vpop.permute.xlu1 %11007  ;;  %9673 = vmatprep.subr.bf16.mxu1 %v11149_v27  ;;  %v7990_v47 = vsel %vm1159_vm5, %v11019_v35, %v11020_v18 }
 0x68e   :  { %v9674_v11 = vpack.c.bf16 %v7991_v49, %v7988_v19  ;;  %9665 = vmatpush1.bf16.msra.mxu0 %v9664_v16  ;;  %v13366_v52 = vpop.permute.xlu0 %11022  ;;  %8071 = vmatprep.mubr.f32.mxu0 %v11139_v0  ;;  %v9668_v55 = vpack.c.bf16 %v7989_v46, %v7986_v25  ;;  %v9666_v5 = vpack.c.bf16 %v7990_v47, %v7987_v60  ;;  %v11010_v60 = vunpack.i.h.bf16 %v13359_v50 }
 0x68f   :  { %v8390_v26 = vsel %vm1613_vm7, %v10994_v7, %v10979_v34  ;;  %v11009_v19 = vunpack.i.l.bf16 %v13359_v50  ;;  %v11024_v22 = vunpack.i.l.bf16 %v13366_v52  ;;  %v9699_v12 = vpack.c.bf16 %v8395_v61, %v8392_v15 }
 0x690   :  { %9675 = vmatpush3.bf16.msra.mxu1 %v9674_v11  ;;  %9667 = vmatprep.subr.bf16.mxu0 %v9666_v5  ;;  %v9692_v62 = vpack.c.bf16 %v8393_v48, %v8390_v26  ;;  %v9690_v36 = vpack.c.bf16 %v8394_v14, %v8391_v9  ;;  %v11025_v49 = vunpack.i.h.bf16 %v13366_v52 }
 0x691   :  { %v13379_v8 = vpop.permute.xlu1 %11012  ;;  %9684 = vmatprep.subr.bf16.mxu1 %v11149_v27  ;;  %v8398_v63 = vsel %vm1613_vm7, %v11010_v60, %v11024_v22  ;;  %v8397_v11 = vsel %vm1613_vm7, %v11009_v19, %v11010_v60 }
 0x692   :  { %v11033_v21 = vpop.permute.xlu0 %11032  ;;  %9669 = vmatpush1.bf16.msra.mxu0 %v9668_v55  ;;  %v11014_v18 = vunpack.i.l.bf16 %v13379_v8  ;;  %v11015_v46 = vunpack.i.h.bf16 %v13379_v8 }
 0x693   :  { %v11035_v41 = vunpack.i.h.bf16 %v11033_v21  ;;  %v11034_v59 = vunpack.i.l.bf16 %v11033_v21  ;;  %9269 = vmatmul.mubr.msk.f32.vlgmr.msra.gmra.mrb[34].mxu1 %vm2211_vm9, %v9148_v39  ;;  %9677 = vmatprep.subr.bf16.mxu0 %v9676_v40 }
 0x694   :  { %9686 = vmatpush3.bf16.msra.mxu1 %v9685_v33  ;;  %9279 = vmatprep.mubr.msk.f32.mxu1 %vm11150_vm10, %v11139_v0  ;;  %v8396_v17 = vsel %vm1613_vm7, %v11014_v18, %v11009_v19 }
 0x695   :  { %v8196_v16 = vsel %vm1386_vm6, %v11035_v41, %v10975_v45  ;;  %v8194_v31 = vsel %vm1386_vm6, %v10970_v30, %v11034_v59  ;;  %v13395_v20 = vpop.permute.xlu1 %11027  ;;  %9687 = vmatprep.subr.bf16.mxu1 %v11149_v27  ;;  %v8195_v1 = vsel %vm1386_vm6, %v11034_v59, %v11035_v41  ;;  %9149 = vmatmul.mubr.msk.f32.vlgmr.msra.gmra.mrb[24].mxu0 %vm2211_vm9, %v9148_v39 }
 0x696   :  { %v9688_v37 = vpack.c.bf16 %v8196_v16, %v8193_v56  ;;  %v11038_v57 = vpop.permute.xlu0 %11037  ;;  %v9682_v10 = vpack.c.bf16 %v8194_v31, %v8191_v28  ;;  %9679 = vmatpush1.bf16.msra.mxu0 %v9678_v54  ;;  %v9680_v13 = vpack.c.bf16 %v8195_v1, %v8192_v44  ;;  %8276 = vmatprep.mubr.f32.mxu0 %v11139_v0  ;;  %v11030_v25 = vunpack.i.h.bf16 %v13395_v20  ;;  %v9154_v56 = vld [vmem:[%s13484_s7 + $0x1c] sm:$0xf] }
 0x697   :  { %v11029_v2 = vunpack.i.l.bf16 %v13395_v20  ;;  %v11040_v24 = vunpack.i.h.bf16 %v11038_v57  ;;  %v11039_v45 = vunpack.i.l.bf16 %v11038_v57 }
 0x698   :  { %9689 = vmatpush3.bf16.msra.mxu1 %v9688_v37  ;;  %9681 = vmatprep.subr.bf16.mxu0 %v9680_v13 }
 0x699   :  { %v11043_v35 = vpop.permute.xlu1 %11042  ;;  %9698 = vmatprep.subr.bf16.mxu1 %v11149_v27  ;;  %v8596_v58 = vsel %vm1840_vm8, %v11029_v2, %v11030_v25  ;;  %v8599_v5 = vsel %vm1840_vm8, %v11039_v45, %v11040_v24 }
 0x69a   :  { %v11048_v23 = vpop.permute.xlu0 %11047  ;;  %9683 = vmatpush1.bf16.msra.mxu0 %v9682_v10  ;;  %v11045_v29 = vunpack.i.h.bf16 %v11043_v35  ;;  %v11044_v6 = vunpack.i.l.bf16 %v11043_v35  ;;  %v9704_v28 = vpack.c.bf16 %v8599_v5, %v8596_v58 }
 0x69b   :  { %v11050_v50 = vunpack.i.h.bf16 %v11048_v23  ;;  %v11049_v3 = vunpack.i.l.bf16 %v11048_v23  ;;  %9280 = vmatmul.mubr.msk.f32.vlgmr.msra.gmra.mrb[36].mxu1 %vm2211_vm9, %v9151_v42  ;;  %9691 = vmatprep.subr.bf16.mxu0 %v9690_v36 }
 0x69c   :  { %9700 = vmatpush3.bf16.msra.mxu1 %v9699_v12  ;;  %9290 = vmatprep.mubr.msk.f32.mxu1 %vm11150_vm10, %v11139_v0  ;;  %v8598_v8 = vsel %vm1840_vm8, %v11045_v29, %v11039_v45  ;;  %v8595_v40 = vsel %vm1840_vm8, %v11044_v6, %v11029_v2 }
 0x69d   :  { %v8399_v51 = vsel %vm1613_vm7, %v11015_v46, %v11049_v3  ;;  %v8401_v52 = vsel %vm1613_vm7, %v11050_v50, %v11025_v49  ;;  %v11058_v55 = vpop.permute.xlu1 %11057  ;;  %9701 = vmatprep.subr.bf16.mxu1 %v11149_v27  ;;  %v8400_v47 = vsel %vm1613_vm7, %v11049_v3, %v11050_v50  ;;  %9152 = vmatmul.mubr.msk.f32.vlgmr.msra.gmra.mrb[24].mxu0 %vm2211_vm9, %v9151_v42 }
 0x69e   :  { %v9702_v53 = vpack.c.bf16 %v8401_v52, %v8398_v63  ;;  %v11053_v34 = vpop.permute.xlu0 %11052  ;;  %v9696_v39 = vpack.c.bf16 %v8399_v51, %v8396_v17  ;;  %9693 = vmatpush1.bf16.msra.mxu0 %v9692_v62  ;;  %v9694_v4 = vpack.c.bf16 %v8400_v47, %v8397_v11  ;;  %8481 = vmatprep.mubr.f32.mxu0 %v11139_v0  ;;  %v11060_v38 = vunpack.i.h.bf16 %v11058_v55 }
 0x69f   :  { %v11055_v33 = vunpack.i.h.bf16 %v11053_v34  ;;  %v11054_v54 = vunpack.i.l.bf16 %v11053_v34  ;;  %v11059_v43 = vunpack.i.l.bf16 %v11058_v55  ;;  %v9706_v16 = vpack.c.bf16 %v8598_v8, %v8595_v40 }
 0x6a0   :  { %9703 = vmatpush3.bf16.msra.mxu1 %v9702_v53  ;;  %9695 = vmatprep.subr.bf16.mxu0 %v9694_v4 }
 0x6a1   :  { %v8597_v7 = vsel %vm1840_vm8, %v11030_v25, %v11054_v54  ;;  %v8600_v21 = vsel %vm1840_vm8, %v11040_v24, %v11055_v33  ;;  %v11063_v30 = vpop.permute.xlu1 %11062  ;;  %9712 = vmatprep.subr.bf16.mxu1 %v11149_v27  ;;  %v8602_v1 = vsel %vm1840_vm8, %v11059_v43, %v11060_v38 }
 0x6a2   :  { %v9713_v41 = vpack.c.bf16 %v8600_v21, %v8597_v7  ;;  %v11065_v59 = vunpack.i.h.bf16 %v11063_v30  ;;  %v11064_v44 = vunpack.i.l.bf16 %v11063_v30  ;;  %v11068_v32 = vpop.permute.xlu0 %11067  ;;  %9697 = vmatpush1.bf16.msra.mxu0 %v9696_v39 }
 0x6a3   :  { %v11070_v15 = vunpack.i.h.bf16 %v11068_v32  ;;  %v11069_v9 = vunpack.i.l.bf16 %v11068_v32  ;;  %9291 = vmatmul.mubr.msk.f32.vlgmr.msra.gmra.mrb[38].mxu1 %vm2211_vm9, %v9154_v56  ;;  %9705 = vmatprep.subr.bf16.mxu0 %v9704_v28 }
 0x6a4   :  { %v8601_v31 = vsel %vm1840_vm8, %v11064_v44, %v11059_v43  ;;  %9714 = vmatpush3.bf16.msra.mxu1 %v9713_v41  ;;  %9301 = vmatprep.mubr.msk.f32.mxu1 %vm11150_vm10, %v11139_v0 }
 0x6a5   :  { %v8604_v20 = vsel %vm1840_vm8, %v11065_v59, %v11069_v9  ;;  %v8605_v61 = vsel %vm1840_vm8, %v11069_v9, %v11070_v15  ;;  %9715 = vmatprep.subr.bf16.mxu1 %v11149_v27  ;;  %9155 = vmatmul.mubr.msk.f32.vlgmr.msra.gmra.mrb[24].mxu0 %vm2211_vm9, %v9154_v56  ;;  %v9157_v27 = vld [vmem:[%s13484_s7 + $0x20] sm:$0xf]  ;;  %s11151_s7 = smov [#allocation5]  }
 0x6a6   :  { %v11073_v48 = vpop.permute.xlu0 %11072  ;;  %v9708_v26 = vpack.c.bf16 %v8605_v61, %v8602_v1  ;;  %v9710_v37 = vpack.c.bf16 %v8604_v20, %v8601_v31  ;;  %9707 = vmatpush1.bf16.msra.mxu0 %v9706_v16  ;;  %8686 = vmatprep.mubr.f32.mxu0 %v11139_v0  ;;  %s8845_s23 = sshll.u32 %s11151_s7, 4  ;;  %s8846_s23 = int_to_ptr.vmem [resolvable:$true] %s8845_s23 }
 0x6a7   :  { %v11075_v57 = vunpack.i.h.bf16 %v11073_v48  ;;  %v11074_v10 = vunpack.i.l.bf16 %v11073_v48  ;;  %s11110_s3 = scalar_lea.vmem %s8846_s23, 192  ;;  %p11115_p9 = scmp.lt.s32.totalorder %s8846_s23, %s8846_s23 }
 0x6a8   :  { %9709 = vmatprep.subr.bf16.mxu0 %v9708_v26  ;;  %p11111_p8 = scmp.ne.s32.totalorder %s8846_s23, %s11110_s3  ;;  %p11116_p10 = scmp.lt.s32.totalorder %s11110_s3, %s11110_s3 }
 0x6a9   :  { %v8603_v13 = vsel %vm1840_vm8, %v11060_v38, %v11074_v10  ;;  %v8606_v60 = vsel %vm1840_vm8, %v11070_v15, %v11075_v57 }
 0x6aa   :  { %v9716_v19 = vpack.c.bf16 %v8606_v60, %v8603_v13  ;;  %9711 = vmatpush1.bf16.msra.mxu0 %v9710_v37  ;;  %p11117_p11 = por %p11116_p10, %p11115_p9 }
 0x6ac   :  { %9717 = vmatpush3.bf16.msra.mxu1 %v9716_v19  ;;  %p11118_p12 = pnand %p11117_p11, %p11111_p8 }
 0x6ad   :  { %9158 = vmatmul.mubr.msk.f32.vlgmr.msra.gmra.mrb[24].mxu0 %vm2211_vm9, %v9157_v27 }
 0x6af   :  { %9302 = vmatmul.mubr.msk.f32.vlgmr.msra.gmra.mrb[40].mxu1 %vm2211_vm9, %v9157_v27 }
 0x6b2   :  { %v8769_v51 = vpop.permute.xlu1 %8768 }
 0x738   :  { %v7191_v22 = vpop.f32.mrb[24].mxu1 }
 0x739   :  { %v9215_v14 = vpop.f32.mrb[25].mxu1 }
 0x740   :  { %v7335_v42 = vpop.f32.mrb[26].mxu1 }
 0x741   :  { %v7336_v0 = vadd.f32 %v7335_v42, %v7191_v22  ;;  %v9226_v12 = vpop.f32.mrb[27].mxu1 }
 0x748   :  { %v7525_v62 = vpop.f32.mrb[28].mxu1 }
 0x749   :  { %v7531_v18 = vadd.f32 %v7525_v62, %v7336_v0  ;;  %v9237_v35 = vpop.f32.mrb[29].mxu1 }
 0x756   :  { %v7734_v36 = vpop.f32.mrb[30].mxu1 }
 0x757   :  { %v7740_v25 = vadd.f32 %v7734_v36, %v7531_v18  ;;  %v9248_v2 = vpop.f32.mrb[31].mxu1 }
 0x75e   :  { %v7939_v24 = vpop.f32.mrb[32].mxu1 }
 0x75f   :  { %v7945_v45 = vadd.f32 %v7939_v24, %v7740_v25  ;;  %v9259_v23 = vpop.f32.mrb[33].mxu1 }
 0x766   :  { %v8144_v49 = vpop.f32.mrb[34].mxu1 }
 0x767   :  { %v8150_v46 = vadd.f32 %v8144_v49, %v7945_v45  ;;  %v9270_v50 = vpop.f32.mrb[35].mxu1 }
 0x76e   :  { %v8349_v3 = vpop.f32.mrb[36].mxu1 }
 0x76f   :  { %v8355_v63 = vadd.f32 %v8349_v3, %v8150_v46  ;;  %v9281_v29 = vpop.f32.mrb[37].mxu1 }
 0x776   :  { %v8554_v6 = vpop.f32.mrb[38].mxu1 }
 0x777   :  { %v8560_v11 = vadd.f32 %v8554_v6, %v8355_v63  ;;  %v9292_v17 = vpop.f32.mrb[39].mxu1 }
 0x780   :  { %v8688_v52 = vpop.f32.mrb[24].mxu0 }
 0x781   :  { %v8771_v55 = vadd.f32 %v8769_v51, %v8688_v52  ;;  %v8690_v47 = vpop.f32.mrb[25].mxu0 }
 0x782   :  { %v8759_v53 = vpop.f32.mrb[40].mxu1  ;;  %v8772_v34 = vadd.f32 %v8769_v51, %v8690_v47 }
 0x783   :  { %v8765_v58 = vadd.f32 %v8759_v53, %v8560_v11  ;;  %v9303_v5 = vpop.f32.mrb[41].mxu1  ;;  %v8775_v39 = vsel %vm8774_vm11, %v8771_v55, -inf }
 0x784   :  { %v8776_v33 = vrot.slane %v8775_v39, 4  ;;  %v8782_v54 = vsel %vm8774_vm11, %v8772_v34, -inf }
 0x785   :  { %v8773_v4 = vadd.f32 %v8769_v51, %v8765_v58  ;;  %v8783_v8 = vrot.slane %v8782_v54, 4 }
 0x786   :  { %v8777_v40 = vmax.f32 %v8775_v39, %v8776_v33 }
 0x787   :  { %v8790_v56 = vsel %vm8789_vm12, %v8773_v4, -inf  ;;  %v8784_v38 = vmax.f32 %v8782_v54, %v8783_v8 }
 0x788   :  { %v8791_v43 = vrot.slane %v8790_v56, 4  ;;  %v8778_v7 = vrot.slane %v8777_v40, 2 }
 0x789   :  { %v8785_v21 = vrot.slane %v8784_v38, 2 }
 0x78a   :  { %v8792_v30 = vmax.f32 %v8790_v56, %v8791_v43  ;;  %v8779_v41 = vmax.f32 %v8777_v40, %v8778_v7 }
 0x78b   :  { %v8786_v59 = vmax.f32 %v8784_v38, %v8785_v21 }
 0x78c   :  { %v8793_v44 = vrot.slane %v8792_v30, 2  ;;  %v8780_v32 = vrot.slane %v8779_v41, 1 }
 0x78d   :  { %v8787_v28 = vrot.slane %v8786_v59, 1 }
 0x78e   :  { %v8794_v15 = vmax.f32 %v8792_v30, %v8793_v44  ;;  %v8781_v9 = vmax.f32 %v8779_v41, %v8780_v32 }
 0x78f   :  { %v8788_v16 = vmax.f32 %v8786_v59, %v8787_v28 }
 0x790   :  { %v8795_v31 = vrot.slane %v8794_v15, 1  ;;  %v8797_v20 = vsub.f32 %v8771_v55, %v8781_v9 }
 0x791   :  { %v8798_v1 = vsub.f32 %v8772_v34, %v8788_v16 }
 0x792   :  { %v8796_v61 = vmax.f32 %v8794_v15, %v8795_v31  ;;  %v8800_v48 = vmul.f32 1.442695, %v8797_v20 }
 0x793   :  { %v8802_v26 = vmul.f32 1.442695, %v8798_v1 }
 0x794   :  { %v8799_v37 = vsub.f32 %v8773_v4, %v8796_v61  ;;  %11076 = vpow2.f32 %v8800_v48 }
 0x795   :  { %11078 = vpow2.f32 %v8802_v26 }
 0x796   :  { %v8804_v57 = vmul.f32 1.442695, %v8799_v37 }
 0x798   :  { %11080 = vpow2.f32 %v8804_v57 }
 0x79e   :  { %v11077_v10 = vpop.eup %11076 }
 0x79f   :  { %v11079_v13 = vpop.eup %11078  ;;  %v8806_v60 = vsel %vm8774_vm11, %v11077_v10, 0.0 }
 0x7a0   :  { %v8807_v19 = vrot.slane %v8806_v60, 4  ;;  %v8813_v27 = vsel %vm8774_vm11, %v11079_v13, 0.0 }
 0x7a1   :  { %v8814_v14 = vrot.slane %v8813_v27, 4 }
 0x7a2   :  { %v11081_v22 = vpop.eup %11080  ;;  %v8808_v42 = vadd.f32 %v8807_v19, %v8806_v60 }
 0x7a3   :  { %v8820_v0 = vsel %vm8789_vm12, %v11081_v22, 0.0  ;;  %v8815_v12 = vadd.f32 %v8814_v14, %v8813_v27 }
 0x7a4   :  { %v8821_v62 = vrot.slane %v8820_v0, 4  ;;  %v8809_v18 = vrot.slane %v8808_v42, 2 }
 0x7a5   :  { %v8816_v35 = vrot.slane %v8815_v12, 2 }
 0x7a6   :  { %v8822_v36 = vadd.f32 %v8821_v62, %v8820_v0  ;;  %v8810_v25 = vadd.f32 %v8809_v18, %v8808_v42 }
 0x7a7   :  { %v8817_v2 = vadd.f32 %v8816_v35, %v8815_v12 }
 0x7a8   :  { %v8823_v24 = vrot.slane %v8822_v36, 2  ;;  %v8811_v45 = vrot.slane %v8810_v25, 1 }
 0x7a9   :  { %v8818_v23 = vrot.slane %v8817_v2, 1 }
 0x7aa   :  { %v8824_v49 = vadd.f32 %v8823_v24, %v8822_v36  ;;  %v8812_v46 = vadd.f32 %v8811_v45, %v8810_v25 }
 0x7ab   :  { %v8819_v3 = vadd.f32 %v8818_v23, %v8817_v2 }
 0x7ac   :  { %v8825_v50 = vrot.slane %v8824_v49, 1  ;;  %11082 = vrcp.f32 %v8812_v46 }
 0x7ad   :  { %11084 = vrcp.f32 %v8819_v3 }
 0x7ae   :  { %v8826_v63 = vadd.f32 %v8825_v50, %v8824_v49 }
 0x7b0   :  { %11086 = vrcp.f32 %v8826_v63 }
 0x7b6   :  { %v11083_v29 = vpop.eup %11082 }
 0x7b7   :  { %v11085_v6 = vpop.eup %11084  ;;  %v8830_v11 = vmul.f32 %v11083_v29, %v11077_v10 }
 0x7b8   :  { %v8831_v17 = vmul.f32 %v11085_v6, %v11079_v13 }
 0x7ba   :  { %v11087_v51 = vpop.eup %11086  ;;  %v8835_v55 = vcombine.low %v8830_v11, %v8831_v17 }
 0x7bb   :  { %v8832_v52 = vmul.f32 %v11087_v51, %v11081_v22 }
 0x7bc   :  { %8837 = vst [vmem:[#allocation5] sm:$0xff] %v8835_v55 }
 0x7bd   :  { %8838 = vst.msk [vmem:[#allocation5 + $0x8] sm:$0xf] %vm8789_vm12, %v8832_v52 }
 0x7be   :  { %11121 = shalt.err (!%p11118_p12)
}
 0x7bf   :  { %s11122_s4 = scalar_lea.hbm %s13486_s9, 192 }
 0x7c0   :  { %p11123_p13 = scmp.ne.s32.totalorder %s13486_s9, %s11122_s4  ;;  %p11126_p0 = scmp.lt.u32.totalorder %s11122_s4, %s13486_s9 }
 0x7c2   :  { %p11128_p1 = pnand %p11126_p0, %p11123_p13 }
 0x7c4   :  { %11131 = shalt.err (!%p11128_p1)
}
 0x7c5   :  { %8848 = dma.vmem_to_hbm [thread:$0]  %s8846_s23, 192, %s13486_s9, [#allocation4]  }
 0x7c6   :  { %11134 = dma.done.wait [#allocation4], 192  }
 0x7c7   :  { %11135 = vsyncadd [#allocation4], 4294967104 }
 0x7c8   :  { %8852 = vsyncpa [#allocation3], 1 }
 0x7c9   :  { %8853 = vsyncpa [#allocation4], 1 }

</bundles_post_ra>
